<compile_context>
chip_gen: v6e
topology: v6e:2x2x1
jax: 0.10.0
libtpu: 0.0.40
codegen_flags: <defaults>
</compile_context>

<pallas_src>
import math

import jax
import jax.numpy as jnp
from jax.experimental import pallas as pl
from jax.experimental.pallas import tpu as pltpu


def _pe_kernel(params_ref, cx_ref, cy_ref, out_ref):
    """One grid step writes a (c_tile, hw_tile) block of the flat PE tensor.

    params_ref: (c_tile, 4)  columns = [2π·gx, 2π·gy, phase, 0]
    cx_ref:     (1, hw_tile) x coordinate in [-1, 1], flattened row-major
    cy_ref:     (1, hw_tile) y coordinate in [-1, 1], flattened row-major
    out_ref:    (c_tile, hw_tile)
    """
    p = params_ref[...]                 # (c_tile, 4)
    gx = p[:, 0:1]                      # (c_tile, 1), already scaled by 2π
    gy = p[:, 1:2]                      # (c_tile, 1)
    ph = p[:, 2:3]                      # (c_tile, 1): 0 (sin half) / π/2 (cos half)

    cx = cx_ref[...]                    # (1, hw_tile)
    cy = cy_ref[...]                    # (1, hw_tile)

    # Broadcast FMAs on the VPU; one full-width sin covers sin AND cos halves
    # (cos(x) == sin(x + π/2)).
    out_ref[...] = jnp.sin(gx * cx + gy * cy + ph)


def position_embedding_random(gaussian_matrix: jax.Array, size,
                              *, block_budget_bytes=8 << 20) -> jax.Array:
    """Equivalent of PositionEmbeddingRandom.forward(size).

    gaussian_matrix: (2, F) float32
    returns: (2*F, H, W) float32 (channel-first, reshape from (2F, H*W) is free)
    """
    h, w = size
    f = gaussian_matrix.shape[1]
    c = 2 * f
    n = h * w

    # ---- Lane-dense flattened coordinates, mapped to [-1, 1] ----------------
    # Matches (cumsum(ones) - 0.5)/dim followed by 2*c - 1 in the reference.
    ys = 2.0 * ((jnp.arange(h, dtype=jnp.float32) + 0.5) / h) - 1.0
    xs = 2.0 * ((jnp.arange(w, dtype=jnp.float32) + 0.5) / w) - 1.0
    cy = jnp.broadcast_to(ys[:, None], (h, w)).reshape(1, n)
    cx = jnp.broadcast_to(xs[None, :], (h, w)).reshape(1, n)

    # ---- Packed per-channel params (C, 4): [2π·gx, 2π·gy, phase, 0] ---------
    # Channel layout is [sin half | cos half]; duplicating the Gaussian rows
    # and adding a π/2 phase to the upper half lets the kernel emit one sin.
    two_pi = 2.0 * math.pi
    gx2 = two_pi * jnp.concatenate([gaussian_matrix[0], gaussian_matrix[0]])
    gy2 = two_pi * jnp.concatenate([gaussian_matrix[1], gaussian_matrix[1]])
    phase = jnp.concatenate([
        jnp.zeros((f,), jnp.float32),
        jnp.full((f,), 0.5 * math.pi, jnp.float32),
    ])
    params = jnp.stack([gx2, gy2, phase, jnp.zeros_like(phase)], axis=1)  # (C, 4)

    # ---- Tile selection ------------------------------------------------------
    total_bytes = c * n * 4
    if total_bytes <= (2 << 20):
        # Tiny output: one grid step; splitting only adds ~0.35us/step overhead.
        c_tile, hw_tile = c, n
    else:
        # Two balanced channel blocks (sin/cos halves) -> v7x megacore work;
        # costs nothing on single-TC v5e/v6e.
        c_tile = c // 2 if (c % 16 == 0) else c
        px_budget = max(block_budget_bytes // (c_tile * 4), 128)
        hw_tile = min(pl.cdiv(n, 128) * 128, (px_budget // 128) * 128)

    grid = (pl.cdiv(c, c_tile), pl.cdiv(n, hw_tile))

    # VMEM request with headroom, capped well under v7x's 64 MiB per-TC VMEM.
    block_bytes = c_tile * hw_tile * 4
    need = (2 * block_bytes                 # double-buffered output block
            + 2 * 2 * hw_tile * 4           # cx/cy blocks, double-buffered
            + 2 * c_tile * 128 * 4          # params (lane-padded), double-buffered
            + (4 << 20))                    # compiler-internal slack
    vmem_limit = int(min(48 << 20, max(need, 32 << 20)))

    out = pl.pallas_call(
        _pe_kernel,
        out_shape=jax.ShapeDtypeStruct((c, n), jnp.float32),
        grid_spec=pltpu.PrefetchScalarGridSpec(
            num_scalar_prefetch=0,
            grid=grid,
            in_specs=[
                pl.BlockSpec((c_tile, 4), lambda ci, ni: (ci, 0)),
                pl.BlockSpec((1, hw_tile), lambda ci, ni: (0, ni)),
                pl.BlockSpec((1, hw_tile), lambda ci, ni: (0, ni)),
            ],
            out_specs=pl.BlockSpec((c_tile, hw_tile), lambda ci, ni: (ci, ni)),
        ),
        compiler_params=pltpu.CompilerParams(
            dimension_semantics=("parallel", "parallel"),
            vmem_limit_bytes=vmem_limit,
        ),
    )(params, cx, cy)

    # Contiguous reshape -> channel-first (2F, H, W); no extra HBM pass.
    return out.reshape(c, h, w)


def _reference(gaussian_matrix, size):
    """Pure-JAX reference mirroring the PyTorch module exactly."""
    h, w = size
    grid = jnp.ones((h, w), jnp.float32)
    y_embed = (jnp.cumsum(grid, axis=0) - 0.5) / h
    x_embed = (jnp.cumsum(grid, axis=1) - 0.5) / w
    coords = jnp.stack([x_embed, y_embed], axis=-1)          # (H, W, 2)
    coords = 2.0 * coords - 1.0
    coords = coords @ gaussian_matrix                        # (H, W, F)
    coords = 2.0 * math.pi * coords
    pe = jnp.concatenate([jnp.sin(coords), jnp.cos(coords)], axis=-1)
    return jnp.transpose(pe, (2, 0, 1))                      # (2F, H, W)


if __name__ == "__main__":
    num_pos_feats = 64
    scale = 1.0  # scale=None/<=0 -> 1.0 in the PyTorch module

    key = jax.random.PRNGKey(0)
    # Deterministic stand-in for the registered buffer scale * randn((2, F)).
    gaussian_matrix = scale * jax.random.normal(
        key, (2, num_pos_feats), dtype=jnp.float32)

    # Small case (single grid step path).
    h, w = 16, 16
    pe = jax.block_until_ready(position_embedding_random(gaussian_matrix, (h, w)))
    ref = _reference(gaussian_matrix, (h, w))
    assert pe.shape == (2 * num_pos_feats, h, w), pe.shape
    assert jnp.allclose(pe, ref, atol=2e-5, rtol=2e-5), "mismatch (16x16)"

    # Larger, non-128-aligned case (tiled path with channel split + ragged edge).
    h2, w2 = 70, 70
    pe2 = jax.block_until_ready(position_embedding_random(gaussian_matrix, (h2, w2)))
    ref2 = _reference(gaussian_matrix, (h2, w2))
    assert pe2.shape == (2 * num_pos_feats, h2, w2), pe2.shape
    assert jnp.allclose(pe2, ref2, atol=2e-5, rtol=2e-5), "mismatch (70x70)"

    print("KERNEL_OK")
</pallas_src>

<mosaic_0001>
module attributes {stable_mosaic.version = 11 : i64} {
  func.func @_pe_kernel(%arg0: i32, %arg1: i32, %arg2: memref<128x4xf32, #tpu.memory_space<vmem>>, %arg3: memref<1x256xf32, #tpu.memory_space<vmem>>, %arg4: memref<1x256xf32, #tpu.memory_space<vmem>>, %arg5: memref<128x256xf32, #tpu.memory_space<vmem>>) attributes {dimension_semantics = [#tpu.dimension_semantics<parallel>, #tpu.dimension_semantics<parallel>], iteration_bounds = array<i64: 1, 1>, scalar_prefetch = 0 : i64, scratch_operands = 0 : i64, tpu.core_type = #tpu.core_type<tc>, window_params = [{transform_indices = @transform_0, window_bounds = array<i64: 128, 4>}, {transform_indices = @transform_1, window_bounds = array<i64: 1, 256>}, {transform_indices = @transform_2, window_bounds = array<i64: 1, 256>}, {transform_indices = @transform_3, window_bounds = array<i64: 128, 256>}]} {
    %c0 = arith.constant 0 : index
    %c0_0 = arith.constant 0 : index
    %0 = vector.load %arg2[%c0, %c0_0] : memref<128x4xf32, #tpu.memory_space<vmem>>, vector<128x4xf32>
    %1 = vector.extract_strided_slice %0 {offsets = [0, 0], sizes = [128, 1], strides = [1, 1]} : vector<128x4xf32> to vector<128x1xf32>
    %2 = vector.extract_strided_slice %0 {offsets = [0, 1], sizes = [128, 1], strides = [1, 1]} : vector<128x4xf32> to vector<128x1xf32>
    %3 = vector.extract_strided_slice %0 {offsets = [0, 2], sizes = [128, 1], strides = [1, 1]} : vector<128x4xf32> to vector<128x1xf32>
    %c0_1 = arith.constant 0 : index
    %c0_2 = arith.constant 0 : index
    %4 = vector.load %arg3[%c0_1, %c0_2] : memref<1x256xf32, #tpu.memory_space<vmem>>, vector<1x256xf32>
    %c0_3 = arith.constant 0 : index
    %c0_4 = arith.constant 0 : index
    %5 = vector.load %arg4[%c0_3, %c0_4] : memref<1x256xf32, #tpu.memory_space<vmem>>, vector<1x256xf32>
    %6 = vector.broadcast %1 : vector<128x1xf32> to vector<128x256xf32>
    %7 = vector.broadcast %4 : vector<1x256xf32> to vector<128x256xf32>
    %8 = arith.mulf %6, %7 : vector<128x256xf32>
    %9 = vector.broadcast %2 : vector<128x1xf32> to vector<128x256xf32>
    %10 = vector.broadcast %5 : vector<1x256xf32> to vector<128x256xf32>
    %11 = arith.mulf %9, %10 : vector<128x256xf32>
    %12 = arith.addf %8, %11 : vector<128x256xf32>
    %13 = vector.broadcast %3 : vector<128x1xf32> to vector<128x256xf32>
    %14 = arith.addf %12, %13 : vector<128x256xf32>
    %15 = math.sin %14 : vector<128x256xf32>
    %c0_5 = arith.constant 0 : index
    %c0_6 = arith.constant 0 : index
    %16 = vector.load %arg5[%c0_5, %c0_6] : memref<128x256xf32, #tpu.memory_space<vmem>>, vector<128x256xf32>
    tpu.vector_store %arg5[%c0_5, %c0_6], %15 {strides = array<i32>} : memref<128x256xf32, #tpu.memory_space<vmem>>, vector<128x256xf32>,
    return
  }
  func.func @transform_0(%arg0: i32, %arg1: i32) -> (i32, i32) {
    %c0_i32 = arith.constant 0 : i32
    %c0_i32_0 = arith.constant 0 : i32
    return %arg0, %c0_i32 : i32, i32
  }
  func.func @transform_1(%arg0: i32, %arg1: i32) -> (i32, i32) {
    %c0_i32 = arith.constant 0 : i32
    %c0_i32_0 = arith.constant 0 : i32
    return %c0_i32, %arg1 : i32, i32
  }
  func.func @transform_2(%arg0: i32, %arg1: i32) -> (i32, i32) {
    %c0_i32 = arith.constant 0 : i32
    %c0_i32_0 = arith.constant 0 : i32
    return %c0_i32, %arg1 : i32, i32
  }
  func.func @transform_3(%arg0: i32, %arg1: i32) -> (i32, i32) {
    %c0_i32 = arith.constant 0 : i32
    return %arg0, %arg1 : i32, i32
  }
}

</mosaic_0001>

<bundles_post_ra>
// kernel: tpu_custom_call.1
= control target key start
LH: loop header
LB: loop body
LE: loop exit
PB: predicated region body
PF: predicated region fallthrough
CT: control target
= control target key end

     0   :  { %v4191_v2 = vmov 0   ;;  %s6921_s0 = inlined_call_operand.vmem [shape: f32[128,4], index: 0, kind: input, shape index: {}]   ;;  %s6922_s1 = inlined_call_operand.vmem [shape: f32[1,256], index: 1, kind: input, shape index: {}]   ;;  %s6923_s2 = inlined_call_operand.vmem [shape: f32[1,256], index: 2, kind: input, shape index: {}]   ;;  %s6924_s3 = inlined_call_operand.hbm [shape: f32[128,256], index: 3, kind: output, shape index: {}]  }
   0x1   :  { %v17_v0 = vld [vmem:[%s6921_s0 + $0x10] sm:$0xff]  ;;  %v15_v1 = vld [vmem:[%s6921_s0] sm:$0xff]  ;;  %4036 = vset.pattern.permute.xlu1 %v4191_v2  ;;  %4035 = vset.pattern.permute.xlu0 %v4191_v2  ;;  %v18_v3 = vld [vmem:[%s6921_s0 + $0x18] sm:$0xff] }
   0x2   :  { %45 = vperm.xlu1 %4036, %v17_v0   ;;  %35 = vperm.xlu0 %4035, %v15_v1   ;;  %v16_v4 = vld [vmem:[%s6921_s0 + $0x8] sm:$0xff] }
   0x3   :  { %8 = vsyncpa [#allocation3], 0  ;;  %v20_v5 = vld [vmem:[%s6921_s0 + $0x28] sm:$0xff]  ;;  %v19_v6 = vld [vmem:[%s6921_s0 + $0x20] sm:$0xff]  ;;  %v4192_v17 = vmov 1   ;;  %v4193_v18 = vmov 2   ;;  %v114_v19 = vlaneseq }
   0x4   :  { %v22_v7 = vld [vmem:[%s6921_s0 + $0x38] sm:$0xff]  ;;  %v21_v8 = vld [vmem:[%s6921_s0 + $0x30] sm:$0xff]  ;;  %v24_v9 = vld [vmem:[%s6921_s0 + $0x48] sm:$0xff] }
   0x5   :  { %v23_v10 = vld [vmem:[%s6921_s0 + $0x40] sm:$0xff]  ;;  %v26_v11 = vld [vmem:[%s6921_s0 + $0x58] sm:$0xff]  ;;  %v25_v12 = vld [vmem:[%s6921_s0 + $0x50] sm:$0xff]  ;;  %v115_v20 = vshrl.u32 %v114_v19, 7 }
   0x6   :  { %50 = vperm.xlu1 %4036, %v18_v3   ;;  %40 = vperm.xlu0 %4035, %v16_v4   ;;  %v28_v13 = vld [vmem:[%s6921_s0 + $0x68] sm:$0xff]  ;;  %v27_v14 = vld [vmem:[%s6921_s0 + $0x60] sm:$0xff]  ;;  %v30_v15 = vld [vmem:[%s6921_s0 + $0x78] sm:$0xff] }
   0x7   :  { %v29_v16 = vld [vmem:[%s6921_s0 + $0x70] sm:$0xff]  ;;  %v116_v21 = vsub.s32 0, %v115_v20  ;;  %v120_v22 = vsub.s32 1, %v115_v20  ;;  %v31_v23 = vld [vmem:[%s6922_s1] sm:$0x3] }
   0x9   :  { %v4274_v24 = vrot.slane %v31_v23, %v116_v21  ;;  %v4276_v25 = vrot.slane %v31_v23, %v120_v22 }
   0xa   :  { %60 = vperm.xlu1 %4036, %v20_v5   ;;  %55 = vperm.xlu0 %4035, %v19_v6  }
   0xe   :  { %70 = vperm.xlu1 %4036, %v22_v7   ;;  %65 = vperm.xlu0 %4035, %v21_v8  }
  0x12   :  { %80 = vperm.xlu1 %4036, %v24_v9   ;;  %75 = vperm.xlu0 %4035, %v23_v10  }
  0x16   :  { %90 = vperm.xlu1 %4036, %v26_v11   ;;  %85 = vperm.xlu0 %4035, %v25_v12  }
  0x1a   :  { %100 = vperm.xlu1 %4036, %v28_v13   ;;  %95 = vperm.xlu0 %4035, %v27_v14  }
  0x1e   :  { %110 = vperm.xlu1 %4036, %v30_v15   ;;  %105 = vperm.xlu0 %4035, %v29_v16  }
  0x22   :  { %4038 = vset.pattern.permute.xlu1 %v4192_v17  ;;  %4037 = vset.pattern.permute.xlu0 %v4192_v17 }
  0x23   :  { %161 = vperm.xlu1 %4038, %v16_v4   ;;  %157 = vperm.xlu0 %4037, %v15_v1  }
  0x27   :  { %165 = vperm.xlu1 %4038, %v17_v0   ;;  %169 = vperm.xlu0 %4037, %v18_v3  }
  0x2b   :  { %173 = vperm.xlu1 %4038, %v19_v6   ;;  %177 = vperm.xlu0 %4037, %v20_v5  }
  0x2f   :  { %181 = vperm.xlu1 %4038, %v21_v8   ;;  %185 = vperm.xlu0 %4037, %v22_v7  }
  0x33   :  { %189 = vperm.xlu1 %4038, %v23_v10   ;;  %193 = vperm.xlu0 %4037, %v24_v9  }
  0x37   :  { %197 = vperm.xlu1 %4038, %v25_v12   ;;  %201 = vperm.xlu0 %4037, %v26_v11  }
  0x3b   :  { %205 = vperm.xlu1 %4038, %v27_v14   ;;  %209 = vperm.xlu0 %4037, %v28_v13  }
  0x3f   :  { %213 = vperm.xlu1 %4038, %v29_v16   ;;  %217 = vperm.xlu0 %4037, %v30_v15  }
  0x43   :  { %4039 = vset.pattern.permute.xlu1 %v4193_v18  ;;  %4040 = vset.pattern.permute.xlu0 %v4193_v18 }
  0x44   :  { %296 = vperm.xlu1 %4039, %v15_v1   ;;  %300 = vperm.xlu0 %4040, %v16_v4  }
  0x48   :  { %304 = vperm.xlu1 %4039, %v17_v0   ;;  %312 = vperm.xlu0 %4040, %v19_v6   ;;  %v32_v0 = vld [vmem:[%s6923_s2] sm:$0x3]  ;;  %s4200_s2 = smov [#allocation2]  }
  0x49   :  { %s3756_s19 = sshll.u32 %s4200_s2, 4  ;;  %s3757_s19 = int_to_ptr.vmem [resolvable:$true] %s3756_s19 }
  0x4a   :  { %s4169_s20 = scalar_lea.vmem %s3757_s19, 4096  ;;  %p4174_p1 = scmp.lt.s32.totalorder %s3757_s19, %s3757_s19 }
  0x4b   :  { %p4170_p0 = scmp.ne.s32.totalorder %s3757_s19, %s4169_s20  ;;  %p4175_p2 = scmp.lt.s32.totalorder %s4169_s20, %s4169_s20 }
  0x4c   :  { %308 = vperm.xlu1 %4039, %v18_v3   ;;  %320 = vperm.xlu0 %4040, %v21_v8  }
  0x4d   :  { %p4176_p3 = por %p4175_p2, %p4174_p1 }
  0x4f   :  { %p4177_p4 = pnand %p4176_p3, %p4170_p0 }
  0x50   :  { %316 = vperm.xlu1 %4039, %v20_v5   ;;  %328 = vperm.xlu0 %4040, %v23_v10  }
  0x54   :  { %324 = vperm.xlu1 %4039, %v22_v7   ;;  %336 = vperm.xlu0 %4040, %v25_v12   ;;  %v228_v7 = vrot.slane %v32_v0, %v120_v22  ;;  %v224_v12 = vrot.slane %v32_v0, %v116_v21 }
  0x58   :  { %332 = vperm.xlu1 %4039, %v24_v9   ;;  %344 = vperm.xlu0 %4040, %v27_v14  }
  0x5c   :  { %340 = vperm.xlu1 %4039, %v26_v11   ;;  %352 = vperm.xlu0 %4040, %v29_v16  }
  0x60   :  { %348 = vperm.xlu1 %4039, %v28_v13  }
  0x64   :  { %356 = vperm.xlu1 %4039, %v30_v15  }
  0x7d   :  { %v46_v26 = vpop.permute.xlu1 %45  ;;  %v4278_v27 = vpop.permute.xlu0 %35 }
  0x7e   :  { %v128_v28 = vmul.f32 %v4274_v24, %v46_v26  ;;  %v129_v29 = vmul.f32 %v4276_v25, %v46_v26 }
  0x81   :  { %v51_v30 = vpop.permute.xlu1 %50  ;;  %v4282_v31 = vpop.permute.xlu0 %40 }
  0x82   :  { %v4285_v32 = vmul.f32 %v4274_v24, %v51_v30  ;;  %v4288_v33 = vmul.f32 %v4276_v25, %v51_v30  ;;  %v127_v10 = vmul.f32 %v4276_v25, %v4282_v31 }
  0x85   :  { %v61_v34 = vpop.permute.xlu1 %60  ;;  %v56_v35 = vpop.permute.xlu0 %55 }
  0x86   :  { %v4291_v36 = vmul.f32 %v4274_v24, %v61_v34  ;;  %v4294_v37 = vmul.f32 %v4276_v25, %v61_v34  ;;  %v132_v38 = vmul.f32 %v4274_v24, %v56_v35  ;;  %v133_v39 = vmul.f32 %v4276_v25, %v56_v35 }
  0x89   :  { %v71_v40 = vpop.permute.xlu1 %70  ;;  %v66_v41 = vpop.permute.xlu0 %65 }
  0x8a   :  { %v4299_v42 = vmul.f32 %v4274_v24, %v71_v40  ;;  %v4302_v43 = vmul.f32 %v4276_v25, %v71_v40  ;;  %v4305_v44 = vmul.f32 %v4274_v24, %v66_v41  ;;  %v4308_v45 = vmul.f32 %v4276_v25, %v66_v41 }
  0x8c   :  { %6941 = vst [vmem:[#allocation5_spill] sm:$0xff] %v4299_v42  ;;  %6942 = vst [vmem:[#allocation6_spill] sm:$0xff] %v4302_v43 }
  0x8d   :  { %v81_v46 = vpop.permute.xlu1 %80  ;;  %v76_v47 = vpop.permute.xlu0 %75 }
  0x8e   :  { %v4311_v48 = vmul.f32 %v4274_v24, %v81_v46  ;;  %v4314_v49 = vmul.f32 %v4276_v25, %v81_v46  ;;  %v4317_v50 = vmul.f32 %v4274_v24, %v76_v47  ;;  %v4320_v51 = vmul.f32 %v4276_v25, %v76_v47 }
  0x90   :  { %6943 = vst [vmem:[#allocation7_spill] sm:$0xff] %v4311_v48  ;;  %6944 = vst [vmem:[#allocation8_spill] sm:$0xff] %v4314_v49 }
  0x91   :  { %v91_v52 = vpop.permute.xlu1 %90  ;;  %v86_v53 = vpop.permute.xlu0 %85 }
  0x92   :  { %v4323_v54 = vmul.f32 %v4274_v24, %v91_v52  ;;  %v4326_v55 = vmul.f32 %v4276_v25, %v91_v52  ;;  %v4329_v56 = vmul.f32 %v4274_v24, %v86_v53  ;;  %v4332_v57 = vmul.f32 %v4276_v25, %v86_v53 }
  0x94   :  { %6945 = vst [vmem:[#allocation9_spill] sm:$0xff] %v4323_v54  ;;  %6946 = vst [vmem:[#allocation10_spill] sm:$0xff] %v4326_v55 }
  0x95   :  { %6947 = vst [vmem:[#allocation11_spill] sm:$0xff] %v4329_v56  ;;  %6948 = vst [vmem:[#allocation12_spill] sm:$0xff] %v4332_v57  ;;  %v101_v58 = vpop.permute.xlu1 %100  ;;  %v96_v59 = vpop.permute.xlu0 %95 }
  0x96   :  { %v4335_v60 = vmul.f32 %v4274_v24, %v101_v58  ;;  %v4338_v61 = vmul.f32 %v4276_v25, %v101_v58  ;;  %v4341_v62 = vmul.f32 %v4274_v24, %v96_v59  ;;  %v4344_v63 = vmul.f32 %v4276_v25, %v96_v59 }
  0x98   :  { %6949 = vst [vmem:[#allocation13_spill] sm:$0xff] %v4335_v60  ;;  %6950 = vst [vmem:[#allocation14_spill] sm:$0xff] %v4338_v61 }
  0x99   :  { %6951 = vst [vmem:[#allocation15_spill] sm:$0xff] %v4341_v62  ;;  %6952 = vst [vmem:[#allocation16_spill] sm:$0xff] %v4344_v63  ;;  %v111_v1 = vpop.permute.xlu1 %110  ;;  %v106_v2 = vpop.permute.xlu0 %105 }
  0x9a   :  { %v4350_v3 = vmul.f32 %v4274_v24, %v111_v1  ;;  %v4353_v4 = vmul.f32 %v4276_v25, %v111_v1  ;;  %v4356_v5 = vmul.f32 %v4274_v24, %v106_v2  ;;  %v4359_v6 = vmul.f32 %v4276_v25, %v106_v2 }
  0x9c   :  { %6953 = vst [vmem:[#allocation17_spill] sm:$0xff] %v4350_v3  ;;  %6954 = vst [vmem:[#allocation18_spill] sm:$0xff] %v4353_v4 }
  0x9d   :  { %6955 = vst [vmem:[#allocation19_spill] sm:$0xff] %v4356_v5  ;;  %6956 = vst [vmem:[#allocation20_spill] sm:$0xff] %v4359_v6 }
  0x9e   :  { %v162_v8 = vpop.permute.xlu1 %161  ;;  %v158_v9 = vpop.permute.xlu0 %157 }
  0x9f   :  { %v234_v11 = vmul.f32 %v228_v7, %v162_v8 }
  0xa1   :  { %v4363_v13 = vadd.f32 %v234_v11, %v127_v10 }
  0xa2   :  { %v166_v14 = vpop.permute.xlu1 %165  ;;  %v170_v15 = vpop.permute.xlu0 %169 }
  0xa3   :  { %v235_v16 = vmul.f32 %v224_v12, %v166_v14  ;;  %v236_v17 = vmul.f32 %v228_v7, %v166_v14  ;;  %v237_v18 = vmul.f32 %v224_v12, %v170_v15  ;;  %v238_v19 = vmul.f32 %v228_v7, %v170_v15 }
  0xa5   :  { %v4365_v20 = vadd.f32 %v235_v16, %v128_v28  ;;  %v4367_v23 = vadd.f32 %v236_v17, %v129_v29 }
  0xa6   :  { %v174_v22 = vpop.permute.xlu1 %173  ;;  %v178_v26 = vpop.permute.xlu0 %177 }
  0xa7   :  { %v239_v30 = vmul.f32 %v224_v12, %v174_v22  ;;  %v240_v34 = vmul.f32 %v228_v7, %v174_v22  ;;  %v4369_v35 = vmul.f32 %v224_v12, %v178_v26  ;;  %v4371_v40 = vmul.f32 %v228_v7, %v178_v26 }
  0xa9   :  { %v4373_v21 = vadd.f32 %v239_v30, %v132_v38  ;;  %v4375_v41 = vadd.f32 %v240_v34, %v133_v39 }
  0xaa   :  { %v182_v46 = vpop.permute.xlu1 %181  ;;  %v186_v47 = vpop.permute.xlu0 %185 }
  0xab   :  { %v4377_v52 = vmul.f32 %v224_v12, %v182_v46  ;;  %v4379_v28 = vmul.f32 %v228_v7, %v182_v46  ;;  %v4381_v29 = vmul.f32 %v224_v12, %v186_v47  ;;  %v4383_v53 = vmul.f32 %v228_v7, %v186_v47 }
  0xac   :  { %v233_v47 = vmul.f32 %v224_v12, %v162_v8  ;;  %v126_v8 = vmul.f32 %v4274_v24, %v4282_v31 }
  0xad   :  { %6957 = vst [vmem:[#allocation21_spill] sm:$0xff] %v4381_v29  ;;  %6958 = vst [vmem:[#allocation22_spill] sm:$0xff] %v4383_v53 }
  0xae   :  { %v190_v58 = vpop.permute.xlu1 %189  ;;  %v194_v59 = vpop.permute.xlu0 %193  ;;  %v265_v6 = vadd.f32 %v233_v47, %v126_v8 }
  0xaf   :  { %v4385_v0 = vmul.f32 %v224_v12, %v190_v58  ;;  %v4387_v1 = vmul.f32 %v228_v7, %v190_v58  ;;  %v4389_v38 = vmul.f32 %v224_v12, %v194_v59  ;;  %v4391_v39 = vmul.f32 %v228_v7, %v194_v59 }
  0xb0   :  { %v231_v58 = vmul.f32 %v224_v12, %v158_v9  ;;  %v232_v59 = vmul.f32 %v228_v7, %v158_v9 }
  0xb1   :  { %6959 = vst [vmem:[#allocation23_spill] sm:$0xff] %v4387_v1  ;;  %6960 = vst [vmem:[#allocation24_spill] sm:$0xff] %v4389_v38 }
  0xb2   :  { %6961 = vst [vmem:[#allocation25_spill] sm:$0xff] %v4391_v39  ;;  %v198_v2 = vpop.permute.xlu1 %197  ;;  %v202_v10 = vpop.permute.xlu0 %201 }
  0xb3   :  { %v4393_v11 = vmul.f32 %v224_v12, %v198_v2  ;;  %v4395_v14 = vmul.f32 %v228_v7, %v198_v2  ;;  %v4397_v15 = vmul.f32 %v224_v12, %v202_v10  ;;  %v4399_v16 = vmul.f32 %v228_v7, %v202_v10 }
  0xb5   :  { %6962 = vst [vmem:[#allocation26_spill] sm:$0xff] %v4393_v11  ;;  %6963 = vst [vmem:[#allocation27_spill] sm:$0xff] %v4395_v14 }
  0xb6   :  { %6964 = vst [vmem:[#allocation28_spill] sm:$0xff] %v4397_v15  ;;  %6965 = vst [vmem:[#allocation29_spill] sm:$0xff] %v4399_v16  ;;  %v206_v17 = vpop.permute.xlu1 %205  ;;  %v210_v22 = vpop.permute.xlu0 %209  ;;  %v6938_v15 = vmov 1326507024  }
  0xb7   :  { %v4401_v26 = vmul.f32 %v224_v12, %v206_v17  ;;  %v4403_v30 = vmul.f32 %v228_v7, %v206_v17  ;;  %v4405_v34 = vmul.f32 %v224_v12, %v210_v22  ;;  %v4407_v46 = vmul.f32 %v228_v7, %v210_v22 }
  0xb8   :  { %v124_v17 = vmul.f32 %v4274_v24, %v4278_v27  ;;  %v125_v22 = vmul.f32 %v4276_v25, %v4278_v27 }
  0xb9   :  { %6966 = vst [vmem:[#allocation30_spill] sm:$0xff] %v4401_v26  ;;  %6967 = vst [vmem:[#allocation31_spill] sm:$0xff] %v4403_v30 }
  0xba   :  { %6968 = vst [vmem:[#allocation32_spill] sm:$0xff] %v4405_v34  ;;  %6969 = vst [vmem:[#allocation33_spill] sm:$0xff] %v4407_v46  ;;  %v214_v4 = vpop.permute.xlu1 %213  ;;  %v218_v2 = vpop.permute.xlu0 %217  ;;  %v263_v9 = vadd.f32 %v231_v58, %v124_v17  ;;  %v264_v46 = vadd.f32 %v232_v59, %v125_v22 }
  0xbb   :  { %v4409_v3 = vmul.f32 %v224_v12, %v214_v4  ;;  %v4411_v61 = vmul.f32 %v228_v7, %v214_v4  ;;  %v4413_v10 = vmul.f32 %v224_v12, %v218_v2  ;;  %v4415_v60 = vmul.f32 %v228_v7, %v218_v2 }
  0xbc   :  { %v4430_v2 = vadd.f32 %v237_v18, %v4285_v32 }
  0xbd   :  { %6970 = vst [vmem:[#allocation34_spill] sm:$0xff] %v4409_v3  ;;  %6971 = vst [vmem:[#allocation35_spill] sm:$0xff] %v4411_v61 }
  0xbe   :  { %6972 = vst [vmem:[#allocation36_spill] sm:$0xff] %v4413_v10  ;;  %6973 = vst [vmem:[#allocation37_spill] sm:$0xff] %v4415_v60  ;;  %v4433_v60 = vadd.f32 %v238_v19, %v4288_v33 }
  0xbf   :  { %v297_v34 = vpop.permute.xlu1 %296  ;;  %v301_v3 = vpop.permute.xlu0 %300 }
  0xc0   :  { %v4423_v4 = vadd.f32 %v297_v34, %v263_v9  ;;  %v4425_v12 = vadd.f32 %v297_v34, %v264_v46  ;;  %v4427_v7 = vadd.f32 %v301_v3, %v265_v6  ;;  %v4445_v17 = vadd.f32 %v301_v3, %v4363_v13 }
  0xc2   :  { %v6925_v25 = vand.u32 2147483647, %v4423_v4  ;;  %v394_v24 = vand.u32 2139095040, %v4423_v4  ;;  %v6926_v27 = vand.u32 2147483647, %v4425_v12  ;;  %v498_v31 = vand.u32 2139095040, %v4425_v12 }
  0xc3   :  { %v602_v18 = vand.u32 2139095040, %v4427_v7  ;;  %v6927_v9 = vand.u32 2147483647, %v4427_v7  ;;  %vm393_vm13 = vcmp.lt.s32.totalorder %v4423_v4, 0  ;;  %vm497_vm15 = vcmp.lt.s32.totalorder %v4425_v12, 0 }
  0xc4   :  { %v395_v47 = vshrl.u32 %v394_v24, 23  ;;  %v398_v34 = vand.u32 8388607, %v6925_v25  ;;  %v499_v6 = vshrl.u32 %v498_v31, 23  ;;  %v502_v32 = vand.u32 8388607, %v6926_v27 }
  0xc5   :  { %v603_v46 = vshrl.u32 %v602_v18, 23  ;;  %v6928_v18 = vmov 683565275  }
  0xc6   :  { %v3767_v33 = vadd.s32 4294967169, %v395_v47  ;;  %v3771_v19 = vadd.s32 4294967169, %v499_v6  ;;  %v399_v58 = vor.u32 8388608, %v398_v34  ;;  %v503_v22 = vor.u32 8388608, %v502_v32 }
  0xc7   :  { %v3775_v24 = vadd.s32 4294967169, %v603_v46  ;;  %v4454_v34 = vand.u32 8388607, %v6927_v9 }
  0xc8   :  { %v401_v59 = vadd.s32 1, %v3767_v33  ;;  %v505_v8 = vadd.s32 1, %v3771_v19  ;;  %v4448_v10 = vshll.u32 %v399_v58, 8  ;;  %v4450_v6 = vshll.u32 %v503_v22, 8 }
  0xc9   :  { %v4456_v3 = vadd.s32 1, %v3775_v24  ;;  %v6934_v58 = vmov 2475754826   ;;  %v6930_v22 = vmov 2131351028  }
  0xca   :  { %vm402_vm0 = vcmp.gt.s32.totalorder %v401_v59, 0  ;;  %vm506_vm1 = vcmp.gt.s32.totalorder %v505_v8, 0  ;;  %v6936_v24 = vmov 920167782  }
  0xcb   :  { %v403_v31 = vsel %vm402_vm0, %v401_v59, 0  ;;  %v507_v47 = vsel %vm506_vm1, %v505_v8, 0  ;;  %vm610_vm6 = vcmp.gt.s32.totalorder %v4456_v3, 0 }
  0xcc   :  { %v404_v25 = vshrl.u32 %v403_v31, 5  ;;  %v405_v27 = vand.u32 31, %v403_v31  ;;  %v4460_v19 = vshrl.u32 %v507_v47, 5  ;;  %v509_v46 = vand.u32 31, %v507_v47 }
  0xcd   :  { %v6932_v31 = vmov 2102212464   ;;  %v6974_v47 = vmov 683565275  }
  0xce   :  { %v406_v32 = vsub.s32 32, %v405_v27  ;;  %v408_v33 = vshll.u32 %v6928_v18, %v405_v27  ;;  %v411_v59 = vshll.u32 %v6934_v58, %v405_v27  ;;  %v414_v8 = vshll.u32 %v6930_v22, %v405_v27 }
  0xcf   :  { %v417_v9 = vshll.u32 %v6932_v31, %v405_v27  ;;  %v420_v61 = vshll.u32 %v6936_v24, %v405_v27  ;;  %vm423_vm2 = vcmp.lt.s32.totalorder %v404_v25, 1  ;;  %vm424_vm3 = vcmp.lt.s32.totalorder %v404_v25, 2 }
  0xd0   :  { %v409_v13 = vshrl.u32 %v6934_v58, %v406_v32  ;;  %v412_v5 = vshrl.u32 %v6930_v22, %v406_v32  ;;  %v415_v18 = vshrl.u32 %v6932_v31, %v406_v32  ;;  %v407_v16 = vshrl.u32 %v6974_v47, %v406_v32 }
  0xd1   :  { %v418_v55 = vshrl.u32 %v6936_v24, %v406_v32  ;;  %v421_v54 = vshrl.u32 %v6938_v15, %v406_v32  ;;  %v510_v62 = vsub.s32 32, %v509_v46  ;;  %vm425_vm4 = vcmp.lt.s32.totalorder %v404_v25, 3 }
  0xd2   :  { %v410_v30 = vor.u32 %v409_v13, %v408_v33  ;;  %v413_v63 = vor.u32 %v412_v5, %v411_v59  ;;  %v416_v26 = vor.u32 %v415_v18, %v414_v8  ;;  %vm426_vm5 = vcmp.lt.s32.totalorder %v404_v25, 4 }
  0xd3   :  { %v419_v27 = vor.u32 %v418_v55, %v417_v9  ;;  %v422_v39 = vor.u32 %v421_v54, %v420_v61  ;;  %v512_v32 = vshll.u32 %v6974_v47, %v509_v46  ;;  %v6975_v55 = vmov 2475754826  }
  0xd4   :  { %v427_v22 = vsel %vm423_vm2, %v407_v16, %v410_v30  ;;  %v428_v31 = vsel %vm426_vm5, %v416_v26, 2102212464  ;;  %v431_v58 = vsel %vm423_vm2, %v410_v30, %v413_v63  ;;  %v435_v49 = vsel %vm423_vm2, %v413_v63, %v416_v26 }
  0xd5   :  { %v429_v24 = vsel %vm425_vm4, %v413_v63, %v428_v31  ;;  %v432_v38 = vsel %vm426_vm5, %v419_v27, 920167782  ;;  %v436_v48 = vsel %vm426_vm5, %v422_v39, 1326507024  ;;  %v513_v54 = vshrl.u32 %v6975_v55, %v510_v62 }
  0xd6   :  { %v433_v5 = vsel %vm425_vm4, %v416_v26, %v432_v38  ;;  %v437_v13 = vsel %vm425_vm4, %v419_v27, %v436_v48  ;;  %v515_v61 = vshll.u32 %v6975_v55, %v509_v46  ;;  %v430_v16 = vsel %vm424_vm3, %v427_v22, %v429_v24 }
  0xd7   :  { %v434_v9 = vsel %vm424_vm3, %v431_v58, %v433_v5  ;;  %v438_v30 = vsel %vm424_vm3, %v435_v49, %v437_v13  ;;  %v6976_v18 = vmov 2131351028   ;;  %v514_v48 = vor.u32 %v513_v54, %v512_v32 }
  0xd8   :  { %v516_v63 = vshrl.u32 %v6976_v18, %v510_v62  ;;  %v4484_v39 = vmul.u32.u64.low %v4448_v10, %v438_v30  ;;  %v4485_v33 = vmul.u32.u64.high %v4448_v10, %v438_v30, %v4484_v39  ;;  %v518_v8 = vshll.u32 %v6976_v18, %v509_v46 }
  0xd9   :  { %v4488_v59 = vmul.u32.u64.low %v4448_v10, %v434_v9  ;;  %v4489_v38 = vmul.u32.u64.high %v4448_v10, %v434_v9, %v4488_v59  ;;  %v6977_v31 = vmov 2102212464   ;;  %v511_v58 = vshrl.u32 %v6974_v47, %v510_v62 }
  0xda   :  { %v517_v26 = vor.u32 %v516_v63, %v515_v61  ;;  %v519_v22 = vshrl.u32 %v6977_v31, %v510_v62  ;;  %v521_v49 = vshll.u32 %v6977_v31, %v509_v46  ;;  %v6978_v25 = vmov 920167782  }
  0xdb   :  { %v522_v24 = vshrl.u32 %v6978_v25, %v510_v62  ;;  %v525_v27 = vshrl.u32 %v6938_v15, %v510_v62  ;;  %v446_v5 = vmul.u32 %v4448_v10, %v430_v16  ;;  %v524_v9 = vshll.u32 %v6978_v25, %v509_v46 }
  0xdc   :  { %v520_v13 = vor.u32 %v519_v22, %v518_v8  ;;  %vm527_vm7 = vcmp.lt.s32.totalorder %v4460_v19, 1  ;;  %vm448_vm8 = vc.u32 %v4485_v33, %v4488_v59  ;;  %v449_v32 = vadd.s32 1, %v4489_v38 }
  0xdd   :  { %v523_v54 = vor.u32 %v522_v24, %v521_v49  ;;  %vm528_vm9 = vcmp.lt.s32.totalorder %v4460_v19, 2  ;;  %v526_v61 = vor.u32 %v525_v27, %v524_v9  ;;  %vm529_vm10 = vcmp.lt.s32.totalorder %v4460_v19, 3 }
  0xde   :  { %vm530_vm11 = vcmp.lt.s32.totalorder %v4460_v19, 4  ;;  %v535_v62 = vsel %vm527_vm7, %v514_v48, %v517_v26  ;;  %v450_v10 = vsel %vm448_vm8, %v449_v32, %v4489_v38  ;;  %v539_v46 = vsel %vm527_vm7, %v517_v26, %v520_v13 }
  0xdf   :  { %v532_v16 = vsel %vm530_vm11, %v520_v13, 2102212464  ;;  %v536_v30 = vsel %vm530_vm11, %v523_v54, 920167782  ;;  %v451_v63 = vadd.s32 %v450_v10, %v446_v5  ;;  %v531_v39 = vsel %vm527_vm7, %v511_v58, %v514_v48 }
  0xe0   :  { %v537_v8 = vsel %vm529_vm10, %v520_v13, %v536_v30  ;;  %v540_v22 = vsel %vm530_vm11, %v526_v61, 1326507024  ;;  %v533_v15 = vsel %vm529_vm10, %v517_v26, %v532_v16  ;;  %v611_v27 = vsel %vm610_vm6, %v4456_v3, 0 }
  0xe1   :  { %v538_v49 = vsel %vm528_vm9, %v535_v62, %v537_v8  ;;  %v541_v24 = vsel %vm529_vm10, %v523_v54, %v540_v22  ;;  %v452_v9 = vadd.s32 536870912, %v451_v63  ;;  %v6940_v58 = vand.u32 2147483647, %v4445_v17 }
  0xe2   :  { %v542_v38 = vsel %vm528_vm9, %v539_v46, %v541_v24  ;;  %v4514_v32 = vmul.u32.u64.low %v4450_v6, %v538_v49  ;;  %v4515_v14 = vmul.u32.u64.high %v4450_v6, %v538_v49, %v4514_v32  ;;  %v534_v13 = vsel %vm528_vm9, %v531_v39, %v533_v15 }
  0xe3   :  { %v4519_v48 = vmul.u32.u64.low %v4450_v6, %v542_v38  ;;  %v4520_v26 = vmul.u32.u64.high %v4450_v6, %v542_v38, %v4519_v48  ;;  %v453_v5 = vshrl.u32 %v452_v9, 30  ;;  %v607_v3 = vor.u32 8388608, %v4454_v34 }
  0xe4   :  { %v613_v54 = vand.u32 31, %v611_v27  ;;  %v553_v62 = vadd.s32 1, %v4515_v14  ;;  %v6979_v16 = vand.u32 2139095040, %v4445_v17  ;;  %v550_v46 = vmul.u32 %v4450_v6, %v534_v13 }
  0xe5   :  { %v454_v61 = vshll.u32 %v453_v5, 30  ;;  %vm552_vm12 = vc.u32 %v4520_v26, %v4514_v32  ;;  %v4534_v8 = vand.u32 8388607, %v6940_v58  ;;  %v4540_v19 = vshll.u32 %v607_v3, 8 }
  0xe6   :  { %v614_v10 = vsub.s32 32, %v613_v54  ;;  %v707_v30 = vshrl.u32 %v6979_v16, 23  ;;  %v554_v34 = vsel %vm552_vm12, %v553_v62, %v4515_v14  ;;  %v6980_v39 = vand.u32 2147483647, %v4423_v4 }
  0xe7   :  { %v4537_v15 = vsub.s32 %v451_v63, %v454_v61  ;;  %v447_v6 = vadd.s32 %v4488_v59, %v4485_v33  ;;  %v555_v49 = vadd.s32 %v554_v34, %v550_v46  ;;  %v4549_v24 = vshrl.u32 %v611_v27, 5 }
  0xe8   :  { %vm4544_vm14 = vcmp.le.f32.partialorder %v6980_v39, 0.7853982  ;;  %v617_v9 = vshrl.u32 %v6975_v55, %v614_v10  ;;  %v620_v38 = vshrl.u32 %v6976_v18, %v614_v10  ;;  %v623_v14 = vshrl.u32 %v6977_v31, %v614_v10 }
  0xe9   :  { %v457_v63 = vsub.s32 0, %v4537_v15  ;;  %v3779_v48 = vadd.s32 4294967169, %v707_v30  ;;  %v477_v13 = vsub.s32 4, %v453_v5  ;;  %v556_v3 = vadd.s32 536870912, %v555_v49 }
  0xea   :  { %v616_v61 = vshll.u32 %v6974_v47, %v613_v54  ;;  %v619_v59 = vshll.u32 %v6975_v55, %v613_v54  ;;  %v622_v27 = vshll.u32 %v6976_v18, %v613_v54  ;;  %v626_v16 = vshrl.u32 %v6978_v25, %v614_v10 }
  0xeb   :  { %v3768_v33 = vmin.u32 %v457_v63, %v4537_v15  ;;  %v557_v46 = vshrl.u32 %v556_v3, 30  ;;  %v625_v39 = vshll.u32 %v6977_v31, %v613_v54  ;;  %v6983_v58 = vmov 1326507024  }
  0xec   :  { %v618_v34 = vor.u32 %v617_v9, %v616_v61  ;;  %v629_v30 = vshrl.u32 %v6983_v58, %v614_v10  ;;  %v621_v11 = vor.u32 %v620_v38, %v619_v59  ;;  %v624_v56 = vor.u32 %v623_v14, %v622_v27 }
  0xed   :  { %v459_v57 = vclz %v3768_v33  ;;  %v628_v62 = vshll.u32 %v6978_v25, %v613_v54  ;;  %v478_v63 = vsel %vm393_vm13, %v477_v13, %v453_v5  ;;  %v558_v53 = vshll.u32 %v557_v46, 30 }
  0xee   :  { %v627_v43 = vor.u32 %v626_v16, %v625_v39  ;;  %vm631_vm0 = vcmp.lt.s32.totalorder %v4549_v24, 1  ;;  %vm632_vm1 = vcmp.lt.s32.totalorder %v4549_v24, 2  ;;  %vm634_vm2 = vcmp.lt.s32.totalorder %v4549_v24, 4 }
  0xef   :  { %v3769_v3 = vadd.s32 4294967294, %v459_v57  ;;  %v630_v9 = vor.u32 %v629_v30, %v628_v62  ;;  %v4570_v61 = vsub.s32 %v555_v49, %v558_v53  ;;  %v615_v38 = vshrl.u32 %v6974_v47, %v614_v10 }
  0xf0   :  { %vm633_vm3 = vcmp.lt.s32.totalorder %v4549_v24, 3  ;;  %v640_v54 = vsel %vm634_vm2, %v627_v43, 920167782  ;;  %v480_v5 = vsel %vm4544_vm14, 0, %v478_v63  ;;  %v6984_v57 = vand.u32 2147483647, %v4425_v12 }
  0xf1   :  { %vm3770_vm4 = vcmp.lt.s32.totalorder %v3769_v3, 0  ;;  %v639_v53 = vsel %vm631_vm0, %v618_v34, %v621_v11  ;;  %v641_v10 = vsel %vm633_vm3, %v624_v56, %v640_v54  ;;  %v561_v13 = vsub.s32 0, %v4570_v61 }
  0xf2   :  { %vm4580_vm5 = vcmp.le.f32.partialorder %v6984_v57, 0.7853982  ;;  %v462_v49 = vsel %vm3770_vm4, 0, %v3769_v3  ;;  %v581_v62 = vsub.s32 4, %v557_v46  ;;  %v643_v33 = vsel %vm631_vm0, %v621_v11, %v624_v56 }
  0xf3   :  { %v463_v59 = vsub.s32 32, %v462_v49  ;;  %v467_v27 = vsub.s32 4294967266, %v462_v49  ;;  %v636_v16 = vsel %vm634_vm2, %v624_v56, 2102212464  ;;  %v644_v39 = vsel %vm634_vm2, %v630_v9, 1326507024 }
  0xf4   :  { %v464_v30 = vshll.u32 %v4537_v15, %v462_v49  ;;  %v3772_v63 = vmin.u32 %v561_v13, %v4570_v61  ;;  %v642_v3 = vsel %vm632_vm1, %v639_v53, %v641_v10  ;;  %v645_v54 = vsel %vm633_vm3, %v627_v43, %v644_v39 }
  0xf5   :  { %v465_v57 = vshrl.u32 %v447_v6, %v463_v59  ;;  %v468_v29 = vadd.s32 127, %v467_v27  ;;  %v646_v42 = vsel %vm632_vm1, %v643_v33, %v645_v54  ;;  %v713_v1 = vadd.s32 1, %v3779_v48 }
  0xf6   :  { %v563_v56 = vclz %v3772_v63  ;;  %v582_v9 = vsel %vm497_vm15, %v581_v62, %v557_v46  ;;  %v635_v15 = vsel %vm631_vm0, %v615_v38, %v618_v34  ;;  %v637_v49 = vsel %vm633_vm3, %v621_v11, %v636_v16 }
  0xf7   :  { %v466_v53 = vor.u32 %v465_v57, %v464_v30  ;;  %v469_v10 = vshll.u32 %v468_v29, 23  ;;  %v4610_v43 = vmul.u32.u64.low %v4540_v19, %v646_v42  ;;  %v4611_v6 = vmul.u32.u64.high %v4540_v19, %v646_v42, %v4610_v43 }
  0xf8   :  { %v3773_v13 = vadd.s32 4294967294, %v563_v56  ;;  %v4614_v33 = vmul.u32.u64.low %v4540_v19, %v642_v3  ;;  %v4615_v48 = vmul.u32.u64.high %v4540_v19, %v642_v3, %v4614_v33  ;;  %vm714_vm6 = vcmp.gt.s32.totalorder %v713_v1, 0 }
  0xf9   :  { %v470_v46 = vor.u32 4788187, %v469_v10  ;;  %v551_v34 = vadd.s32 %v4514_v32, %v4520_v26  ;;  %v638_v11 = vsel %vm632_vm1, %v635_v15, %v637_v49  ;;  %v715_v38 = vsel %vm714_vm6, %v713_v1, 0 }
  0xfa   :  { %v484_v29 = vadd.s32 3, %v480_v5  ;;  %vm3774_vm7 = vcmp.lt.s32.totalorder %v3773_v13, 0  ;;  %v584_v42 = vsel %vm4580_vm5, 0, %v582_v9  ;;  %v717_v62 = vand.u32 31, %v715_v38 }
  0xfb   :  { %v471_v59 = vand.u32 2147483647, %v470_v46  ;;  %v473_v27 = vcvt.s32.f32 %v466_v53  ;;  %v566_v16 = vsel %vm3774_vm7, 0, %v3773_v13  ;;  %vm656_vm8 = vc.u32 %v4611_v6, %v4614_v33 }
  0xfc   :  { %v567_v39 = vsub.s32 32, %v566_v16  ;;  %v571_v30 = vsub.s32 4294967266, %v566_v16  ;;  %v654_v32 = vmul.u32 %v4540_v19, %v638_v11  ;;  %v657_v26 = vadd.s32 1, %v4615_v48 }
  0xfd   :  { %v474_v24 = vmul.f32 %v473_v27, %v471_v59  ;;  %v568_v1 = vshll.u32 %v4570_v61, %v566_v16  ;;  %v4629_v5 = vshrl.u32 %v715_v38, 5  ;;  %v718_v63 = vsub.s32 32, %v717_v62 }
  0xfe   :  { %v569_v3 = vshrl.u32 %v551_v34, %v567_v39  ;;  %v572_v54 = vadd.s32 127, %v571_v30  ;;  %v658_v57 = vsel %vm656_vm8, %v657_v26, %v4615_v48  ;;  %v720_v56 = vshll.u32 %v6974_v47, %v717_v62 }
  0xff   :  { %v475_v9 = vxor.u32 2147483648, %v474_v24  ;;  %v659_v15 = vadd.s32 %v658_v57, %v654_v32  ;;  %v721_v49 = vshrl.u32 %v6975_v55, %v718_v63  ;;  %v723_v19 = vshll.u32 %v6975_v55, %v717_v62 }
 0x100   :  { %v570_v53 = vor.u32 %v569_v3, %v568_v1  ;;  %v573_v10 = vshll.u32 %v572_v54, 23  ;;  %v724_v43 = vshrl.u32 %v6976_v18, %v718_v63  ;;  %v727_v61 = vshrl.u32 %v6977_v31, %v718_v63 }
 0x101   :  { %v476_v13 = vsel %vm393_vm13, %v475_v9, %v474_v24  ;;  %v660_v46 = vadd.s32 536870912, %v659_v15  ;;  %v722_v34 = vor.u32 %v721_v49, %v720_v56  ;;  %v726_v48 = vshll.u32 %v6976_v18, %v717_v62 }
 0x102   :  { %v479_v11 = vsel %vm4544_vm14, %v4423_v4, %v476_v13  ;;  %v574_v38 = vor.u32 4788187, %v573_v10  ;;  %v577_v59 = vcvt.s32.f32 %v570_v53  ;;  %v729_v27 = vshll.u32 %v6977_v31, %v717_v62 }
 0x103   :  { %4041 = vcosq.f32 %v479_v11  ;;  %v661_v16 = vshrl.u32 %v660_v46, 30  ;;  %v725_v39 = vor.u32 %v724_v43, %v723_v19  ;;  %v730_v30 = vshrl.u32 %v6978_v25, %v718_v63 }
 0x104   :  { %4043 = vsinq.f32 %v479_v11  ;;  %v575_v32 = vand.u32 2147483647, %v574_v38  ;;  %v728_v26 = vor.u32 %v727_v61, %v726_v48  ;;  %v733_v24 = vshrl.u32 %v6983_v58, %v718_v63 }
 0x105   :  { %v4646_v1 = vand.u32 3, %v484_v29  ;;  %v588_v3 = vadd.s32 3, %v584_v42  ;;  %v662_v54 = vshll.u32 %v661_v16, 30  ;;  %v731_v22 = vor.u32 %v730_v30, %v729_v27  ;;  %v305_v27 = vpop.permute.xlu1 %304 }
 0x106   :  { %v578_v57 = vmul.f32 %v577_v59, %v575_v32  ;;  %vm601_vm9 = vcmp.lt.s32.totalorder %v4427_v7, 0  ;;  %v719_v56 = vshrl.u32 %v6974_v47, %v718_v63  ;;  %v732_v9 = vshll.u32 %v6978_v25, %v717_v62 }
 0x107   :  { %v6987_v49 = vor.u32 8388608, %v4534_v8  ;;  %v4655_v53 = vsub.s32 %v659_v15, %v662_v54  ;;  %v685_v10 = vsub.s32 4, %v661_v16  ;;  %vm735_vm10 = vcmp.lt.s32.totalorder %v4629_v5, 1 }
 0x108   :  { %vm738_vm11 = vcmp.lt.s32.totalorder %v4629_v5, 4  ;;  %v579_v29 = vxor.u32 2147483648, %v578_v57  ;;  %v734_v42 = vor.u32 %v733_v24, %v732_v9  ;;  %v743_v63 = vsel %vm735_vm10, %v722_v34, %v725_v39 }
 0x109   :  { %v4653_v19 = vshll.u32 %v6987_v49, 8  ;;  %v740_v43 = vsel %vm738_vm11, %v728_v26, 2102212464  ;;  %v665_v62 = vsub.s32 0, %v4655_v53  ;;  %vm736_vm12 = vcmp.lt.s32.totalorder %v4629_v5, 2 }
 0x10a   :  { %vm737_vm13 = vcmp.lt.s32.totalorder %v4629_v5, 3  ;;  %v744_v8 = vsel %vm738_vm11, %v731_v22, 920167782  ;;  %v580_v15 = vsel %vm497_vm15, %v579_v29, %v578_v57  ;;  %v739_v61 = vsel %vm735_vm10, %v719_v56, %v722_v34 }
 0x10b   :  { %v741_v13 = vsel %vm737_vm13, %v725_v39, %v740_v43  ;;  %v745_v46 = vsel %vm737_vm13, %v728_v26, %v744_v8  ;;  %v583_v48 = vsel %vm4580_vm5, %v4425_v12, %v580_v15  ;;  %v3776_v11 = vmin.u32 %v665_v62, %v4655_v53 }
 0x10c   :  { %v746_v38 = vsel %vm736_vm12, %v743_v63, %v745_v46  ;;  %v747_v59 = vsel %vm735_vm10, %v725_v39, %v728_v26  ;;  %4045 = vcosq.f32 %v583_v48  ;;  %v748_v34 = vsel %vm738_vm11, %v734_v42, 1326507024 }
 0x10d   :  { %v4687_v30 = vmul.u32.u64.low %v4653_v19, %v746_v38  ;;  %v4688_v32 = vmul.u32.u64.high %v4653_v19, %v746_v38, %v4687_v30  ;;  %vm483_vm14 = vweird.f32 %v4423_v4  ;;  %vm486_vm15 = vcmp.lt.s32.totalorder %v4646_v1, 2 }
 0x10e   :  { %4047 = vsinq.f32 %v583_v48  ;;  %v6988_v14 = vand.u32 2147483647, %v4427_v7  ;;  %v667_v39 = vclz %v3776_v11  ;;  %vm487_vm1 = vcmp.eq.s32.totalorder %v4646_v1, 0 }
 0x10f   :  { %vm490_vm2 = vcmp.eq.s32.totalorder %v4646_v1, 2  ;;  %v749_v26 = vsel %vm737_vm13, %v731_v22, %v748_v34  ;;  %v4704_v54 = vadd.f32 %v305_v27, %v4365_v20  ;;  %v686_v56 = vsel %vm601_vm9, %v685_v10, %v661_v16 }
 0x110   :  { %vm4695_vm0 = vcmp.le.f32.partialorder %v6988_v14, 0.7853982  ;;  %v3777_v57 = vadd.s32 4294967294, %v667_v39  ;;  %v742_v9 = vsel %vm736_vm12, %v739_v61, %v741_v13  ;;  %v750_v49 = vsel %vm736_vm12, %v747_v59, %v749_v26  ;;  %v4042_v29 = vpop.eup %4041 }
 0x111   :  { %v589_v42 = vand.u32 3, %v588_v3  ;;  %v655_v43 = vadd.s32 %v4614_v33, %v4611_v6  ;;  %v4715_v22 = vmul.u32.u64.low %v4653_v19, %v750_v49  ;;  %v4716_v63 = vmul.u32.u64.high %v4653_v19, %v750_v49, %v4715_v22  ;;  %v4044_v20 = vpop.eup %4043 }
 0x112   :  { %v491_v62 = vxor.u32 2147483648, %v4042_v29  ;;  %vm3778_vm3 = vcmp.lt.s32.totalorder %v3777_v57, 0  ;;  %v761_v16 = vadd.s32 1, %v4688_v32  ;;  %v810_v10 = vand.u32 2139095040, %v4704_v54 }
 0x113   :  { %v488_v8 = vxor.u32 2147483648, %v4044_v20  ;;  %v670_v15 = vsel %vm3778_vm3, 0, %v3777_v57  ;;  %v688_v5 = vsel %vm4695_vm0, 0, %v686_v56  ;;  %v758_v3 = vmul.u32 %v4653_v19, %v742_v9 }
 0x114   :  { %v492_v6 = vsel %vm490_vm2, %v491_v62, %v4044_v20  ;;  %v671_v33 = vsub.s32 32, %v670_v15  ;;  %v675_v61 = vsub.s32 4294967266, %v670_v15  ;;  %v807_v13 = vand.u32 2147483647, %v4704_v54 }
 0x115   :  { %v489_v46 = vsel %vm487_vm1, %v4042_v29, %v488_v8  ;;  %v672_v48 = vshll.u32 %v4655_v53, %v670_v15  ;;  %vm760_vm4 = vc.u32 %v4716_v63, %v4687_v30  ;;  %v811_v11 = vshrl.u32 %v810_v10, 23 }
 0x116   :  { %v493_v38 = vsel %vm486_vm15, %v489_v46, %v492_v6  ;;  %v673_v19 = vshrl.u32 %v655_v43, %v671_v33  ;;  %v676_v59 = vadd.s32 127, %v675_v61  ;;  %v762_v34 = vsel %vm760_vm4, %v761_v16, %v4688_v32 }
 0x117   :  { %v494_v14 = vsel %vm483_vm14, nan, %v493_v38  ;;  %v763_v39 = vadd.s32 %v762_v34, %v758_v3  ;;  %v4737_v26 = vadd.f32 %v305_v27, %v4367_v23  ;;  %v3783_v57 = vadd.s32 4294967169, %v811_v11 }
 0x118   :  { %3719 = vst [vmem:[#allocation2] sm:$0xff] %v494_v14  ;;  %v674_v53 = vor.u32 %v673_v19, %v672_v48  ;;  %v677_v56 = vshll.u32 %v676_v59, 23  ;;  %v814_v1 = vand.u32 8388607, %v807_v13  ;;  %vm587_vm5 = vweird.f32 %v4425_v12 }
 0x119   :  { %v764_v9 = vadd.s32 536870912, %v763_v39  ;;  %v817_v49 = vadd.s32 1, %v3783_v57  ;;  %v4046_v29 = vpop.eup %4045  ;;  %vm594_vm6 = vcmp.eq.s32.totalorder %v589_v42, 2  ;;  %v692_v4 = vadd.s32 3, %v688_v5 }
 0x11a   :  { %v678_v32 = vor.u32 4788187, %v677_v56  ;;  %v595_v22 = vxor.u32 2147483648, %v4046_v29  ;;  %v914_v23 = vand.u32 2139095040, %v4737_v26  ;;  %v681_v16 = vcvt.s32.f32 %v674_v53 }
 0x11b   :  { %v4048_v43 = vpop.eup %4047  ;;  %v765_v20 = vshrl.u32 %v764_v9, 30  ;;  %vm818_vm7 = vcmp.gt.s32.totalorder %v817_v49, 0  ;;  %vm705_vm8 = vcmp.lt.s32.totalorder %v4445_v17, 0  ;;  %vm591_vm10 = vcmp.eq.s32.totalorder %v589_v42, 0 }
 0x11c   :  { %v592_v27 = vxor.u32 2147483648, %v4048_v43  ;;  %v679_v62 = vand.u32 2147483647, %v678_v32  ;;  %v819_v10 = vsel %vm818_vm7, %v817_v49, 0  ;;  %v596_v8 = vsel %vm594_vm6, %v595_v22, %v4048_v43 }
 0x11d   :  { %v766_v15 = vshll.u32 %v765_v20, 30  ;;  %v815_v3 = vor.u32 8388608, %v814_v1  ;;  %vm590_vm11 = vcmp.lt.s32.totalorder %v589_v42, 2  ;;  %v821_v5 = vand.u32 31, %v819_v10 }
 0x11e   :  { %v593_v6 = vsel %vm591_vm10, %v4046_v29, %v592_v27  ;;  %v682_v33 = vmul.f32 %v681_v16, %v679_v62  ;;  %v4744_v46 = vand.u32 3, %v692_v4  ;;  %v915_v11 = vshrl.u32 %v914_v23, 23 }
 0x11f   :  { %v597_v61 = vsel %vm590_vm11, %v593_v6, %v596_v8  ;;  %v4746_v48 = vsub.s32 %v763_v39, %v766_v15  ;;  %v759_v59 = vadd.s32 %v4687_v30, %v4716_v63  ;;  %v822_v34 = vsub.s32 32, %v821_v5 }
 0x120   :  { %v598_v38 = vsel %vm587_vm5, nan, %v597_v61  ;;  %v683_v19 = vxor.u32 2147483648, %v682_v33  ;;  %v789_v14 = vsub.s32 4, %v765_v20  ;;  %v4753_v57 = vshll.u32 %v815_v3, 8 }
 0x121   :  { %3720 = vst [vmem:[#allocation2 + $0x8] sm:$0xff] %v598_v38  ;;  %v769_v42 = vsub.s32 0, %v4746_v48  ;;  %v911_v53 = vand.u32 2147483647, %v4737_v26  ;;  %v820_v56 = vshrl.u32 %v819_v10, 5  ;;  %v825_v12 = vshrl.u32 %v6975_v55, %v822_v34 }
 0x122   :  { %v684_v39 = vsel %vm601_vm9, %v683_v19, %v682_v33  ;;  %v828_v9 = vshrl.u32 %v6976_v18, %v822_v34  ;;  %v824_v1 = vshll.u32 %v6974_v47, %v821_v5  ;;  %v3787_v49 = vadd.s32 4294967169, %v915_v11 }
 0x123   :  { %v687_v30 = vsel %vm4695_vm0, %v4427_v7, %v684_v39  ;;  %v3780_v63 = vmin.u32 %v769_v42, %v4746_v48  ;;  %v827_v29 = vshll.u32 %v6975_v55, %v821_v5  ;;  %v830_v32 = vshll.u32 %v6976_v18, %v821_v5 }
 0x124   :  { %4049 = vcosq.f32 %v687_v30  ;;  %v831_v4 = vshrl.u32 %v6977_v31, %v822_v34  ;;  %v4770_v22 = vsel %vm705_vm8, %v789_v14, %v765_v20  ;;  %v826_v24 = vor.u32 %v825_v12, %v824_v1 }
 0x125   :  { %4051 = vsinq.f32 %v687_v30  ;;  %v771_v43 = vclz %v3780_v63  ;;  %v829_v23 = vor.u32 %v828_v9, %v827_v29  ;;  %v833_v62 = vshll.u32 %v6977_v31, %v821_v5 }
 0x126   :  { %v832_v27 = vor.u32 %v831_v4, %v830_v32  ;;  %v834_v16 = vshrl.u32 %v6978_v25, %v822_v34  ;;  %v823_v8 = vshrl.u32 %v6974_v47, %v822_v34  ;;  %v836_v15 = vshll.u32 %v6978_v25, %v821_v5 }
 0x127   :  { %v3781_v10 = vadd.s32 4294967294, %v771_v43  ;;  %v837_v3 = vshrl.u32 %v6983_v58, %v822_v34  ;;  %v6991_v6 = vand.u32 2147483647, %v4445_v17  ;;  %vm839_vm12 = vcmp.lt.s32.totalorder %v820_v56, 1 }
 0x128   :  { %v835_v20 = vor.u32 %v834_v16, %v833_v62  ;;  %vm841_vm13 = vcmp.lt.s32.totalorder %v820_v56, 3  ;;  %vm842_vm14 = vcmp.lt.s32.totalorder %v820_v56, 4  ;;  %v843_v11 = vsel %vm839_vm12, %v823_v8, %v826_v24 }
 0x129   :  { %vm4779_vm9 = vcmp.le.f32.partialorder %v6991_v6, 0.7853982  ;;  %vm3782_vm15 = vcmp.lt.s32.totalorder %v3781_v10, 0  ;;  %v838_v61 = vor.u32 %v837_v3, %v836_v15  ;;  %v844_v38 = vsel %vm842_vm14, %v832_v27, 2102212464 }
 0x12a   :  { %v774_v19 = vsel %vm3782_vm15, 0, %v3781_v10  ;;  %v845_v5 = vsel %vm841_vm13, %v829_v23, %v844_v38  ;;  %v847_v42 = vsel %vm839_vm12, %v826_v24, %v829_v23  ;;  %v848_v34 = vsel %vm842_vm14, %v835_v20, 920167782 }
 0x12b   :  { %v775_v14 = vsub.s32 32, %v774_v19  ;;  %v779_v39 = vsub.s32 4294967266, %v774_v19  ;;  %vm840_vm0 = vcmp.lt.s32.totalorder %v820_v56, 2  ;;  %v851_v12 = vsel %vm839_vm12, %v829_v23, %v832_v27 }
 0x12c   :  { %v776_v9 = vshll.u32 %v4746_v48, %v774_v19  ;;  %v846_v30 = vsel %vm840_vm0, %v843_v11, %v845_v5  ;;  %v849_v63 = vsel %vm841_vm13, %v832_v27, %v848_v34  ;;  %v852_v1 = vsel %vm842_vm14, %v838_v61, 1326507024 }
 0x12d   :  { %v777_v29 = vshrl.u32 %v759_v59, %v775_v14  ;;  %v780_v32 = vadd.s32 127, %v779_v39  ;;  %v850_v4 = vsel %vm840_vm0, %v847_v42, %v849_v63  ;;  %v853_v43 = vsel %vm841_vm13, %v835_v20, %v852_v1 }
 0x12e   :  { %vm691_vm1 = vweird.f32 %v4427_v7  ;;  %v854_v24 = vsel %vm840_vm0, %v851_v12, %v853_v43  ;;  %v4792_v62 = vmul.u32.u64.low %v4753_v57, %v850_v4  ;;  %v4793_v16 = vmul.u32.u64.high %v4753_v57, %v850_v4, %v4792_v62 }
 0x12f   :  { %v921_v23 = vadd.s32 1, %v3787_v49  ;;  %v778_v48 = vor.u32 %v777_v29, %v776_v9  ;;  %v781_v10 = vshll.u32 %v780_v32, 23  ;;  %vm694_vm2 = vcmp.lt.s32.totalorder %v4744_v46, 2 }
 0x130   :  { %v4797_v27 = vmul.u32.u64.low %v4753_v57, %v854_v24  ;;  %v4798_v8 = vmul.u32.u64.high %v4753_v57, %v854_v24, %v4797_v27  ;;  %vm695_vm3 = vcmp.eq.s32.totalorder %v4744_v46, 0  ;;  %vm698_vm4 = vcmp.eq.s32.totalorder %v4744_v46, 2 }
 0x131   :  { %vm922_vm5 = vcmp.gt.s32.totalorder %v921_v23, 0  ;;  %v4050_v59 = vpop.eup %4049  ;;  %v782_v56 = vor.u32 4788187, %v781_v10  ;;  %v792_v15 = vsel %vm4779_vm9, 0, %v4770_v22  ;;  %v4808_v49 = vand.u32 8388607, %v911_v53  ;;  %v313_v27 = vpop.permute.xlu0 %312 }
 0x132   :  { %v923_v3 = vsel %vm922_vm5, %v921_v23, 0  ;;  %v4052_v6 = vpop.eup %4051  ;;  %v699_v20 = vxor.u32 2147483648, %v4050_v59  ;;  %v862_v61 = vmul.u32 %v4753_v57, %v846_v30  ;;  %v865_v11 = vadd.s32 1, %v4793_v16 }
 0x133   :  { %v925_v38 = vand.u32 31, %v923_v3  ;;  %v696_v19 = vxor.u32 2147483648, %v4052_v6  ;;  %v783_v5 = vand.u32 2147483647, %v782_v56  ;;  %v785_v42 = vcvt.s32.f32 %v778_v48 }
 0x134   :  { %vm864_vm6 = vc.u32 %v4798_v8, %v4792_v62  ;;  %v700_v22 = vsel %vm698_vm4, %v699_v20, %v4052_v6  ;;  %v796_v34 = vadd.s32 3, %v792_v15  ;;  %vm4869_vm13 = vcmp.le.f32.partialorder %v807_v13, 0.7853982 }
 0x135   :  { %v866_v14 = vsel %vm864_vm6, %v865_v11, %v4793_v16  ;;  %v926_v39 = vsub.s32 32, %v925_v38  ;;  %v697_v12 = vsel %vm695_vm3, %v4050_v59, %v696_v19  ;;  %v786_v57 = vmul.f32 %v785_v42, %v783_v5 }
 0x136   :  { %v867_v9 = vadd.s32 %v866_v14, %v862_v61  ;;  %v928_v30 = vshll.u32 %v6974_v47, %v925_v38  ;;  %v701_v63 = vsel %vm694_vm2, %v697_v12, %v700_v22  ;;  %v931_v29 = vshll.u32 %v6975_v55, %v925_v38 }
 0x137   :  { %v929_v1 = vshrl.u32 %v6975_v55, %v926_v39  ;;  %v932_v32 = vshrl.u32 %v6976_v18, %v926_v39  ;;  %v702_v4 = vsel %vm691_vm1, nan, %v701_v63  ;;  %v787_v43 = vxor.u32 2147483648, %v786_v57 }
 0x138   :  { %v868_v24 = vadd.s32 536870912, %v867_v9  ;;  %v924_v16 = vshrl.u32 %v923_v3, 5  ;;  %3721 = vst [vmem:[#allocation2 + $0x10] sm:$0xff] %v702_v4  ;;  %v934_v10 = vshll.u32 %v6976_v18, %v925_v38  ;;  %v935_v46 = vshrl.u32 %v6977_v31, %v926_v39 }
 0x139   :  { %v930_v23 = vor.u32 %v929_v1, %v928_v30  ;;  %v933_v48 = vor.u32 %v932_v32, %v931_v29  ;;  %v788_v59 = vsel %vm705_vm8, %v787_v43, %v786_v57  ;;  %v937_v15 = vshll.u32 %v6977_v31, %v925_v38 }
 0x13a   :  { %v869_v56 = vshrl.u32 %v868_v24, 30  ;;  %v938_v7 = vshrl.u32 %v6978_v25, %v926_v39  ;;  %v791_v3 = vsel %vm4779_vm9, %v4445_v17, %v788_v59  ;;  %v936_v6 = vor.u32 %v935_v46, %v934_v10 }
 0x13b   :  { %v940_v20 = vshll.u32 %v6978_v25, %v925_v38  ;;  %v941_v61 = vshrl.u32 %v6983_v58, %v926_v39  ;;  %4053 = vcosq.f32 %v791_v3  ;;  %v4839_v5 = vadd.f32 %v313_v27, %v4373_v21 }
 0x13c   :  { %v870_v11 = vshll.u32 %v869_v56, 30  ;;  %v939_v19 = vor.u32 %v938_v7, %v937_v15  ;;  %4055 = vsinq.f32 %v791_v3  ;;  %v4841_v42 = vand.u32 3, %v796_v34 }
 0x13d   :  { %v919_v22 = vor.u32 8388608, %v4808_v49  ;;  %v942_v14 = vor.u32 %v941_v61, %v940_v20  ;;  %v927_v33 = vshrl.u32 %v6974_v47, %v926_v39  ;;  %vm943_vm7 = vcmp.lt.s32.totalorder %v924_v16, 1 }
 0x13e   :  { %v4844_v12 = vsub.s32 %v867_v9, %v870_v11  ;;  %vm946_vm8 = vcmp.lt.s32.totalorder %v924_v16, 4  ;;  %vm945_vm10 = vcmp.lt.s32.totalorder %v924_v16, 3  ;;  %v951_v57 = vsel %vm943_vm7, %v930_v23, %v933_v48 }
 0x13f   :  { %v948_v38 = vsel %vm946_vm8, %v936_v6, 2102212464  ;;  %v952_v30 = vsel %vm946_vm8, %v939_v19, 920167782  ;;  %v893_v21 = vsub.s32 4, %v869_v56  ;;  %vm944_vm11 = vcmp.lt.s32.totalorder %v924_v16, 2 }
 0x140   :  { %v873_v63 = vsub.s32 0, %v4844_v12  ;;  %v953_v1 = vsel %vm945_vm10, %v936_v6, %v952_v30  ;;  %v955_v29 = vsel %vm943_vm7, %v933_v48, %v936_v6  ;;  %v956_v49 = vsel %vm946_vm8, %v942_v14, 1326507024 }
 0x141   :  { %v954_v34 = vsel %vm944_vm11, %v951_v57, %v953_v1  ;;  %v959_v32 = vshll.u32 %v919_v22, 8  ;;  %v947_v4 = vsel %vm943_vm7, %v927_v33, %v930_v23  ;;  %v949_v39 = vsel %vm945_vm10, %v933_v48, %v948_v38 }
 0x142   :  { %v3784_v9 = vmin.u32 %v873_v63, %v4844_v12  ;;  %v957_v43 = vsel %vm945_vm10, %v939_v19, %v956_v49  ;;  %vm809_vm9 = vcmp.lt.s32.totalorder %v4704_v54, 0  ;;  %v4858_v7 = vadd.f32 %v313_v27, %v4375_v41 }
 0x143   :  { %v958_v24 = vsel %vm944_vm11, %v955_v29, %v957_v43  ;;  %v4852_v10 = vmul.u32.u64.low %v959_v32, %v954_v34  ;;  %v4853_v46 = vmul.u32.u64.high %v959_v32, %v954_v34, %v4852_v10  ;;  %v894_v15 = vsel %vm809_vm9, %v893_v21, %v869_v56 }
 0x144   :  { %v875_v59 = vclz %v3784_v9  ;;  %v1223_v3 = vand.u32 2147483647, %v4839_v5  ;;  %v950_v23 = vsel %vm944_vm11, %v947_v4, %v949_v39  ;;  %v1226_v20 = vand.u32 2139095040, %v4839_v5 }
 0x145   :  { %v4862_v48 = vmul.u32.u64.low %v959_v32, %v958_v24  ;;  %v4863_v6 = vmul.u32.u64.high %v959_v32, %v958_v24, %v4862_v48  ;;  %vm799_vm12 = vcmp.eq.s32.totalorder %v4841_v42, 0  ;;  %vm802_vm14 = vcmp.eq.s32.totalorder %v4841_v42, 2 }
 0x146   :  { %v3785_v56 = vadd.s32 4294967294, %v875_v59  ;;  %v863_v41 = vadd.s32 %v4792_v62, %v4798_v8  ;;  %v969_v16 = vadd.s32 1, %v4853_v46  ;;  %v1227_v27 = vshrl.u32 %v1226_v20, 23 }
 0x147   :  { %v896_v11 = vsel %vm4869_vm13, 0, %v894_v15  ;;  %v966_v19 = vmul.u32 %v959_v32, %v950_v23  ;;  %v1230_v13 = vand.u32 8388607, %v1223_v3  ;;  %vm968_vm0 = vc.u32 %v4863_v6, %v4852_v10 }
 0x148   :  { %vm3786_vm15 = vcmp.lt.s32.totalorder %v3785_v56, 0  ;;  %v4054_v22 = vpop.eup %4053  ;;  %v3799_v33 = vadd.s32 4294967169, %v1227_v27  ;;  %v1327_v38 = vand.u32 2147483647, %v4858_v7  ;;  %v1330_v63 = vand.u32 2139095040, %v4858_v7 }
 0x149   :  { %v878_v14 = vsel %vm3786_vm15, 0, %v3785_v56  ;;  %v4056_v57 = vpop.eup %4055  ;;  %v803_v62 = vxor.u32 2147483648, %v4054_v22  ;;  %v970_v34 = vsel %vm968_vm0, %v969_v16, %v4853_v46  ;;  %vm795_vm1 = vweird.f32 %v4445_v17 }
 0x14a   :  { %v879_v8 = vsub.s32 32, %v878_v14  ;;  %v883_v30 = vsub.s32 4294967266, %v878_v14  ;;  %v800_v21 = vxor.u32 2147483648, %v4056_v57  ;;  %v880_v1 = vshll.u32 %v4844_v12, %v878_v14 }
 0x14b   :  { %v1233_v29 = vadd.s32 1, %v3799_v33  ;;  %v804_v49 = vsel %vm802_vm14, %v803_v62, %v4056_v57  ;;  %v971_v4 = vadd.s32 %v970_v34, %v966_v19  ;;  %vm798_vm2 = vcmp.lt.s32.totalorder %v4841_v42, 2 }
 0x14c   :  { %v881_v32 = vshrl.u32 %v863_v41, %v879_v8  ;;  %v884_v9 = vadd.s32 127, %v883_v30  ;;  %v801_v39 = vsel %vm799_vm12, %v4054_v22, %v800_v21  ;;  %v900_v15 = vadd.s32 3, %v896_v11 }
 0x14d   :  { %vm1234_vm3 = vcmp.gt.s32.totalorder %v1233_v29, 0  ;;  %v805_v43 = vsel %vm798_vm2, %v801_v39, %v804_v49  ;;  %v972_v59 = vadd.s32 536870912, %v971_v4  ;;  %v1231_v23 = vor.u32 8388608, %v1230_v13 }
 0x14e   :  { %v882_v24 = vor.u32 %v881_v32, %v880_v1  ;;  %v885_v12 = vshll.u32 %v884_v9, 23  ;;  %v806_v46 = vsel %vm795_vm1, nan, %v805_v43  ;;  %v1235_v48 = vsel %vm1234_vm3, %v1233_v29, 0 }
 0x14f   :  { %3722 = vst [vmem:[#allocation2 + $0x18] sm:$0xff] %v806_v46  ;;  %v973_v56 = vshrl.u32 %v972_v59, 30  ;;  %v1331_v41 = vshrl.u32 %v1330_v63, 23  ;;  %v4894_v17 = vand.u32 8388607, %v1327_v38  ;;  %v1237_v16 = vand.u32 31, %v1235_v48 }
 0x150   :  { %v886_v20 = vor.u32 4788187, %v885_v12  ;;  %v889_v27 = vcvt.s32.f32 %v882_v24  ;;  %v4896_v22 = vand.u32 3, %v900_v15  ;;  %v967_v14 = vadd.s32 %v4852_v10, %v4863_v6 }
 0x151   :  { %v974_v19 = vshll.u32 %v973_v56, 30  ;;  %v1238_v33 = vsub.s32 32, %v1237_v16  ;;  %v4899_v11 = vshll.u32 %v1231_v23, 8  ;;  %v3803_v62 = vadd.s32 4294967169, %v1331_v41 }
 0x152   :  { %v887_v42 = vand.u32 2147483647, %v886_v20  ;;  %v1335_v8 = vor.u32 8388608, %v4894_v17  ;;  %v1236_v30 = vshrl.u32 %v1235_v48, 5  ;;  %v1240_v63 = vshll.u32 %v6974_v47, %v1237_v16 }
 0x153   :  { %v4901_v57 = vsub.s32 %v971_v4, %v974_v19  ;;  %v1241_v21 = vshrl.u32 %v6975_v55, %v1238_v33  ;;  %v1244_v1 = vshrl.u32 %v6976_v18, %v1238_v33  ;;  %vm913_vm4 = vcmp.lt.s32.totalorder %v4737_v26, 0 }
 0x154   :  { %v890_v13 = vmul.f32 %v889_v27, %v887_v42  ;;  %v1243_v6 = vshll.u32 %v6975_v55, %v1237_v16  ;;  %v1247_v29 = vshrl.u32 %v6977_v31, %v1238_v33  ;;  %v1246_v32 = vshll.u32 %v6976_v18, %v1237_v16 }
 0x155   :  { %v977_v10 = vsub.s32 0, %v4901_v57  ;;  %v1242_v49 = vor.u32 %v1241_v21, %v1240_v63  ;;  %v1249_v9 = vshll.u32 %v6977_v31, %v1237_v16  ;;  %v1250_v4 = vshrl.u32 %v6978_v25, %v1238_v33 }
 0x156   :  { %v891_v34 = vxor.u32 2147483648, %v890_v13  ;;  %v1245_v24 = vor.u32 %v1244_v1, %v1243_v6  ;;  %v1252_v12 = vshll.u32 %v6978_v25, %v1237_v16  ;;  %v1248_v46 = vor.u32 %v1247_v29, %v1246_v32 }
 0x157   :  { %v3788_v43 = vmin.u32 %v977_v10, %v4901_v57  ;;  %v1251_v15 = vor.u32 %v1250_v4, %v1249_v9  ;;  %v1253_v23 = vshrl.u32 %v6983_v58, %v1238_v33  ;;  %vm4924_vm5 = vcmp.le.f32.partialorder %v911_v53, 0.7853982 }
 0x158   :  { %v892_v39 = vsel %vm809_vm9, %v891_v34, %v890_v13  ;;  %v997_v41 = vsub.s32 4, %v973_v56  ;;  %v1337_v42 = vadd.s32 1, %v3803_v62  ;;  %v1239_v16 = vshrl.u32 %v6974_v47, %v1238_v33 }
 0x159   :  { %v895_v59 = vsel %vm4869_vm13, %v4704_v54, %v892_v39  ;;  %v979_v20 = vclz %v3788_v43  ;;  %v1254_v27 = vor.u32 %v1253_v23, %v1252_v12  ;;  %vm1255_vm6 = vcmp.lt.s32.totalorder %v1236_v30, 1  ;;  %v4949_v23 = vpop.permute.xlu1 %308 }
 0x15a   :  { %4057 = vcosq.f32 %v895_v59  ;;  %vm1257_vm7 = vcmp.lt.s32.totalorder %v1236_v30, 3  ;;  %vm1258_vm8 = vcmp.lt.s32.totalorder %v1236_v30, 4  ;;  %v1263_v19 = vsel %vm1255_vm6, %v1242_v49, %v1245_v24 }
 0x15b   :  { %4059 = vsinq.f32 %v895_v59  ;;  %v3789_v61 = vadd.s32 4294967294, %v979_v20  ;;  %v1260_v13 = vsel %vm1258_vm8, %v1248_v46, 2102212464  ;;  %v1264_v63 = vsel %vm1258_vm8, %v1251_v15, 920167782 }
 0x15c   :  { %v1267_v53 = vsel %vm1255_vm6, %v1245_v24, %v1248_v46  ;;  %v1268_v21 = vsel %vm1258_vm8, %v1254_v27, 1326507024  ;;  %vm1256_vm11 = vcmp.lt.s32.totalorder %v1236_v30, 2  ;;  %v1265_v1 = vsel %vm1257_vm7, %v1248_v46, %v1264_v63 }
 0x15d   :  { %vm3790_vm10 = vcmp.lt.s32.totalorder %v3789_v61, 0  ;;  %v1269_v62 = vsel %vm1257_vm7, %v1251_v15, %v1268_v21  ;;  %v998_v33 = vsel %vm913_vm4, %v997_v41, %v973_v56  ;;  %v1266_v10 = vsel %vm1256_vm11, %v1263_v19, %v1265_v1 }
 0x15e   :  { %v982_v34 = vsel %vm3790_vm10, 0, %v3789_v61  ;;  %v1270_v6 = vsel %vm1256_vm11, %v1267_v53, %v1269_v62  ;;  %v1259_v9 = vsel %vm1255_vm6, %v1239_v16, %v1242_v49  ;;  %v1261_v4 = vsel %vm1257_vm7, %v1245_v24, %v1260_v13 }
 0x15f   :  { %v983_v29 = vsub.s32 32, %v982_v34  ;;  %v987_v32 = vsub.s32 4294967266, %v982_v34  ;;  %v4940_v39 = vmul.u32.u64.low %v4899_v11, %v1270_v6  ;;  %v4941_v43 = vmul.u32.u64.high %v4899_v11, %v1270_v6, %v4940_v39 }
 0x160   :  { %v4944_v12 = vmul.u32.u64.low %v4899_v11, %v1266_v10  ;;  %v4945_v59 = vmul.u32.u64.high %v4899_v11, %v1266_v10, %v4944_v12  ;;  %v984_v56 = vshll.u32 %v4901_v57, %v982_v34  ;;  %vm1338_vm9 = vcmp.gt.s32.totalorder %v1337_v42, 0 }
 0x161   :  { %v985_v46 = vshrl.u32 %v967_v14, %v983_v29  ;;  %v988_v15 = vadd.s32 127, %v987_v32  ;;  %vm902_vm12 = vcmp.lt.s32.totalorder %v4896_v22, 2  ;;  %vm903_vm13 = vcmp.eq.s32.totalorder %v4896_v22, 0 }
 0x162   :  { %v1000_v49 = vsel %vm4924_vm5, 0, %v998_v33  ;;  %v1262_v24 = vsel %vm1256_vm11, %v1259_v9, %v1261_v4  ;;  %v1339_v20 = vsel %vm1338_vm9, %v1337_v42, 0  ;;  %vm899_vm14 = vweird.f32 %v4704_v54 }
 0x163   :  { %vm906_vm15 = vcmp.eq.s32.totalorder %v4896_v22, 2  ;;  %v986_v57 = vor.u32 %v985_v46, %v984_v56  ;;  %v989_v14 = vshll.u32 %v988_v15, 23  ;;  %v1341_v41 = vand.u32 31, %v1339_v20 }
 0x164   :  { %vm1280_vm0 = vc.u32 %v4941_v43, %v4944_v12  ;;  %v1281_v16 = vadd.s32 1, %v4945_v59  ;;  %v4963_v27 = vshll.u32 %v1335_v8, 8  ;;  %v4967_v30 = vadd.f32 %v4949_v23, %v4430_v2 }
 0x165   :  { %v990_v42 = vor.u32 4788187, %v989_v14  ;;  %v1004_v61 = vadd.s32 3, %v1000_v49  ;;  %v1278_v19 = vmul.u32 %v4899_v11, %v1262_v24  ;;  %v1342_v13 = vsub.s32 32, %v1341_v41 }
 0x166   :  { %v993_v53 = vcvt.s32.f32 %v986_v57  ;;  %v1282_v21 = vsel %vm1280_vm0, %v1281_v16, %v4945_v59  ;;  %v4971_v1 = vshrl.u32 %v1339_v20, 5  ;;  %v1344_v62 = vshll.u32 %v6974_v47, %v1341_v41 }
 0x167   :  { %v4058_v63 = vpop.eup %4057  ;;  %v991_v34 = vand.u32 2147483647, %v990_v42  ;;  %v1283_v33 = vadd.s32 %v1282_v21, %v1278_v19  ;;  %v1347_v2 = vshll.u32 %v6975_v55, %v1341_v41  ;;  %v1345_v6 = vshrl.u32 %v6975_v55, %v1342_v13 }
 0x168   :  { %v4060_v17 = vpop.eup %4059  ;;  %v907_v8 = vxor.u32 2147483648, %v4058_v63  ;;  %v1348_v11 = vshrl.u32 %v6976_v18, %v1342_v13  ;;  %v1351_v29 = vshrl.u32 %v6977_v31, %v1342_v13  ;;  %v1354_v39 = vshrl.u32 %v6978_v25, %v1342_v13 }
 0x169   :  { %v904_v10 = vxor.u32 2147483648, %v4060_v17  ;;  %v994_v9 = vmul.f32 %v993_v53, %v991_v34  ;;  %v1284_v4 = vadd.s32 536870912, %v1283_v33  ;;  %v1346_v56 = vor.u32 %v1345_v6, %v1344_v62 }
 0x16a   :  { %v908_v32 = vsel %vm906_vm15, %v907_v8, %v4060_v17  ;;  %v1350_v46 = vshll.u32 %v6976_v18, %v1341_v41  ;;  %v1353_v15 = vshll.u32 %v6977_v31, %v1341_v41  ;;  %v1349_v57 = vor.u32 %v1348_v11, %v1347_v2 }
 0x16b   :  { %v905_v59 = vsel %vm903_vm13, %v4058_v63, %v904_v10  ;;  %v995_v24 = vxor.u32 2147483648, %v994_v9  ;;  %v1285_v20 = vshrl.u32 %v1284_v4, 30  ;;  %v1356_v42 = vshll.u32 %v6978_v25, %v1341_v41 }
 0x16c   :  { %v909_v49 = vsel %vm902_vm12, %v905_v59, %v908_v32  ;;  %v1352_v16 = vor.u32 %v1351_v29, %v1350_v46  ;;  %v1357_v19 = vshrl.u32 %v6983_v58, %v1342_v13  ;;  %v4993_v53 = vand.u32 3, %v1004_v61 }
 0x16d   :  { %v910_v14 = vsel %vm899_vm14, nan, %v909_v49  ;;  %v996_v63 = vsel %vm913_vm4, %v995_v24, %v994_v9  ;;  %v1286_v21 = vshll.u32 %v1285_v20, 30  ;;  %v1355_v22 = vor.u32 %v1354_v39, %v1353_v15 }
 0x16e   :  { %3723 = vst [vmem:[#allocation2 + $0x20] sm:$0xff] %v910_v14  ;;  %v999_v62 = vsel %vm4924_vm5, %v4737_v26, %v996_v63  ;;  %v1343_v54 = vshrl.u32 %v6974_v47, %v1342_v13  ;;  %v1358_v17 = vor.u32 %v1357_v19, %v1356_v42  ;;  %v1018_v8 = vand.u32 2139095040, %v4967_v30 }
 0x16f   :  { %4061 = vcosq.f32 %v999_v62  ;;  %v5000_v41 = vsub.s32 %v1283_v33, %v1286_v21  ;;  %vm1359_vm1 = vcmp.lt.s32.totalorder %v4971_v1, 1  ;;  %vm1362_vm2 = vcmp.lt.s32.totalorder %v4971_v1, 4 }
 0x170   :  { %4063 = vsinq.f32 %v999_v62  ;;  %v1309_v61 = vsub.s32 4, %v1285_v20  ;;  %v1364_v34 = vsel %vm1362_vm2, %v1352_v16, 2102212464  ;;  %v1367_v2 = vsel %vm1359_vm1, %v1346_v56, %v1349_v57 }
 0x171   :  { %v1289_v10 = vsub.s32 0, %v5000_v41  ;;  %vm1360_vm3 = vcmp.lt.s32.totalorder %v4971_v1, 2  ;;  %vm1361_vm4 = vcmp.lt.s32.totalorder %v4971_v1, 3  ;;  %v1368_v48 = vsel %vm1362_vm2, %v1355_v22, 920167782 }
 0x172   :  { %v1363_v13 = vsel %vm1359_vm1, %v1343_v54, %v1346_v56  ;;  %v1369_v6 = vsel %vm1361_vm4, %v1352_v16, %v1368_v48  ;;  %v1371_v11 = vsel %vm1359_vm1, %v1349_v57, %v1352_v16  ;;  %v1372_v33 = vsel %vm1362_vm2, %v1358_v17, 1326507024 }
 0x173   :  { %v3800_v29 = vmin.u32 %v1289_v10, %v5000_v41  ;;  %v1365_v32 = vsel %vm1361_vm4, %v1349_v57, %v1364_v34  ;;  %v1370_v9 = vsel %vm1360_vm3, %v1367_v2, %v1369_v6  ;;  %v1373_v4 = vsel %vm1361_vm4, %v1355_v22, %v1372_v33 }
 0x174   :  { %vm1225_vm5 = vcmp.lt.s32.totalorder %v4839_v5, 0  ;;  %v1374_v39 = vsel %vm1360_vm3, %v1371_v11, %v1373_v4  ;;  %v5014_v59 = vmul.u32.u64.low %v4963_v27, %v1370_v9  ;;  %v5015_v46 = vmul.u32.u64.high %v4963_v27, %v1370_v9, %v5014_v59 }
 0x175   :  { %v1291_v56 = vclz %v3800_v29  ;;  %v1310_v15 = vsel %vm1225_vm5, %v1309_v61, %v1285_v20  ;;  %v1015_v49 = vand.u32 2147483647, %v4967_v30  ;;  %v1366_v24 = vsel %vm1360_vm3, %v1363_v13, %v1365_v32 }
 0x176   :  { %v5023_v57 = vmul.u32.u64.low %v4963_v27, %v1374_v39  ;;  %v5024_v14 = vmul.u32.u64.high %v4963_v27, %v1374_v39, %v5023_v57  ;;  %v1019_v16 = vshrl.u32 %v1018_v8, 23  ;;  %vm1007_vm6 = vcmp.eq.s32.totalorder %v4993_v53, 0 }
 0x177   :  { %vm5029_vm7 = vcmp.le.f32.partialorder %v1223_v3, 0.7853982  ;;  %v3801_v19 = vadd.s32 4294967294, %v1291_v56  ;;  %v1385_v1 = vadd.s32 1, %v5015_v46  ;;  %v5038_v63 = vadd.f32 %v4949_v23, %v4433_v60 }
 0x178   :  { %v1312_v20 = vsel %vm5029_vm7, 0, %v1310_v15  ;;  %v3791_v21 = vadd.s32 4294967169, %v1019_v16  ;;  %vm1003_vm8 = vweird.f32 %v4737_v26  ;;  %vm1010_vm10 = vcmp.eq.s32.totalorder %v4993_v53, 2 }
 0x179   :  { %v1279_v3 = vadd.s32 %v4944_v12, %v4941_v43  ;;  %vm3802_vm11 = vcmp.lt.s32.totalorder %v3801_v19, 0  ;;  %v1382_v22 = vmul.u32 %v4963_v27, %v1366_v24  ;;  %vm1384_vm9 = vc.u32 %v5024_v14, %v5014_v59 }
 0x17a   :  { %v1294_v62 = vsel %vm3802_vm11, 0, %v3801_v19  ;;  %v1022_v54 = vand.u32 8388607, %v1015_v49  ;;  %v1025_v17 = vadd.s32 1, %v3791_v21  ;;  %v1316_v8 = vadd.s32 3, %v1312_v20 }
 0x17b   :  { %v1295_v60 = vsub.s32 32, %v1294_v62  ;;  %v1299_v23 = vsub.s32 4294967266, %v1294_v62  ;;  %v1386_v61 = vsel %vm1384_vm9, %v1385_v1, %v5015_v46  ;;  %v1296_v2 = vshll.u32 %v5000_v41, %v1294_v62 }
 0x17c   :  { %v4062_v34 = vpop.eup %4061  ;;  %v1387_v10 = vadd.s32 %v1386_v61, %v1382_v22  ;;  %vm1026_vm12 = vcmp.gt.s32.totalorder %v1025_v17, 0  ;;  %v1119_v43 = vand.u32 2147483647, %v5038_v63  ;;  %v1023_v29 = vor.u32 8388608, %v1022_v54 }
 0x17d   :  { %v4064_v12 = vpop.eup %4063  ;;  %v1011_v27 = vxor.u32 2147483648, %v4062_v34  ;;  %v1297_v48 = vshrl.u32 %v1279_v3, %v1295_v60  ;;  %v1300_v13 = vadd.s32 127, %v1299_v23  ;;  %v1027_v6 = vsel %vm1026_vm12, %v1025_v17, 0 }
 0x17e   :  { %v1008_v11 = vxor.u32 2147483648, %v4064_v12  ;;  %v1388_v33 = vadd.s32 536870912, %v1387_v10  ;;  %v1029_v32 = vand.u32 31, %v1027_v6  ;;  %v1122_v41 = vand.u32 2139095040, %v5038_v63 }
 0x17f   :  { %v1012_v9 = vsel %vm1010_vm10, %v1011_v27, %v4064_v12  ;;  %v1298_v4 = vor.u32 %v1297_v48, %v1296_v2  ;;  %v1301_v39 = vshll.u32 %v1300_v13, 23  ;;  %vm1006_vm13 = vcmp.lt.s32.totalorder %v4993_v53, 2 }
 0x180   :  { %v1009_v46 = vsel %vm1007_vm6, %v4062_v34, %v1008_v11  ;;  %v1389_v56 = vshrl.u32 %v1388_v33, 30  ;;  %v1030_v15 = vsub.s32 32, %v1029_v32  ;;  %v5057_v16 = vand.u32 3, %v1316_v8 }
 0x181   :  { %v1013_v24 = vsel %vm1006_vm13, %v1009_v46, %v1012_v9  ;;  %v1302_v57 = vor.u32 4788187, %v1301_v39  ;;  %vm1329_vm14 = vcmp.lt.s32.totalorder %v4858_v7, 0  ;;  %v5062_v19 = vand.u32 8388607, %v1119_v43 }
 0x182   :  { %v1014_v20 = vsel %vm1003_vm8, nan, %v1013_v24  ;;  %v5067_v1 = vadd.s32 %v5014_v59, %v5024_v14  ;;  %v1390_v53 = vshll.u32 %v1389_v56, 30  ;;  %v5069_v21 = vshll.u32 %v1023_v29, 8 }
 0x183   :  { %3724 = vst [vmem:[#allocation2 + $0x28] sm:$0xff] %v1014_v20  ;;  %v1303_v3 = vand.u32 2147483647, %v1302_v57  ;;  %v1305_v22 = vcvt.s32.f32 %v1298_v4  ;;  %v1028_v62 = vshrl.u32 %v1027_v6, 5  ;;  %v1123_v54 = vshrl.u32 %v1122_v41, 23 }
 0x184   :  { %v5071_v17 = vsub.s32 %v1387_v10, %v1390_v53  ;;  %v1033_v60 = vshrl.u32 %v6975_v55, %v1030_v15  ;;  %v1036_v23 = vshrl.u32 %v6976_v18, %v1030_v15  ;;  %v1039_v26 = vshrl.u32 %v6977_v31, %v1030_v15 }
 0x185   :  { %v1306_v8 = vmul.f32 %v1305_v22, %v1303_v3  ;;  %v1032_v59 = vshll.u32 %v6974_v47, %v1029_v32  ;;  %v1035_v14 = vshll.u32 %v6975_v55, %v1029_v32  ;;  %v1038_v61 = vshll.u32 %v6976_v18, %v1029_v32 }
 0x186   :  { %vm5081_vm15 = vcmp.le.f32.partialorder %v1327_v38, 0.7853982  ;;  %v1393_v2 = vsub.s32 0, %v5071_v17  ;;  %v1413_v10 = vsub.s32 4, %v1389_v56  ;;  %v1041_v12 = vshll.u32 %v6977_v31, %v1029_v32 }
 0x187   :  { %v1042_v27 = vshrl.u32 %v6978_v25, %v1030_v15  ;;  %v1307_v48 = vxor.u32 2147483648, %v1306_v8  ;;  %v1040_v13 = vor.u32 %v1039_v26, %v1038_v61  ;;  %v1044_v6 = vshll.u32 %v6978_v25, %v1029_v32 }
 0x188   :  { %v1045_v11 = vshrl.u32 %v6983_v58, %v1030_v15  ;;  %v3804_v33 = vmin.u32 %v1393_v2, %v5071_v17  ;;  %v1034_v29 = vor.u32 %v1033_v60, %v1032_v59  ;;  %v1037_v38 = vor.u32 %v1036_v23, %v1035_v14 }
 0x189   :  { %v3795_v9 = vadd.s32 4294967169, %v1123_v54  ;;  %v1308_v4 = vsel %vm1225_vm5, %v1307_v48, %v1306_v8  ;;  %v1031_v39 = vshrl.u32 %v6974_v47, %v1030_v15  ;;  %v1043_v41 = vor.u32 %v1042_v27, %v1041_v12 }
 0x18a   :  { %v1046_v46 = vor.u32 %v1045_v11, %v1044_v6  ;;  %v1311_v24 = vsel %vm5029_vm7, %v4839_v5, %v1308_v4  ;;  %v1395_v57 = vclz %v3804_v33  ;;  %v1414_v32 = vsel %vm1329_vm14, %v1413_v10, %v1389_v56 }
 0x18b   :  { %vm1050_vm0 = vcmp.lt.s32.totalorder %v1028_v62, 4  ;;  %4065 = vcosq.f32 %v1311_v24  ;;  %vm1047_vm1 = vcmp.lt.s32.totalorder %v1028_v62, 1  ;;  %vm1049_vm2 = vcmp.lt.s32.totalorder %v1028_v62, 3 }
 0x18c   :  { %v1052_v20 = vsel %vm1050_vm0, %v1040_v13, 2102212464  ;;  %4067 = vsinq.f32 %v1311_v24  ;;  %v3805_v53 = vadd.s32 4294967294, %v1395_v57  ;;  %v1051_v3 = vsel %vm1047_vm1, %v1031_v39, %v1034_v29 }
 0x18d   :  { %v1055_v22 = vsel %vm1047_vm1, %v1034_v29, %v1037_v38  ;;  %v1053_v15 = vsel %vm1049_vm2, %v1037_v38, %v1052_v20  ;;  %v1056_v54 = vsel %vm1050_vm0, %v1043_v41, 920167782  ;;  %v1059_v60 = vsel %vm1047_vm1, %v1037_v38, %v1040_v13 }
 0x18e   :  { %v1060_v23 = vsel %vm1050_vm0, %v1046_v46, 1326507024  ;;  %vm3806_vm3 = vcmp.lt.s32.totalorder %v3805_v53, 0  ;;  %vm1048_vm4 = vcmp.lt.s32.totalorder %v1028_v62, 2  ;;  %v1057_v42 = vsel %vm1049_vm2, %v1040_v13, %v1056_v54 }
 0x18f   :  { %v1061_v26 = vsel %vm1049_vm2, %v1043_v41, %v1060_v23  ;;  %v1398_v8 = vsel %vm3806_vm3, 0, %v3805_v53  ;;  %v1416_v56 = vsel %vm5081_vm15, 0, %v1414_v32  ;;  %v1058_v59 = vsel %vm1048_vm4, %v1055_v22, %v1057_v42 }
 0x190   :  { %v1062_v14 = vsel %vm1048_vm4, %v1059_v60, %v1061_v26  ;;  %v1399_v61 = vsub.s32 32, %v1398_v8  ;;  %v1403_v2 = vsub.s32 4294967266, %v1398_v8  ;;  %v1054_v10 = vsel %vm1048_vm4, %v1051_v3, %v1053_v15 }
 0x191   :  { %v1129_v12 = vadd.s32 1, %v3795_v9  ;;  %v5102_v27 = vmul.u32.u64.low %v5069_v21, %v1062_v14  ;;  %v5103_v48 = vmul.u32.u64.high %v5069_v21, %v1062_v14, %v5102_v27  ;;  %v1400_v62 = vshll.u32 %v5071_v17, %v1398_v8 }
 0x192   :  { %v5106_v6 = vmul.u32.u64.low %v5069_v21, %v1058_v59  ;;  %v5107_v11 = vmul.u32.u64.high %v5069_v21, %v1058_v59, %v5106_v6  ;;  %v1401_v13 = vshrl.u32 %v5067_v1, %v1399_v61  ;;  %v1404_v33 = vadd.s32 127, %v1403_v2 }
 0x193   :  { %vm1130_vm5 = vcmp.gt.s32.totalorder %v1129_v12, 0  ;;  %v275_v38 = vadd.f32 %v4377_v52, %v4305_v44  ;;  %v5116_v9 = vadd.f32 %v4379_v28, %v4308_v45  ;;  %v5120_v4 = vadd.f32 %v4369_v35, %v4291_v36 }
 0x194   :  { %v1131_v29 = vsel %vm1130_vm5, %v1129_v12, 0  ;;  %vm1318_vm6 = vcmp.lt.s32.totalorder %v5057_v16, 2  ;;  %v1402_v39 = vor.u32 %v1401_v13, %v1400_v62  ;;  %v1405_v17 = vshll.u32 %v1404_v33, 23  ;;  %v321_v33 = vpop.permute.xlu0 %320 }
 0x195   :  { %v1133_v41 = vand.u32 31, %v1131_v29  ;;  %vm1315_vm7 = vweird.f32 %v4839_v5  ;;  %vm1319_vm8 = vcmp.eq.s32.totalorder %v5057_v16, 0  ;;  %vm1322_vm10 = vcmp.eq.s32.totalorder %v5057_v16, 2 }
 0x196   :  { %vm1072_vm11 = vc.u32 %v5103_v48, %v5106_v6  ;;  %v1073_v44 = vadd.s32 1, %v5107_v11  ;;  %v1406_v45 = vor.u32 4788187, %v1405_v17  ;;  %v1420_v52 = vadd.s32 3, %v1416_v56 }
 0x197   :  { %v1070_v36 = vmul.u32 %v5069_v21, %v1054_v10  ;;  %v1134_v35 = vsub.s32 32, %v1133_v41  ;;  %v1409_v28 = vcvt.s32.f32 %v1402_v39  ;;  %v1127_v46 = vor.u32 8388608, %v5062_v19 }
 0x198   :  { %v1074_v1 = vsel %vm1072_vm11, %v1073_v44, %v5107_v11  ;;  %v5132_v24 = vshrl.u32 %v1131_v29, 5  ;;  %v4066_v57 = vpop.eup %4065  ;;  %v1407_v32 = vand.u32 2147483647, %v1406_v45  ;;  %v1136_v53 = vshll.u32 %v6974_v47, %v1133_v41 }
 0x199   :  { %v1075_v20 = vadd.s32 %v1074_v1, %v1070_v36  ;;  %v1137_v3 = vshrl.u32 %v6975_v55, %v1134_v35  ;;  %v4068_v22 = vpop.eup %4067  ;;  %v1323_v15 = vxor.u32 2147483648, %v4066_v57  ;;  %v1139_v54 = vshll.u32 %v6975_v55, %v1133_v41 }
 0x19a   :  { %v1140_v21 = vshrl.u32 %v6976_v18, %v1134_v35  ;;  %v1143_v60 = vshrl.u32 %v6977_v31, %v1134_v35  ;;  %v1320_v23 = vxor.u32 2147483648, %v4068_v22  ;;  %v1410_v42 = vmul.f32 %v1409_v28, %v1407_v32 }
 0x19b   :  { %v1076_v19 = vadd.s32 536870912, %v1075_v20  ;;  %v1146_v26 = vshrl.u32 %v6978_v25, %v1134_v35  ;;  %v1324_v8 = vsel %vm1322_vm10, %v1323_v15, %v4068_v22  ;;  %v1138_v56 = vor.u32 %v1137_v3, %v1136_v53 }
 0x19c   :  { %v1142_v59 = vshll.u32 %v6976_v18, %v1133_v41  ;;  %v1145_v14 = vshll.u32 %v6977_v31, %v1133_v41  ;;  %v1321_v61 = vsel %vm1319_vm8, %v4066_v57, %v1320_v23  ;;  %v1411_v2 = vxor.u32 2147483648, %v1410_v42 }
 0x19d   :  { %v1077_v10 = vshrl.u32 %v1076_v19, 30  ;;  %v1141_v12 = vor.u32 %v1140_v21, %v1139_v54  ;;  %v1325_v27 = vsel %vm1318_vm6, %v1321_v61, %v1324_v8  ;;  %v1148_v62 = vshll.u32 %v6978_v25, %v1133_v41 }
 0x19e   :  { %v1144_v11 = vor.u32 %v1143_v60, %v1142_v59  ;;  %v1149_v13 = vshrl.u32 %v6983_v58, %v1134_v35  ;;  %v1326_v29 = vsel %vm1315_vm7, nan, %v1325_v27  ;;  %v1412_v39 = vsel %vm1329_vm14, %v1411_v2, %v1410_v42 }
 0x19f   :  { %v1078_v17 = vshll.u32 %v1077_v10, 30  ;;  %v1147_v44 = vor.u32 %v1146_v26, %v1145_v14  ;;  %v1415_v45 = vsel %vm5081_vm15, %v4858_v7, %v1412_v39  ;;  %v5157_v16 = vand.u32 3, %v1420_v52  ;;  %3727 = vst [vmem:[#allocation2 + $0x40] sm:$0xff] %v1326_v29 }
 0x1a0   :  { %v1150_v36 = vor.u32 %v1149_v13, %v1148_v62  ;;  %v1167_v41 = vshll.u32 %v1127_v46, 8  ;;  %4069 = vcosq.f32 %v1415_v45  ;;  %vm1151_vm9 = vcmp.lt.s32.totalorder %v5132_v24, 1 }
 0x1a1   :  { %v5159_v28 = vsub.s32 %v1075_v20, %v1078_v17  ;;  %v5162_v5 = vadd.f32 %v321_v33, %v275_v38  ;;  %4071 = vsinq.f32 %v1415_v45  ;;  %v1135_v1 = vshrl.u32 %v6974_v47, %v1134_v35 }
 0x1a2   :  { %vm1154_vm12 = vcmp.lt.s32.totalorder %v5132_v24, 4  ;;  %v1159_v57 = vsel %vm1151_vm9, %v1138_v56, %v1141_v12  ;;  %vm1153_vm13 = vcmp.lt.s32.totalorder %v5132_v24, 3  ;;  %vm1152_vm14 = vcmp.lt.s32.totalorder %v5132_v24, 2 }
 0x1a3   :  { %v1081_v34 = vsub.s32 0, %v5159_v28  ;;  %v1156_v52 = vsel %vm1154_vm12, %v1144_v11, 2102212464  ;;  %v1160_v32 = vsel %vm1154_vm12, %v1147_v44, 920167782  ;;  %v1163_v20 = vsel %vm1151_vm9, %v1141_v12, %v1144_v11 }
 0x1a4   :  { %v1161_v46 = vsel %vm1153_vm13, %v1144_v11, %v1160_v32  ;;  %v1164_v53 = vsel %vm1154_vm12, %v1150_v36, 1326507024  ;;  %v1155_v3 = vsel %vm1151_vm9, %v1135_v1, %v1138_v56  ;;  %v1157_v15 = vsel %vm1153_vm13, %v1141_v12, %v1156_v52 }
 0x1a5   :  { %v3792_v38 = vmin.u32 %v1081_v34, %v5159_v28  ;;  %v1162_v35 = vsel %vm1152_vm14, %v1159_v57, %v1161_v46  ;;  %v1165_v22 = vsel %vm1153_vm13, %v1147_v44, %v1164_v53  ;;  %v1101_v42 = vsub.s32 4, %v1077_v10 }
 0x1a6   :  { %v1166_v54 = vsel %vm1152_vm14, %v1163_v20, %v1165_v22  ;;  %v5174_v21 = vmul.u32.u64.low %v1167_v41, %v1162_v35  ;;  %v5175_v60 = vmul.u32.u64.high %v1167_v41, %v1162_v35, %v5174_v21  ;;  %vm1017_vm15 = vcmp.lt.s32.totalorder %v4967_v30, 0 }
 0x1a7   :  { %v1083_v23 = vclz %v3792_v38  ;;  %v5179_v19 = vmul.u32.u64.low %v1167_v41, %v1166_v54  ;;  %v5180_v26 = vmul.u32.u64.high %v1167_v41, %v1166_v54, %v5179_v19  ;;  %v5183_v8 = vadd.f32 %v321_v33, %v5116_v9 }
 0x1a8   :  { %vm5187_vm0 = vcmp.le.f32.partialorder %v1015_v49, 0.7853982  ;;  %v1158_v14 = vsel %vm1152_vm14, %v1155_v3, %v1157_v15  ;;  %v1642_v61 = vand.u32 2139095040, %v5162_v5  ;;  %vm1422_vm1 = vcmp.lt.s32.totalorder %v5157_v16, 2 }
 0x1a9   :  { %v3793_v59 = vadd.s32 4294967294, %v1083_v23  ;;  %vm1423_vm2 = vcmp.eq.s32.totalorder %v5157_v16, 0  ;;  %v1177_v2 = vadd.s32 1, %v5175_v60  ;;  %v1639_v9 = vand.u32 2147483647, %v5162_v5 }
 0x1aa   :  { %vm1419_vm3 = vweird.f32 %v4858_v7  ;;  %vm1426_vm4 = vcmp.eq.s32.totalorder %v5157_v16, 2  ;;  %v1102_v49 = vsel %vm1017_vm15, %v1101_v42, %v1077_v10  ;;  %v1643_v24 = vshrl.u32 %v1642_v61, 23 }
 0x1ab   :  { %vm3794_vm5 = vcmp.lt.s32.totalorder %v3793_v59, 0  ;;  %v1174_v27 = vmul.u32 %v1167_v41, %v1158_v14  ;;  %vm1176_vm6 = vc.u32 %v5180_v26, %v5174_v21  ;;  %v1746_v11 = vand.u32 2139095040, %v5183_v8 }
 0x1ac   :  { %v1086_v12 = vsel %vm3794_vm5, 0, %v3793_v59  ;;  %v1071_v62 = vadd.s32 %v5106_v6, %v5103_v48  ;;  %v1178_v29 = vsel %vm1176_vm6, %v1177_v2, %v5175_v60  ;;  %v1104_v17 = vsel %vm5187_vm0, 0, %v1102_v49 }
 0x1ad   :  { %v1087_v13 = vsub.s32 32, %v1086_v12  ;;  %v1091_v33 = vsub.s32 4294967266, %v1086_v12  ;;  %v4070_v39 = vpop.eup %4069  ;;  %v1179_v10 = vadd.s32 %v1178_v29, %v1174_v27  ;;  %v3815_v44 = vadd.s32 4294967169, %v1643_v24 }
 0x1ae   :  { %v1646_v45 = vand.u32 8388607, %v1639_v9  ;;  %v4072_v36 = vpop.eup %4071  ;;  %v1427_v41 = vxor.u32 2147483648, %v4070_v39  ;;  %v1088_v1 = vshll.u32 %v5159_v28, %v1086_v12  ;;  %v1747_v32 = vshrl.u32 %v1746_v11, 23 }
 0x1af   :  { %v1089_v57 = vshrl.u32 %v1071_v62, %v1087_v13  ;;  %v1092_v34 = vadd.s32 127, %v1091_v33  ;;  %v1424_v48 = vxor.u32 2147483648, %v4072_v36  ;;  %v1180_v6 = vadd.s32 536870912, %v1179_v10 }
 0x1b0   :  { %v1649_v52 = vadd.s32 1, %v3815_v44  ;;  %v1428_v46 = vsel %vm1426_vm4, %v1427_v41, %v4072_v36  ;;  %v1108_v38 = vadd.s32 3, %v1104_v17  ;;  %v1647_v22 = vor.u32 8388608, %v1646_v45 }
 0x1b1   :  { %v1090_v20 = vor.u32 %v1089_v57, %v1088_v1  ;;  %v1093_v53 = vshll.u32 %v1092_v34, 23  ;;  %v1425_v3 = vsel %vm1423_vm2, %v4070_v39, %v1424_v48  ;;  %v1181_v35 = vshrl.u32 %v1180_v6, 30 }
 0x1b2   :  { %vm1650_vm7 = vcmp.gt.s32.totalorder %v1649_v52, 0  ;;  %v1429_v28 = vsel %vm1422_vm1, %v1425_v3, %v1428_v46  ;;  %v1743_v60 = vand.u32 2147483647, %v5183_v8  ;;  %v3819_v19 = vadd.s32 4294967169, %v1747_v32 }
 0x1b3   :  { %v1094_v15 = vor.u32 4788187, %v1093_v53  ;;  %v1651_v54 = vsel %vm1650_vm7, %v1649_v52, 0  ;;  %v1430_v23 = vsel %vm1419_vm3, nan, %v1429_v28  ;;  %v1182_v42 = vshll.u32 %v1181_v35, 30 }
 0x1b4   :  { %3728 = vst [vmem:[#allocation2 + $0x48] sm:$0xff] %v1430_v23  ;;  %v1097_v14 = vcvt.s32.f32 %v1090_v20  ;;  %vm1121_vm8 = vcmp.lt.s32.totalorder %v5038_v63, 0  ;;  %v1653_v61 = vand.u32 31, %v1651_v54  ;;  %v5223_v2 = vand.u32 3, %v1108_v38 }
 0x1b5   :  { %v1095_v59 = vand.u32 2147483647, %v1094_v15  ;;  %v1175_v16 = vadd.s32 %v5174_v21, %v5180_v26  ;;  %v5227_v49 = vsub.s32 %v1179_v10, %v1182_v42  ;;  %v5229_v24 = vshll.u32 %v1647_v22, 8 }
 0x1b6   :  { %v1205_v7 = vsub.s32 4, %v1181_v35  ;;  %v1654_v27 = vsub.s32 32, %v1653_v61  ;;  %v5233_v11 = vand.u32 8388607, %v1743_v60  ;;  %vm5237_vm10 = vcmp.le.f32.partialorder %v1119_v43, 0.7853982 }
 0x1b7   :  { %v1098_v12 = vmul.f32 %v1097_v14, %v1095_v59  ;;  %v1185_v13 = vsub.s32 0, %v5227_v49  ;;  %v1652_v21 = vshrl.u32 %v1651_v54, 5  ;;  %v1656_v26 = vshll.u32 %v6974_v47, %v1653_v61 }
 0x1b8   :  { %v1753_v33 = vadd.s32 1, %v3819_v19  ;;  %v1657_v39 = vshrl.u32 %v6975_v55, %v1654_v27  ;;  %v1659_v17 = vshll.u32 %v6975_v55, %v1653_v61  ;;  %v1660_v10 = vshrl.u32 %v6976_v18, %v1654_v27 }
 0x1b9   :  { %v1099_v29 = vxor.u32 2147483648, %v1098_v12  ;;  %v3796_v44 = vmin.u32 %v1185_v13, %v5227_v49  ;;  %v1662_v43 = vshll.u32 %v6976_v18, %v1653_v61  ;;  %v1663_v45 = vshrl.u32 %v6977_v31, %v1654_v27 }
 0x1ba   :  { %v1665_v36 = vshll.u32 %v6977_v31, %v1653_v61  ;;  %v1658_v1 = vor.u32 %v1657_v39, %v1656_v26  ;;  %v1661_v57 = vor.u32 %v1660_v10, %v1659_v17  ;;  %v1666_v34 = vshrl.u32 %v6978_v25, %v1654_v27 }
 0x1bb   :  { %v1100_v41 = vsel %vm1017_vm15, %v1099_v29, %v1098_v12  ;;  %v1187_v6 = vclz %v3796_v44  ;;  %v1206_v52 = vsel %vm1121_vm8, %v1205_v7, %v1181_v35  ;;  %vm1671_vm11 = vcmp.lt.s32.totalorder %v1652_v21, 1 }
 0x1bc   :  { %v1103_v48 = vsel %vm5187_vm0, %v4967_v30, %v1100_v41  ;;  %v1664_v32 = vor.u32 %v1663_v45, %v1662_v43  ;;  %v1667_v46 = vor.u32 %v1666_v34, %v1665_v36  ;;  %vm1672_vm9 = vcmp.lt.s32.totalorder %v1652_v21, 2 }
 0x1bd   :  { %4073 = vcosq.f32 %v1103_v48  ;;  %v3797_v20 = vadd.s32 4294967294, %v1187_v6  ;;  %v1668_v53 = vshll.u32 %v6978_v25, %v1653_v61  ;;  %v1669_v38 = vshrl.u32 %v6983_v58, %v1654_v27 }
 0x1be   :  { %4075 = vsinq.f32 %v1103_v48  ;;  %v1655_v3 = vshrl.u32 %v6974_v47, %v1654_v27  ;;  %vm1673_vm12 = vcmp.lt.s32.totalorder %v1652_v21, 3  ;;  %vm1674_vm13 = vcmp.lt.s32.totalorder %v1652_v21, 4 }
 0x1bf   :  { %v1679_v56 = vsel %vm1671_vm11, %v1658_v1, %v1661_v57  ;;  %vm3798_vm14 = vcmp.lt.s32.totalorder %v3797_v20, 0  ;;  %v1670_v22 = vor.u32 %v1669_v38, %v1668_v53  ;;  %v1676_v35 = vsel %vm1674_vm13, %v1664_v32, 2102212464 }
 0x1c0   :  { %v1680_v28 = vsel %vm1674_vm13, %v1667_v46, 920167782  ;;  %v1190_v15 = vsel %vm3798_vm14, 0, %v3797_v20  ;;  %v1208_v54 = vsel %vm5237_vm10, 0, %v1206_v52  ;;  %v1675_v23 = vsel %vm1671_vm11, %v1655_v3, %v1658_v1 }
 0x1c1   :  { %v1681_v42 = vsel %vm1673_vm12, %v1664_v32, %v1680_v28  ;;  %v1191_v19 = vsub.s32 32, %v1190_v15  ;;  %v1195_v59 = vsub.s32 4294967266, %v1190_v15  ;;  %v1677_v14 = vsel %vm1673_vm12, %v1661_v57, %v1676_v35 }
 0x1c2   :  { %v1683_v61 = vsel %vm1671_vm11, %v1661_v57, %v1664_v32  ;;  %v1192_v12 = vshll.u32 %v5227_v49, %v1190_v15  ;;  %v1682_v7 = vsel %vm1672_vm9, %v1679_v56, %v1681_v42  ;;  %v1684_v27 = vsel %vm1674_vm13, %v1670_v22, 1326507024 }
 0x1c3   :  { %vm1754_vm15 = vcmp.gt.s32.totalorder %v1753_v33, 0  ;;  %v1193_v13 = vshrl.u32 %v1175_v16, %v1191_v19  ;;  %v1196_v26 = vadd.s32 127, %v1195_v59  ;;  %v1685_v29 = vsel %vm1673_vm12, %v1667_v46, %v1684_v27 }
 0x1c4   :  { %v1755_v39 = vsel %vm1754_vm15, %v1753_v33, 0  ;;  %v1678_v17 = vsel %vm1672_vm9, %v1675_v23, %v1677_v14  ;;  %v1686_v10 = vsel %vm1672_vm9, %v1683_v61, %v1685_v29  ;;  %vm1107_vm0 = vweird.f32 %v4967_v30 }
 0x1c5   :  { %v5277_v44 = vmul.u32.u64.low %v5229_v24, %v1682_v7  ;;  %v5278_v43 = vmul.u32.u64.high %v5229_v24, %v1682_v7, %v5277_v44  ;;  %v1194_v49 = vor.u32 %v1193_v13, %v1192_v12  ;;  %v1197_v45 = vshll.u32 %v1196_v26, 23 }
 0x1c6   :  { %v5282_v36 = vmul.u32.u64.low %v5229_v24, %v1686_v10  ;;  %v5283_v41 = vmul.u32.u64.high %v5229_v24, %v1686_v10, %v5282_v36  ;;  %vm1110_vm1 = vcmp.lt.s32.totalorder %v5223_v2, 2  ;;  %vm1111_vm2 = vcmp.eq.s32.totalorder %v5223_v2, 0 }
 0x1c7   :  { %vm1114_vm3 = vcmp.eq.s32.totalorder %v5223_v2, 2  ;;  %v1757_v16 = vand.u32 31, %v1755_v39  ;;  %v1198_v21 = vor.u32 4788187, %v1197_v45  ;;  %v5289_v33 = vadd.s32 3, %v1208_v54 }
 0x1c8   :  { %v1694_v1 = vmul.u32 %v5229_v24, %v1678_v17  ;;  %v1751_v57 = vor.u32 8388608, %v5233_v11  ;;  %v1201_v34 = vcvt.s32.f32 %v1194_v49  ;;  %v1697_v48 = vadd.s32 1, %v5278_v43 }
 0x1c9   :  { %v5294_v6 = vshrl.u32 %v1755_v39, 5  ;;  %v1758_v52 = vsub.s32 32, %v1757_v16  ;;  %v1199_v46 = vand.u32 2147483647, %v1198_v21  ;;  %vm1696_vm4 = vc.u32 %v5283_v41, %v5277_v44 }
 0x1ca   :  { %v4074_v32 = vpop.eup %4073  ;;  %v1760_v20 = vshll.u32 %v6974_v47, %v1757_v16  ;;  %v1763_v53 = vshll.u32 %v6975_v55, %v1757_v16  ;;  %v1698_v24 = vsel %vm1696_vm4, %v1697_v48, %v5278_v43  ;;  %v1766_v56 = vshll.u32 %v6976_v18, %v1757_v16 }
 0x1cb   :  { %v4076_v38 = vpop.eup %4075  ;;  %v1115_v3 = vxor.u32 2147483648, %v4074_v32  ;;  %v1761_v11 = vshrl.u32 %v6975_v55, %v1758_v52  ;;  %v1202_v35 = vmul.f32 %v1201_v34, %v1199_v46  ;;  %v1699_v28 = vadd.s32 %v1698_v24, %v1694_v1 }
 0x1cc   :  { %v1112_v22 = vxor.u32 2147483648, %v4076_v38  ;;  %v1764_v15 = vshrl.u32 %v6976_v18, %v1758_v52  ;;  %v1767_v42 = vshrl.u32 %v6977_v31, %v1758_v52  ;;  %v1769_v19 = vshll.u32 %v6977_v31, %v1757_v16 }
 0x1cd   :  { %v1116_v54 = vsel %vm1114_vm3, %v1115_v3, %v4076_v38  ;;  %v1762_v23 = vor.u32 %v1761_v11, %v1760_v20  ;;  %v1203_v14 = vxor.u32 2147483648, %v1202_v35  ;;  %v1700_v61 = vadd.s32 536870912, %v1699_v28  ;;  %v317_v3 = vpop.permute.xlu1 %316 }
 0x1ce   :  { %v1113_v59 = vsel %vm1111_vm2, %v4074_v32, %v1112_v22  ;;  %v1765_v12 = vor.u32 %v1764_v15, %v1763_v53  ;;  %v1768_v27 = vor.u32 %v1767_v42, %v1766_v56  ;;  %v1770_v13 = vshrl.u32 %v6978_v25, %v1758_v52 }
 0x1cf   :  { %v1117_v7 = vsel %vm1110_vm1, %v1113_v59, %v1116_v54  ;;  %v1772_v26 = vshll.u32 %v6978_v25, %v1757_v16  ;;  %v1204_v39 = vsel %vm1121_vm8, %v1203_v14, %v1202_v35  ;;  %v5318_v17 = vshrl.u32 %v1700_v61, 30 }
 0x1d0   :  { %v1118_v29 = vsel %vm1107_vm0, nan, %v1117_v7  ;;  %v1773_v10 = vshrl.u32 %v6983_v58, %v1758_v52  ;;  %v1207_v2 = vsel %vm5237_vm10, %v5038_v63, %v1204_v39  ;;  %v1771_v43 = vor.u32 %v1770_v13, %v1769_v19  ;;  %v7006_v19 = vld [vmem:[#allocation23_spill] sm:$0xff] }
 0x1d1   :  { %3725 = vst [vmem:[#allocation2 + $0x30] sm:$0xff] %v1118_v29  ;;  %vm1775_vm5 = vcmp.lt.s32.totalorder %v5294_v6, 1  ;;  %vm1777_vm6 = vcmp.lt.s32.totalorder %v5294_v6, 3  ;;  %4077 = vcosq.f32 %v1207_v2  ;;  %v1702_v30 = vshll.u32 %v5318_v17, 30 }
 0x1d2   :  { %v1774_v49 = vor.u32 %v1773_v10, %v1772_v26  ;;  %vm1778_vm7 = vcmp.lt.s32.totalorder %v5294_v6, 4  ;;  %4079 = vsinq.f32 %v1207_v2  ;;  %v1783_v36 = vsel %vm1775_vm5, %v1762_v23, %v1765_v12 }
 0x1d3   :  { %v1780_v45 = vsel %vm1778_vm7, %v1768_v27, 2102212464  ;;  %v1784_v16 = vsel %vm1778_vm7, %v1771_v43, 920167782  ;;  %v5330_v62 = vsub.s32 %v1699_v28, %v1702_v30  ;;  %v1759_v21 = vshrl.u32 %v6974_v47, %v1758_v52 }
 0x1d4   :  { %vm1776_vm8 = vcmp.lt.s32.totalorder %v5294_v6, 2  ;;  %v1785_v1 = vsel %vm1777_vm6, %v1768_v27, %v1784_v16  ;;  %v1787_v48 = vsel %vm1775_vm5, %v1765_v12, %v1768_v27  ;;  %v1788_v32 = vsel %vm1778_vm7, %v1774_v49, 1326507024 }
 0x1d5   :  { %v1786_v34 = vsel %vm1776_vm8, %v1783_v36, %v1785_v1  ;;  %v1791_v46 = vshll.u32 %v1751_v57, 8  ;;  %v1705_v20 = vsub.s32 0, %v5330_v62  ;;  %v1779_v53 = vsel %vm1775_vm5, %v1759_v21, %v1762_v23 }
 0x1d6   :  { %v1781_v52 = vsel %vm1777_vm6, %v1765_v12, %v1780_v45  ;;  %v1789_v38 = vsel %vm1777_vm6, %v1771_v43, %v1788_v32  ;;  %v274_v57 = vadd.f32 %v4371_v40, %v4294_v37  ;;  %v1213_v22 = vand.u32 3, %v5289_v33 }
 0x1d7   :  { %v1790_v24 = vsel %vm1776_vm8, %v1787_v48, %v1789_v38  ;;  %v5349_v11 = vmul.u32.u64.low %v1791_v46, %v1786_v34  ;;  %v5350_v56 = vmul.u32.u64.high %v1791_v46, %v1786_v34, %v5349_v11  ;;  %v3816_v35 = vmin.u32 %v1705_v20, %v5330_v62 }
 0x1d8   :  { %v5357_v28 = vmul.u32.u64.low %v1791_v46, %v1790_v24  ;;  %v5358_v15 = vmul.u32.u64.high %v1791_v46, %v1790_v24, %v5357_v28  ;;  %v1782_v54 = vsel %vm1776_vm8, %v1779_v53, %v1781_v52  ;;  %v5363_v23 = vadd.f32 %v317_v3, %v5120_v4 }
 0x1d9   :  { %v5367_v42 = vadd.f32 %v4385_v0, %v4317_v50  ;;  %v5371_v37 = vadd.f32 %v7006_v19, %v4320_v51  ;;  %vm1641_vm10 = vcmp.lt.s32.totalorder %v5162_v5, 0  ;;  %v1707_v40 = vclz %v3816_v35 }
 0x1da   :  { %vm5376_vm11 = vcmp.le.f32.partialorder %v1639_v9, 0.7853982  ;;  %v1725_v4 = vsub.s32 4, %v5318_v17  ;;  %v1801_v6 = vadd.s32 1, %v5350_v56  ;;  %v1434_v50 = vand.u32 2139095040, %v5363_v23 }
 0x1db   :  { %vm1211_vm9 = vweird.f32 %v5038_v63  ;;  %v3817_v0 = vadd.s32 4294967294, %v1707_v40  ;;  %v1798_v51 = vmul.u32 %v1791_v46, %v1782_v54  ;;  %vm1800_vm12 = vc.u32 %v5358_v15, %v5349_v11 }
 0x1dc   :  { %v1431_v59 = vand.u32 2147483647, %v5363_v23  ;;  %vm1214_vm13 = vcmp.lt.s32.totalorder %v1213_v22, 2  ;;  %v1802_v9 = vsel %vm1800_vm12, %v1801_v6, %v5350_v56  ;;  %v5388_v14 = vadd.f32 %v317_v3, %v274_v57 }
 0x1dd   :  { %v1435_v61 = vshrl.u32 %v1434_v50, 23  ;;  %vm1215_vm14 = vcmp.eq.s32.totalorder %v1213_v22, 0  ;;  %vm1218_vm15 = vcmp.eq.s32.totalorder %v1213_v22, 2  ;;  %vm3818_vm0 = vcmp.lt.s32.totalorder %v3817_v0, 0 }
 0x1de   :  { %v1803_v12 = vadd.s32 %v1802_v9, %v1798_v51  ;;  %v4078_v7 = vpop.eup %4077  ;;  %v1695_v27 = vadd.s32 %v5277_v44, %v5283_v41  ;;  %v1710_v13 = vsel %vm3818_vm0, 0, %v3817_v0  ;;  %v1726_v26 = vsel %vm1641_vm10, %v1725_v4, %v5318_v17 }
 0x1df   :  { %v3807_v29 = vadd.s32 4294967169, %v1435_v61  ;;  %v4080_v39 = vpop.eup %4079  ;;  %v1219_v10 = vxor.u32 2147483648, %v4078_v7  ;;  %v1711_v2 = vsub.s32 32, %v1710_v13  ;;  %v1715_v43 = vsub.s32 4294967266, %v1710_v13 }
 0x1e0   :  { %v1438_v30 = vand.u32 8388607, %v1431_v59  ;;  %v1216_v49 = vxor.u32 2147483648, %v4080_v39  ;;  %v1804_v45 = vadd.s32 536870912, %v1803_v12  ;;  %v1538_v16 = vand.u32 2139095040, %v5388_v14 }
 0x1e1   :  { %v1441_v36 = vadd.s32 1, %v3807_v29  ;;  %v1220_v44 = vsel %vm1218_vm15, %v1219_v10, %v4080_v39  ;;  %v1712_v41 = vshll.u32 %v5330_v62, %v1710_v13  ;;  %v1713_v21 = vshrl.u32 %v1695_v27, %v1711_v2 }
 0x1e2   :  { %v1716_v1 = vadd.s32 127, %v1715_v43  ;;  %v1217_v17 = vsel %vm1215_vm14, %v4078_v7, %v1216_v49  ;;  %v1728_v34 = vsel %vm5376_vm11, 0, %v1726_v26  ;;  %v1805_v48 = vshrl.u32 %v1804_v45, 30 }
 0x1e3   :  { %vm1442_vm1 = vcmp.gt.s32.totalorder %v1441_v36, 0  ;;  %v1221_v32 = vsel %vm1214_vm13, %v1217_v17, %v1220_v44  ;;  %v1714_v46 = vor.u32 %v1713_v21, %v1712_v41  ;;  %v1439_v3 = vor.u32 8388608, %v1438_v30 }
 0x1e4   :  { %v1717_v20 = vshll.u32 %v1716_v1, 23  ;;  %v1443_v53 = vsel %vm1442_vm1, %v1441_v36, 0  ;;  %v1222_v52 = vsel %vm1211_vm9, nan, %v1221_v32  ;;  %v1806_v38 = vshll.u32 %v1805_v48, 30 }
 0x1e5   :  { %3726 = vst [vmem:[#allocation2 + $0x38] sm:$0xff] %v1222_v52  ;;  %v1445_v24 = vand.u32 31, %v1443_v53  ;;  %v1539_v56 = vshrl.u32 %v1538_v16, 23  ;;  %v5406_v57 = vadd.s32 3, %v1728_v34  ;;  %vm1745_vm2 = vcmp.lt.s32.totalorder %v5183_v8, 0 }
 0x1e6   :  { %v1718_v62 = vor.u32 4788187, %v1717_v20  ;;  %v1799_v22 = vadd.s32 %v5349_v11, %v5358_v15  ;;  %v1807_v35 = vsub.s32 %v1803_v12, %v1806_v38  ;;  %v1721_v54 = vcvt.s32.f32 %v1714_v46 }
 0x1e7   :  { %v1446_v19 = vsub.s32 32, %v1445_v24  ;;  %v1535_v63 = vand.u32 2147483647, %v5388_v14  ;;  %v1829_v4 = vsub.s32 4, %v1805_v48  ;;  %v1444_v6 = vshrl.u32 %v1443_v53, 5 }
 0x1e8   :  { %v1719_v28 = vand.u32 2147483647, %v1718_v62  ;;  %v1809_v40 = vsub.s32 0, %v1807_v35  ;;  %v5412_v50 = vshll.u32 %v1439_v3, 8  ;;  %v3811_v61 = vadd.s32 4294967169, %v1539_v56 }
 0x1e9   :  { %v1449_v51 = vshrl.u32 %v6975_v55, %v1446_v19  ;;  %v1452_v9 = vshrl.u32 %v6976_v18, %v1446_v19  ;;  %v1448_v11 = vshll.u32 %v6974_v47, %v1445_v24  ;;  %v1451_v15 = vshll.u32 %v6975_v55, %v1445_v24 }
 0x1ea   :  { %v1722_v0 = vmul.f32 %v1721_v54, %v1719_v28  ;;  %v3820_v7 = vmin.u32 %v1809_v40, %v1807_v35  ;;  %v1455_v12 = vshrl.u32 %v6977_v31, %v1446_v19  ;;  %v1454_v13 = vshll.u32 %v6976_v18, %v1445_v24 }
 0x1eb   :  { %v1457_v26 = vshll.u32 %v6977_v31, %v1445_v24  ;;  %v1458_v29 = vshrl.u32 %v6978_v25, %v1446_v19  ;;  %v5424_v10 = vsel %vm1745_vm2, %v1829_v4, %v1805_v48  ;;  %v1450_v2 = vor.u32 %v1449_v51, %v1448_v11 }
 0x1ec   :  { %v1723_v27 = vxor.u32 2147483648, %v1722_v0  ;;  %v1811_v39 = vclz %v3820_v7  ;;  %vm1463_vm3 = vcmp.lt.s32.totalorder %v1444_v6, 1  ;;  %v1453_v30 = vor.u32 %v1452_v9, %v1451_v15 }
 0x1ed   :  { %v1456_v49 = vor.u32 %v1455_v12, %v1454_v13  ;;  %v1459_v45 = vor.u32 %v1458_v29, %v1457_v26  ;;  %v1460_v44 = vshll.u32 %v6978_v25, %v1445_v24  ;;  %v1461_v41 = vshrl.u32 %v6983_v58, %v1446_v19  ;;  %v7012_v13 = vld [vmem:[#allocation21_spill] sm:$0xff] }
 0x1ee   :  { %v1724_v43 = vsel %vm1641_vm10, %v1723_v27, %v1722_v0  ;;  %v3821_v16 = vadd.s32 4294967294, %v1811_v39  ;;  %v1447_v21 = vshrl.u32 %v6974_v47, %v1446_v19  ;;  %vm1465_vm4 = vcmp.lt.s32.totalorder %v1444_v6, 3  ;;  %v7011_v27 = vld [vmem:[#allocation5_spill] sm:$0xff] }
 0x1ef   :  { %v1727_v36 = vsel %vm5376_vm11, %v5162_v5, %v1724_v43  ;;  %vm1466_vm5 = vcmp.lt.s32.totalorder %v1444_v6, 4  ;;  %v1462_v1 = vor.u32 %v1461_v41, %v1460_v44  ;;  %v1471_v33 = vsel %vm1463_vm3, %v1450_v2, %v1453_v30 }
 0x1f0   :  { %4081 = vcosq.f32 %v1727_v36  ;;  %vm3822_vm6 = vcmp.lt.s32.totalorder %v3821_v16, 0  ;;  %v1468_v17 = vsel %vm1466_vm5, %v1456_v49, 2102212464  ;;  %v1467_v48 = vsel %vm1463_vm3, %v1447_v21, %v1450_v2  ;;  %v5473_v2 = vpop.permute.xlu0 %328 }
 0x1f1   :  { %4083 = vsinq.f32 %v1727_v36  ;;  %v1814_v34 = vsel %vm3822_vm6, 0, %v3821_v16  ;;  %v1472_v32 = vsel %vm1466_vm5, %v1459_v45, 920167782  ;;  %v1469_v53 = vsel %vm1465_vm4, %v1453_v30, %v1468_v17 }
 0x1f2   :  { %v1815_v46 = vsub.s32 32, %v1814_v34  ;;  %v1819_v20 = vsub.s32 4294967266, %v1814_v34  ;;  %v1475_v52 = vsel %vm1463_vm3, %v1453_v30, %v1456_v49  ;;  %v1816_v38 = vshll.u32 %v1807_v35, %v1814_v34 }
 0x1f3   :  { %vm1464_vm7 = vcmp.lt.s32.totalorder %v1444_v6, 2  ;;  %v1473_v3 = vsel %vm1465_vm4, %v1456_v49, %v1472_v32  ;;  %v1476_v62 = vsel %vm1466_vm5, %v1462_v1, 1326507024  ;;  %v1733_v11 = vand.u32 3, %v5406_v57 }
 0x1f4   :  { %v1817_v24 = vshrl.u32 %v1799_v22, %v1815_v46  ;;  %v1820_v56 = vadd.s32 127, %v1819_v20  ;;  %v1474_v28 = vsel %vm1464_vm7, %v1471_v33, %v1473_v3  ;;  %v1477_v54 = vsel %vm1465_vm4, %v1459_v45, %v1476_v62 }
 0x1f5   :  { %v1470_v19 = vsel %vm1464_vm7, %v1467_v48, %v1469_v53  ;;  %v1478_v40 = vsel %vm1464_vm7, %v1475_v52, %v1477_v54  ;;  %v5444_v4 = vmul.u32.u64.low %v5412_v50, %v1474_v28  ;;  %v5445_v0 = vmul.u32.u64.high %v5412_v50, %v1474_v28, %v5444_v4 }
 0x1f6   :  { %v1818_v51 = vor.u32 %v1817_v24, %v1816_v38  ;;  %v1821_v9 = vshll.u32 %v1820_v56, 23  ;;  %v5449_v35 = vmul.u32.u64.low %v5412_v50, %v1478_v40  ;;  %v5450_v7 = vmul.u32.u64.high %v5412_v50, %v1478_v40, %v5449_v35 }
 0x1f7   :  { %vm5455_vm8 = vcmp.le.f32.partialorder %v1743_v60, 0.7853982  ;;  %v1545_v6 = vadd.s32 1, %v3811_v61  ;;  %v5464_v26 = vadd.f32 %v7012_v13, %v7011_v27  ;;  %vm1731_vm10 = vweird.f32 %v5162_v5 }
 0x1f8   :  { %v1822_v15 = vor.u32 4788187, %v1821_v9  ;;  %v1832_v12 = vsel %vm5455_vm8, 0, %v5424_v10  ;;  %v1486_v57 = vmul.u32 %v5412_v50, %v1470_v19  ;;  %v1489_v29 = vadd.s32 1, %v5445_v0 }
 0x1f9   :  { %v1542_v60 = vand.u32 8388607, %v1535_v63  ;;  %vm1546_vm11 = vcmp.gt.s32.totalorder %v1545_v6, 0  ;;  %v1825_v39 = vcvt.s32.f32 %v1818_v51  ;;  %vm1488_vm9 = vc.u32 %v5450_v7, %v5444_v4 }
 0x1fa   :  { %v1823_v61 = vand.u32 2147483647, %v1822_v15  ;;  %v1547_v10 = vsel %vm1546_vm11, %v1545_v6, 0  ;;  %vm1734_vm12 = vcmp.lt.s32.totalorder %v1733_v11, 2  ;;  %vm1735_vm13 = vcmp.eq.s32.totalorder %v1733_v11, 0 }
 0x1fb   :  { %v1490_v43 = vsel %vm1488_vm9, %v1489_v29, %v5445_v0  ;;  %v1549_v30 = vand.u32 31, %v1547_v10  ;;  %vm1738_vm14 = vcmp.eq.s32.totalorder %v1733_v11, 2  ;;  %v1836_v45 = vadd.s32 3, %v1832_v12 }
 0x1fc   :  { %v1826_v49 = vmul.f32 %v1825_v39, %v1823_v61  ;;  %v1491_v36 = vadd.s32 %v1490_v43, %v1486_v57  ;;  %v1543_v41 = vor.u32 8388608, %v1542_v60  ;;  %v5478_v1 = vadd.f32 %v5473_v2, %v5367_v42 }
 0x1fd   :  { %v4082_v50 = vpop.eup %4081  ;;  %v1550_v21 = vsub.s32 32, %v1549_v30  ;;  %v1548_v33 = vshrl.u32 %v1547_v10, 5  ;;  %v1552_v46 = vshll.u32 %v6974_v47, %v1549_v30  ;;  %v1555_v56 = vshll.u32 %v6975_v55, %v1549_v30 }
 0x1fe   :  { %v4084_v16 = vpop.eup %4083  ;;  %v1739_v44 = vxor.u32 2147483648, %v4082_v50  ;;  %v1827_v34 = vxor.u32 2147483648, %v1826_v49  ;;  %v1492_v48 = vadd.s32 536870912, %v1491_v36  ;;  %v1558_v28 = vshll.u32 %v6976_v18, %v1549_v30 }
 0x1ff   :  { %v1736_v17 = vxor.u32 2147483648, %v4084_v16  ;;  %v1553_v20 = vshrl.u32 %v6975_v55, %v1550_v21  ;;  %v1556_v53 = vshrl.u32 %v6976_v18, %v1550_v21  ;;  %v1559_v42 = vshrl.u32 %v6977_v31, %v1550_v21 }
 0x200   :  { %v1740_v32 = vsel %vm1738_vm14, %v1739_v44, %v4084_v16  ;;  %v1828_v38 = vsel %vm1745_vm2, %v1827_v34, %v1826_v49  ;;  %v5486_v3 = vshrl.u32 %v1492_v48, 30  ;;  %v1561_v51 = vshll.u32 %v6977_v31, %v1549_v30 }
 0x201   :  { %v1737_v52 = vsel %vm1735_vm13, %v4082_v50, %v1736_v17  ;;  %v1831_v24 = vsel %vm5455_vm8, %v5183_v8, %v1828_v38  ;;  %v1554_v40 = vor.u32 %v1553_v20, %v1552_v46  ;;  %v1557_v0 = vor.u32 %v1556_v53, %v1555_v56 }
 0x202   :  { %v1741_v62 = vsel %vm1734_vm12, %v1737_v52, %v1740_v32  ;;  %4085 = vcosq.f32 %v1831_v24  ;;  %v1494_v19 = vshll.u32 %v5486_v3, 30  ;;  %v1562_v9 = vshrl.u32 %v6978_v25, %v1550_v21 }
 0x203   :  { %v1742_v54 = vsel %vm1731_vm10, nan, %v1741_v62  ;;  %4087 = vsinq.f32 %v1831_v24  ;;  %v1560_v11 = vor.u32 %v1559_v42, %v1558_v28  ;;  %v1564_v22 = vshll.u32 %v6978_v25, %v1549_v30 }
 0x204   :  { %3731 = vst [vmem:[#allocation2 + $0x60] sm:$0xff] %v1742_v54  ;;  %v5500_v35 = vsub.s32 %v1491_v36, %v1494_v19  ;;  %v1565_v6 = vshrl.u32 %v6983_v58, %v1550_v21  ;;  %v1563_v5 = vor.u32 %v1562_v9, %v1561_v51  ;;  %v2058_v15 = vand.u32 2139095040, %v5478_v1 }
 0x205   :  { %v5505_v12 = vand.u32 3, %v1836_v45  ;;  %v1583_v57 = vshll.u32 %v1543_v41, 8  ;;  %v1551_v29 = vshrl.u32 %v6974_v47, %v1550_v21  ;;  %vm1567_vm15 = vcmp.lt.s32.totalorder %v1548_v33, 1 }
 0x206   :  { %v1497_v27 = vsub.s32 0, %v5500_v35  ;;  %v1566_v13 = vor.u32 %v1565_v6, %v1564_v22  ;;  %vm1569_vm0 = vcmp.lt.s32.totalorder %v1548_v33, 3  ;;  %vm1570_vm1 = vcmp.lt.s32.totalorder %v1548_v33, 4 }
 0x207   :  { %v1572_v61 = vsel %vm1570_vm1, %v1560_v11, 2102212464  ;;  %v1575_v39 = vsel %vm1567_vm15, %v1554_v40, %v1557_v0  ;;  %v1576_v10 = vsel %vm1570_vm1, %v1563_v5, 920167782  ;;  %v1579_v30 = vsel %vm1567_vm15, %v1557_v0, %v1560_v11 }
 0x208   :  { %v3808_v60 = vmin.u32 %v1497_v27, %v5500_v35  ;;  %v1577_v43 = vsel %vm1569_vm0, %v1560_v11, %v1576_v10  ;;  %v1580_v50 = vsel %vm1570_vm1, %v1566_v13, 1326507024  ;;  %v2059_v49 = vshrl.u32 %v2058_v15, 23 }
 0x209   :  { %vm1433_vm2 = vcmp.lt.s32.totalorder %v5363_v23, 0  ;;  %vm1568_vm3 = vcmp.lt.s32.totalorder %v1548_v33, 2  ;;  %v1571_v36 = vsel %vm1567_vm15, %v1551_v29, %v1554_v40  ;;  %v1573_v16 = vsel %vm1569_vm0, %v1557_v0, %v1572_v61 }
 0x20a   :  { %v1499_v45 = vclz %v3808_v60  ;;  %vm1838_vm4 = vcmp.lt.s32.totalorder %v5505_v12, 2  ;;  %v1578_v44 = vsel %vm1568_vm3, %v1575_v39, %v1577_v43  ;;  %v1581_v41 = vsel %vm1569_vm0, %v1563_v5, %v1580_v50 }
 0x20b   :  { %v2055_v21 = vand.u32 2147483647, %v5478_v1  ;;  %v3831_v17 = vadd.s32 4294967169, %v2059_v49  ;;  %vm1835_vm5 = vweird.f32 %v5183_v8  ;;  %v1582_v48 = vsel %vm1568_vm3, %v1579_v30, %v1581_v41 }
 0x20c   :  { %v3809_v34 = vadd.s32 4294967294, %v1499_v45  ;;  %v5517_v32 = vmul.u32.u64.low %v1583_v57, %v1578_v44  ;;  %v5518_v46 = vmul.u32.u64.high %v1583_v57, %v1578_v44, %v5517_v32  ;;  %vm1839_vm6 = vcmp.eq.s32.totalorder %v5505_v12, 0 }
 0x20d   :  { %v1574_v20 = vsel %vm1568_vm3, %v1571_v36, %v1573_v16  ;;  %v5522_v53 = vmul.u32.u64.low %v1583_v57, %v1582_v48  ;;  %v5523_v52 = vmul.u32.u64.high %v1583_v57, %v1582_v48, %v5522_v53  ;;  %vm1842_vm7 = vcmp.eq.s32.totalorder %v5505_v12, 2 }
 0x20e   :  { %vm3810_vm8 = vcmp.lt.s32.totalorder %v3809_v34, 0  ;;  %v5528_v33 = vadd.f32 %v5473_v2, %v5371_v37  ;;  %v2065_v38 = vadd.s32 1, %v3831_v17  ;;  %v1487_v62 = vadd.s32 %v5444_v4, %v5450_v7 }
 0x20f   :  { %v4086_v42 = vpop.eup %4085  ;;  %v1502_v24 = vsel %vm3810_vm8, 0, %v3809_v34  ;;  %v1517_v56 = vsub.s32 4, %v5486_v3  ;;  %v2062_v28 = vand.u32 8388607, %v2055_v21  ;;  %v1590_v51 = vmul.u32 %v1583_v57, %v1574_v20 }
 0x210   :  { %v4088_v54 = vpop.eup %4087  ;;  %v1843_v19 = vxor.u32 2147483648, %v4086_v42  ;;  %v1503_v40 = vsub.s32 32, %v1502_v24  ;;  %v1507_v0 = vsub.s32 4294967266, %v1502_v24  ;;  %v1504_v37 = vshll.u32 %v5500_v35, %v1502_v24 }
 0x211   :  { %v1840_v9 = vxor.u32 2147483648, %v4088_v54  ;;  %vm1592_vm10 = vc.u32 %v5523_v52, %v5517_v32  ;;  %v1593_v2 = vadd.s32 1, %v5518_v46  ;;  %vm2066_vm11 = vcmp.gt.s32.totalorder %v2065_v38, 0 }
 0x212   :  { %v1844_v4 = vsel %vm1842_vm7, %v1843_v19, %v4088_v54  ;;  %v1505_v7 = vshrl.u32 %v1487_v62, %v1503_v40  ;;  %v1508_v11 = vadd.s32 127, %v1507_v0  ;;  %v1518_v6 = vsel %vm1433_vm2, %v1517_v56, %v5486_v3 }
 0x213   :  { %v1841_v22 = vsel %vm1839_vm6, %v4086_v42, %v1840_v9  ;;  %v1594_v35 = vsel %vm1592_vm10, %v1593_v2, %v5518_v46  ;;  %v2067_v5 = vsel %vm2066_vm11, %v2065_v38, 0  ;;  %vm5553_vm9 = vcmp.le.f32.partialorder %v1431_v59, 0.7853982 }
 0x214   :  { %v1845_v15 = vsel %vm1838_vm4, %v1841_v22, %v1844_v4  ;;  %v1506_v27 = vor.u32 %v1505_v7, %v1504_v37  ;;  %v1509_v13 = vshll.u32 %v1508_v11, 23  ;;  %v1595_v57 = vadd.s32 %v1594_v35, %v1590_v51 }
 0x215   :  { %v1846_v29 = vsel %vm1835_vm5, nan, %v1845_v15  ;;  %v2069_v60 = vand.u32 31, %v2067_v5  ;;  %v1520_v12 = vsel %vm5553_vm9, 0, %v1518_v6  ;;  %v2063_v10 = vor.u32 8388608, %v2062_v28 }
 0x216   :  { %3732 = vst [vmem:[#allocation2 + $0x68] sm:$0xff] %v1846_v29  ;;  %v1510_v3 = vor.u32 4788187, %v1509_v13  ;;  %v1596_v39 = vadd.s32 536870912, %v1595_v57  ;;  %v1513_v50 = vcvt.s32.f32 %v1506_v27  ;;  %v2162_v8 = vand.u32 2139095040, %v5528_v33 }
 0x217   :  { %v2070_v43 = vsub.s32 32, %v2069_v60  ;;  %v2068_v45 = vshrl.u32 %v2067_v5, 5  ;;  %v2078_v17 = vshll.u32 %v6976_v18, %v2069_v60  ;;  %v2072_v48 = vshll.u32 %v6974_v47, %v2069_v60 }
 0x218   :  { %v1511_v30 = vand.u32 2147483647, %v1510_v3  ;;  %v5559_v49 = vshrl.u32 %v1596_v39, 30  ;;  %v2075_v46 = vshll.u32 %v6975_v55, %v2069_v60  ;;  %v2081_v20 = vshll.u32 %v6977_v31, %v2069_v60 }
 0x219   :  { %v2073_v36 = vshrl.u32 %v6975_v55, %v2070_v43  ;;  %v2076_v59 = vshrl.u32 %v6976_v18, %v2070_v43  ;;  %v2079_v16 = vshrl.u32 %v6977_v31, %v2070_v43  ;;  %v2082_v34 = vshrl.u32 %v6978_v25, %v2070_v43 }
 0x21a   :  { %v1514_v44 = vmul.f32 %v1513_v50, %v1511_v30  ;;  %v1598_v41 = vshll.u32 %v5559_v49, 30  ;;  %v2085_v53 = vshrl.u32 %v6983_v58, %v2070_v43  ;;  %v1524_v42 = vadd.s32 3, %v1520_v12 }
 0x21b   :  { %v2080_v24 = vor.u32 %v2079_v16, %v2078_v17  ;;  %v2074_v56 = vor.u32 %v2073_v36, %v2072_v48  ;;  %v2077_v28 = vor.u32 %v2076_v59, %v2075_v46  ;;  %v2083_v54 = vor.u32 %v2082_v34, %v2081_v20 }
 0x21c   :  { %v1515_v38 = vxor.u32 2147483648, %v1514_v44  ;;  %v5572_v62 = vsub.s32 %v1595_v57, %v1598_v41  ;;  %v2084_v19 = vshll.u32 %v6978_v25, %v2069_v60  ;;  %v2103_v51 = vshll.u32 %v2063_v10, 8  ;;  %v7018_v41 = vld [vmem:[#allocation22_spill] sm:$0xff] }
 0x21d   :  { %v2163_v9 = vshrl.u32 %v2162_v8, 23  ;;  %vm1537_vm12 = vcmp.lt.s32.totalorder %v5388_v14, 0  ;;  %v2071_v2 = vshrl.u32 %v6974_v47, %v2070_v43  ;;  %vm2090_vm13 = vcmp.lt.s32.totalorder %v2068_v45, 4 }
 0x21e   :  { %v1516_v40 = vsel %vm1433_vm2, %v1515_v38, %v1514_v44  ;;  %v1601_v0 = vsub.s32 0, %v5572_v62  ;;  %v2086_v4 = vor.u32 %v2085_v53, %v2084_v19  ;;  %vm2087_vm14 = vcmp.lt.s32.totalorder %v2068_v45, 1  ;;  %v7017_v44 = vld [vmem:[#allocation6_spill] sm:$0xff] }
 0x21f   :  { %v1519_v37 = vsel %vm5553_vm9, %v5363_v23, %v1516_v40  ;;  %v2092_v11 = vsel %vm2090_vm13, %v2080_v24, 2102212464  ;;  %vm2089_vm15 = vcmp.lt.s32.totalorder %v2068_v45, 3  ;;  %v2095_v22 = vsel %vm2087_vm14, %v2074_v56, %v2077_v28 }
 0x220   :  { %4089 = vcosq.f32 %v1519_v37  ;;  %v3812_v7 = vmin.u32 %v1601_v0, %v5572_v62  ;;  %v2096_v6 = vsel %vm2090_vm13, %v2083_v54, 920167782  ;;  %vm5588_vm0 = vcmp.le.f32.partialorder %v1535_v63, 0.7853982 }
 0x221   :  { %4091 = vsinq.f32 %v1519_v37  ;;  %v2091_v15 = vsel %vm2087_vm14, %v2071_v2, %v2074_v56  ;;  %v2093_v27 = vsel %vm2089_vm15, %v2077_v28, %v2092_v11  ;;  %v2099_v13 = vsel %vm2087_vm14, %v2077_v28, %v2080_v24 }
 0x222   :  { %v1603_v5 = vclz %v3812_v7  ;;  %vm2088_vm1 = vcmp.lt.s32.totalorder %v2068_v45, 2  ;;  %v2097_v57 = vsel %vm2089_vm15, %v2080_v24, %v2096_v6  ;;  %v2100_v29 = vsel %vm2090_vm13, %v2086_v4, 1326507024 }
 0x223   :  { %v3835_v60 = vadd.s32 4294967169, %v2163_v9  ;;  %v1621_v3 = vsub.s32 4, %v5559_v49  ;;  %v2098_v39 = vsel %vm2088_vm1, %v2095_v22, %v2097_v57  ;;  %v2101_v12 = vsel %vm2089_vm15, %v2083_v54, %v2100_v29 }
 0x224   :  { %v3813_v61 = vadd.s32 4294967294, %v1603_v5  ;;  %v2094_v10 = vsel %vm2088_vm1, %v2091_v15, %v2093_v27  ;;  %v2102_v43 = vsel %vm2088_vm1, %v2099_v13, %v2101_v12  ;;  %v1591_v45 = vadd.s32 %v5517_v32, %v5523_v52 }
 0x225   :  { %v5594_v63 = vmul.u32.u64.low %v2103_v51, %v2098_v39  ;;  %v5595_v30 = vmul.u32.u64.high %v2103_v51, %v2098_v39, %v5594_v63  ;;  %v5598_v50 = vmul.u32.u64.low %v2103_v51, %v2102_v43  ;;  %v5599_v8 = vmul.u32.u64.high %v2103_v51, %v2102_v43, %v5598_v50 }
 0x226   :  { %vm3814_vm2 = vcmp.lt.s32.totalorder %v3813_v61, 0  ;;  %v2169_v36 = vadd.s32 1, %v3835_v60  ;;  %v2159_v16 = vand.u32 2147483647, %v5528_v33  ;;  %v5606_v17 = vadd.f32 %v7018_v41, %v7017_v44 }
 0x227   :  { %v1606_v59 = vsel %vm3814_vm2, 0, %v3813_v61  ;;  %v1622_v46 = vsel %vm1537_vm12, %v1621_v3, %v5559_v49  ;;  %v1525_v20 = vand.u32 3, %v1524_v42  ;;  %v2110_v53 = vmul.u32 %v2103_v51, %v2094_v10 }
 0x228   :  { %v1607_v34 = vsub.s32 32, %v1606_v59  ;;  %v1611_v48 = vsub.s32 4294967266, %v1606_v59  ;;  %vm2170_vm3 = vcmp.gt.s32.totalorder %v2169_v36, 0  ;;  %v2113_v38 = vadd.s32 1, %v5595_v30 }
 0x229   :  { %v2171_v24 = vsel %vm2170_vm3, %v2169_v36, 0  ;;  %v1608_v32 = vshll.u32 %v5572_v62, %v1606_v59  ;;  %vm2112_vm4 = vc.u32 %v5599_v8, %v5594_v63  ;;  %v1624_v28 = vsel %vm5588_vm0, 0, %v1622_v46 }
 0x22a   :  { %v1609_v52 = vshrl.u32 %v1591_v45, %v1607_v34  ;;  %v1612_v56 = vadd.s32 127, %v1611_v48  ;;  %v2114_v54 = vsel %vm2112_vm4, %v2113_v38, %v5595_v30  ;;  %v2166_v49 = vand.u32 8388607, %v2159_v16 }
 0x22b   :  { %v2173_v42 = vand.u32 31, %v2171_v24  ;;  %vm1523_vm5 = vweird.f32 %v5363_v23  ;;  %v2115_v0 = vadd.s32 %v2114_v54, %v2110_v53  ;;  %vm1526_vm6 = vcmp.lt.s32.totalorder %v1525_v20, 2  ;;  %v325_v54 = vpop.permute.xlu1 %324 }
 0x22c   :  { %v1610_v19 = vor.u32 %v1609_v52, %v1608_v32  ;;  %v1613_v40 = vshll.u32 %v1612_v56, 23  ;;  %vm1527_vm7 = vcmp.eq.s32.totalorder %v1525_v20, 0  ;;  %vm1530_vm8 = vcmp.eq.s32.totalorder %v1525_v20, 2 }
 0x22d   :  { %v4090_v62 = vpop.eup %4089  ;;  %v2174_v51 = vsub.s32 32, %v2173_v42  ;;  %v5621_v4 = vadd.s32 3, %v1624_v28  ;;  %v2116_v7 = vadd.s32 536870912, %v2115_v0  ;;  %v2167_v6 = vor.u32 8388608, %v2166_v49 }
 0x22e   :  { %v4092_v9 = vpop.eup %4091  ;;  %v1531_v37 = vxor.u32 2147483648, %v4090_v62  ;;  %v1614_v2 = vor.u32 4788187, %v1613_v40  ;;  %v1617_v22 = vcvt.s32.f32 %v1610_v19  ;;  %v2172_v5 = vshrl.u32 %v2171_v24, 5 }
 0x22f   :  { %v1528_v11 = vxor.u32 2147483648, %v4092_v9  ;;  %v2117_v13 = vshrl.u32 %v2116_v7, 30  ;;  %v2183_v57 = vshrl.u32 %v6977_v31, %v2174_v51  ;;  %v2176_v60 = vshll.u32 %v6974_v47, %v2173_v42 }
 0x230   :  { %v1532_v15 = vsel %vm1530_vm8, %v1531_v37, %v4092_v9  ;;  %v1615_v27 = vand.u32 2147483647, %v1614_v2  ;;  %v2177_v61 = vshrl.u32 %v6975_v55, %v2174_v51  ;;  %v2180_v3 = vshrl.u32 %v6976_v18, %v2174_v51 }
 0x231   :  { %v1529_v29 = vsel %vm1527_vm7, %v4090_v62, %v1528_v11  ;;  %v2118_v10 = vshll.u32 %v2117_v13, 30  ;;  %v2182_v43 = vshll.u32 %v6976_v18, %v2173_v42  ;;  %vm2057_vm10 = vcmp.lt.s32.totalorder %v5478_v1, 0 }
 0x232   :  { %v1533_v39 = vsel %vm1526_vm6, %v1529_v29, %v1532_v15  ;;  %v1618_v12 = vmul.f32 %v1617_v22, %v1615_v27  ;;  %v2179_v50 = vshll.u32 %v6975_v55, %v2173_v42  ;;  %v2185_v36 = vshll.u32 %v6977_v31, %v2173_v42 }
 0x233   :  { %v1534_v30 = vsel %vm1523_vm5, nan, %v1533_v39  ;;  %v2186_v45 = vshrl.u32 %v6978_v25, %v2174_v51  ;;  %v5636_v44 = vsub.s32 %v2115_v0, %v2118_v10  ;;  %v2184_v41 = vor.u32 %v2183_v57, %v2182_v43 }
 0x234   :  { %v1619_v59 = vxor.u32 2147483648, %v1618_v12  ;;  %3729 = vst [vmem:[#allocation2 + $0x50] sm:$0xff] %v1534_v30  ;;  %v2189_v34 = vshrl.u32 %v6983_v58, %v2174_v51  ;;  %v2178_v48 = vor.u32 %v2177_v61, %v2176_v60  ;;  %v2181_v46 = vor.u32 %v2180_v3, %v2179_v50 }
 0x235   :  { %v2187_v20 = vor.u32 %v2186_v45, %v2185_v36  ;;  %v2188_v23 = vshll.u32 %v6978_v25, %v2173_v42  ;;  %v2121_v38 = vsub.s32 0, %v5636_v44  ;;  %v2175_v24 = vshrl.u32 %v6974_v47, %v2174_v51 }
 0x236   :  { %v1620_v53 = vsel %vm1537_vm12, %v1619_v59, %v1618_v12  ;;  %v2207_v32 = vshll.u32 %v2167_v6, 8  ;;  %v2141_v56 = vsub.s32 4, %v2117_v13  ;;  %vm2194_vm11 = vcmp.lt.s32.totalorder %v2172_v5, 4 }
 0x237   :  { %v1623_v52 = vsel %vm5588_vm0, %v5388_v14, %v1620_v53  ;;  %v2190_v28 = vor.u32 %v2189_v34, %v2188_v23  ;;  %v3832_v49 = vmin.u32 %v2121_v38, %v5636_v44  ;;  %vm2191_vm9 = vcmp.lt.s32.totalorder %v2172_v5, 1  ;;  %v7021_v38 = vld [vmem:[#allocation11_spill] sm:$0xff] }
 0x238   :  { %4093 = vcosq.f32 %v1623_v52  ;;  %v2196_v42 = vsel %vm2194_vm11, %v2184_v41, 2102212464  ;;  %vm2193_vm12 = vcmp.lt.s32.totalorder %v2172_v5, 3  ;;  %v2199_v19 = vsel %vm2191_vm9, %v2178_v48, %v2181_v46 }
 0x239   :  { %4095 = vsinq.f32 %v1623_v52  ;;  %v2200_v40 = vsel %vm2194_vm11, %v2187_v20, 920167782  ;;  %v2123_v0 = vclz %v3832_v49  ;;  %v2195_v62 = vsel %vm2191_vm9, %v2175_v24, %v2178_v48 }
 0x23a   :  { %v2197_v51 = vsel %vm2193_vm12, %v2181_v46, %v2196_v42  ;;  %v5651_v35 = vadd.f32 %v325_v54, %v5464_v26  ;;  %vm2192_vm13 = vcmp.lt.s32.totalorder %v2172_v5, 2  ;;  %v2201_v9 = vsel %vm2193_vm12, %v2184_v41, %v2200_v40 }
 0x23b   :  { %v2203_v37 = vsel %vm2191_vm9, %v2181_v46, %v2184_v41  ;;  %v2204_v2 = vsel %vm2194_vm11, %v2190_v28, 1326507024  ;;  %v3833_v7 = vadd.s32 4294967294, %v2123_v0  ;;  %v2142_v11 = vsel %vm2057_vm10, %v2141_v56, %v2117_v13 }
 0x23c   :  { %v2202_v22 = vsel %vm2192_vm13, %v2199_v19, %v2201_v9  ;;  %v2205_v6 = vsel %vm2193_vm12, %v2187_v20, %v2204_v2  ;;  %v2198_v15 = vsel %vm2192_vm13, %v2195_v62, %v2197_v51  ;;  %v1850_v61 = vand.u32 2139095040, %v5651_v35 }
 0x23d   :  { %v2206_v27 = vsel %vm2192_vm13, %v2203_v37, %v2205_v6  ;;  %v5656_v57 = vmul.u32.u64.low %v2207_v32, %v2202_v22  ;;  %v5657_v29 = vmul.u32.u64.high %v2207_v32, %v2202_v22, %v5656_v57  ;;  %vm3834_vm14 = vcmp.lt.s32.totalorder %v3833_v7, 0 }
 0x23e   :  { %v5660_v26 = vmul.u32.u64.low %v2207_v32, %v2206_v27  ;;  %v5661_v60 = vmul.u32.u64.high %v2207_v32, %v2206_v27, %v5660_v26  ;;  %v1629_v5 = vand.u32 3, %v5621_v4  ;;  %vm5667_vm15 = vcmp.le.f32.partialorder %v2055_v21, 0.7853982 }
 0x23f   :  { %v2126_v3 = vsel %vm3834_vm14, 0, %v3833_v7  ;;  %v5672_v39 = vadd.f32 %v325_v54, %v5606_v17  ;;  %v2111_v12 = vadd.s32 %v5594_v63, %v5599_v8  ;;  %v1851_v30 = vshrl.u32 %v1850_v61, 23 }
 0x240   :  { %v2127_v10 = vsub.s32 32, %v2126_v3  ;;  %v2131_v43 = vsub.s32 4294967266, %v2126_v3  ;;  %v2144_v50 = vsel %vm5667_vm15, 0, %v2142_v11  ;;  %v2214_v4 = vmul.u32 %v2207_v32, %v2198_v15 }
 0x241   :  { %v2217_v36 = vadd.s32 1, %v5657_v29  ;;  %v1847_v21 = vand.u32 2147483647, %v5651_v35  ;;  %v2128_v45 = vshll.u32 %v5636_v44, %v2126_v3  ;;  %vm2216_vm0 = vc.u32 %v5661_v60, %v5656_v57  ;;  %v7022_v44 = vld [vmem:[#allocation26_spill] sm:$0xff] }
 0x242   :  { %v2129_v59 = vshrl.u32 %v2111_v12, %v2127_v10  ;;  %v2132_v41 = vadd.s32 127, %v2131_v43  ;;  %v3823_v8 = vadd.s32 4294967169, %v1851_v30  ;;  %v1954_v17 = vand.u32 2139095040, %v5672_v39 }
 0x243   :  { %v2218_v63 = vsel %vm2216_vm0, %v2217_v36, %v5657_v29  ;;  %vm1631_vm1 = vcmp.eq.s32.totalorder %v1629_v5, 0  ;;  %vm1634_vm2 = vcmp.eq.s32.totalorder %v1629_v5, 2  ;;  %v2148_v23 = vadd.s32 3, %v2144_v50 }
 0x244   :  { %v2130_v34 = vor.u32 %v2129_v59, %v2128_v45  ;;  %v2133_v48 = vshll.u32 %v2132_v41, 23  ;;  %v2219_v46 = vadd.s32 %v2218_v63, %v2214_v4  ;;  %v1857_v53 = vadd.s32 1, %v3823_v8 }
 0x245   :  { %v4094_v20 = vpop.eup %4093  ;;  %v5687_v24 = vadd.f32 %v7022_v44, %v7021_v38  ;;  %v1854_v54 = vand.u32 8388607, %v1847_v21  ;;  %v1955_v19 = vshrl.u32 %v1954_v17, 23  ;;  %vm1627_vm4 = vweird.f32 %v5388_v14 }
 0x246   :  { %v4096_v32 = vpop.eup %4095  ;;  %v1635_v52 = vxor.u32 2147483648, %v4094_v20  ;;  %v2134_v56 = vor.u32 4788187, %v2133_v48  ;;  %v2220_v28 = vadd.s32 536870912, %v2219_v46  ;;  %v2137_v42 = vcvt.s32.f32 %v2130_v34 }
 0x247   :  { %v1632_v49 = vxor.u32 2147483648, %v4096_v32  ;;  %vm1858_vm3 = vcmp.gt.s32.totalorder %v1857_v53, 0  ;;  %vm1630_vm5 = vcmp.lt.s32.totalorder %v1629_v5, 2  ;;  %v5693_v11 = vand.u32 3, %v2148_v23 }
 0x248   :  { %v1636_v40 = vsel %vm1634_vm2, %v1635_v52, %v4096_v32  ;;  %v2135_v0 = vand.u32 2147483647, %v2134_v56  ;;  %v2221_v62 = vshrl.u32 %v2220_v28, 30  ;;  %v1859_v51 = vsel %vm1858_vm3, %v1857_v53, 0 }
 0x249   :  { %v1633_v9 = vsel %vm1631_vm1, %v4094_v20, %v1632_v49  ;;  %v1861_v37 = vand.u32 31, %v1859_v51  ;;  %vm2161_vm6 = vcmp.lt.s32.totalorder %v5528_v33, 0  ;;  %v1855_v15 = vor.u32 8388608, %v1854_v54 }
 0x24a   :  { %v1637_v2 = vsel %vm1630_vm5, %v1633_v9, %v1636_v40  ;;  %v2138_v7 = vmul.f32 %v2137_v42, %v2135_v0  ;;  %v2222_v22 = vshll.u32 %v2221_v62, 30  ;;  %v1951_v29 = vand.u32 2147483647, %v5672_v39 }
 0x24b   :  { %v1638_v6 = vsel %vm1627_vm4, nan, %v1637_v2  ;;  %v1862_v27 = vsub.s32 32, %v1861_v37  ;;  %v1860_v14 = vshrl.u32 %v1859_v51, 5  ;;  %v3827_v5 = vadd.s32 4294967169, %v1955_v19 }
 0x24c   :  { %3730 = vst [vmem:[#allocation2 + $0x58] sm:$0xff] %v1638_v6  ;;  %v2139_v26 = vxor.u32 2147483648, %v2138_v7  ;;  %v5697_v61 = vsub.s32 %v2219_v46, %v2222_v22  ;;  %v1864_v3 = vshll.u32 %v6974_v47, %v1861_v37  ;;  %v1867_v10 = vshll.u32 %v6975_v55, %v1861_v37 }
 0x24d   :  { %v1865_v12 = vshrl.u32 %v6975_v55, %v1862_v27  ;;  %v1868_v43 = vshrl.u32 %v6976_v18, %v1862_v27  ;;  %v1870_v4 = vshll.u32 %v6976_v18, %v1861_v37  ;;  %v1871_v36 = vshrl.u32 %v6977_v31, %v1862_v27 }
 0x24e   :  { %v2140_v30 = vsel %vm2057_vm10, %v2139_v26, %v2138_v7  ;;  %v2225_v50 = vsub.s32 0, %v5697_v61  ;;  %v2245_v59 = vsub.s32 4, %v2221_v62  ;;  %v1873_v34 = vshll.u32 %v6977_v31, %v1861_v37 }
 0x24f   :  { %v2143_v45 = vsel %vm5667_vm15, %v5478_v1, %v2140_v30  ;;  %v1866_v41 = vor.u32 %v1865_v12, %v1864_v3  ;;  %v1869_v63 = vor.u32 %v1868_v43, %v1867_v10  ;;  %v1872_v17 = vor.u32 %v1871_v36, %v1870_v4  ;;  %v7025_v30 = vld [vmem:[#allocation12_spill] sm:$0xff] }
 0x250   :  { %4097 = vcosq.f32 %v2143_v45  ;;  %v3836_v8 = vmin.u32 %v2225_v50, %v5697_v61  ;;  %v1874_v48 = vshrl.u32 %v6978_v25, %v1862_v27  ;;  %v1876_v46 = vshll.u32 %v6978_v25, %v1861_v37  ;;  %v7026_v50 = vld [vmem:[#allocation27_spill] sm:$0xff] }
 0x251   :  { %4099 = vsinq.f32 %v2143_v45  ;;  %v1877_v20 = vshrl.u32 %v6983_v58, %v1862_v27  ;;  %v2215_v13 = vadd.s32 %v5656_v57, %v5661_v60  ;;  %v5718_v53 = vshll.u32 %v1855_v15, 8 }
 0x252   :  { %v2227_v23 = vclz %v3836_v8  ;;  %v1961_v38 = vadd.s32 1, %v3827_v5  ;;  %vm5722_vm7 = vcmp.le.f32.partialorder %v2159_v16, 0.7853982  ;;  %v2246_v32 = vsel %vm2161_vm6, %v2245_v59, %v2221_v62 }
 0x253   :  { %v1863_v52 = vshrl.u32 %v6974_v47, %v1862_v27  ;;  %v1875_v56 = vor.u32 %v1874_v48, %v1873_v34  ;;  %v1878_v28 = vor.u32 %v1877_v20, %v1876_v46  ;;  %vm1879_vm8 = vcmp.lt.s32.totalorder %v1860_v14, 1 }
 0x254   :  { %v3837_v54 = vadd.s32 4294967294, %v2227_v23  ;;  %vm1881_vm10 = vcmp.lt.s32.totalorder %v1860_v14, 3  ;;  %vm1882_vm11 = vcmp.lt.s32.totalorder %v1860_v14, 4  ;;  %v1887_v60 = vsel %vm1879_vm8, %v1866_v41, %v1869_v63 }
 0x255   :  { %v1884_v57 = vsel %vm1882_vm11, %v1872_v17, 2102212464  ;;  %v1888_v49 = vsel %vm1882_vm11, %v1875_v56, 920167782  ;;  %v1891_v42 = vsel %vm1879_vm8, %v1869_v63, %v1872_v17  ;;  %vm1880_vm12 = vcmp.lt.s32.totalorder %v1860_v14, 2 }
 0x256   :  { %vm3838_vm9 = vcmp.lt.s32.totalorder %v3837_v54, 0  ;;  %v1889_v16 = vsel %vm1881_vm10, %v1872_v17, %v1888_v49  ;;  %v1892_v19 = vsel %vm1882_vm11, %v1878_v28, 1326507024  ;;  %v1883_v0 = vsel %vm1879_vm8, %v1863_v52, %v1866_v41 }
 0x257   :  { %v2230_v40 = vsel %vm3838_vm9, 0, %v3837_v54  ;;  %v1890_v62 = vsel %vm1880_vm12, %v1887_v60, %v1889_v16  ;;  %v1893_v51 = vsel %vm1881_vm10, %v1875_v56, %v1892_v19  ;;  %v1885_v2 = vsel %vm1881_vm10, %v1869_v63, %v1884_v57 }
 0x258   :  { %v2231_v9 = vsub.s32 32, %v2230_v40  ;;  %v2235_v37 = vsub.s32 4294967266, %v2230_v40  ;;  %v1894_v7 = vsel %vm1880_vm12, %v1891_v42, %v1893_v51  ;;  %vm2150_vm13 = vcmp.lt.s32.totalorder %v5693_v11, 2 }
 0x259   :  { %v5736_v22 = vmul.u32.u64.low %v5718_v53, %v1894_v7  ;;  %v5737_v6 = vmul.u32.u64.high %v5718_v53, %v1894_v7, %v5736_v22  ;;  %v5740_v15 = vmul.u32.u64.low %v5718_v53, %v1890_v62  ;;  %v5741_v27 = vmul.u32.u64.high %v5718_v53, %v1890_v62, %v5740_v15 }
 0x25a   :  { %vm2147_vm14 = vweird.f32 %v5478_v1  ;;  %v2232_v26 = vshll.u32 %v5697_v61, %v2230_v40  ;;  %v2233_v5 = vshrl.u32 %v2215_v13, %v2231_v9  ;;  %v2236_v3 = vadd.s32 127, %v2235_v37 }
 0x25b   :  { %vm1962_vm15 = vcmp.gt.s32.totalorder %v1961_v38, 0  ;;  %v1886_v12 = vsel %vm1880_vm12, %v1883_v0, %v1885_v2  ;;  %v1958_v10 = vand.u32 8388607, %v1951_v29  ;;  %v5751_v4 = vadd.f32 %v7026_v50, %v7025_v30 }
 0x25c   :  { %v1963_v43 = vsel %vm1962_vm15, %v1961_v38, 0  ;;  %v2234_v36 = vor.u32 %v2233_v5, %v2232_v26  ;;  %v2237_v45 = vshll.u32 %v2236_v3, 23  ;;  %v2248_v59 = vsel %vm5722_vm7, 0, %v2246_v32 }
 0x25d   :  { %v1965_v41 = vand.u32 31, %v1963_v43  ;;  %v4098_v61 = vpop.eup %4097  ;;  %vm2151_vm0 = vcmp.eq.s32.totalorder %v5693_v11, 0  ;;  %vm2154_vm1 = vcmp.eq.s32.totalorder %v5693_v11, 2  ;;  %vm1904_vm2 = vc.u32 %v5737_v6, %v5740_v15 }
 0x25e   :  { %v1905_v14 = vadd.s32 1, %v5741_v27  ;;  %v4100_v63 = vpop.eup %4099  ;;  %v2155_v8 = vxor.u32 2147483648, %v4098_v61  ;;  %v2238_v17 = vor.u32 4788187, %v2237_v45  ;;  %v1902_v34 = vmul.u32 %v5718_v53, %v1886_v12 }
 0x25f   :  { %v1966_v48 = vsub.s32 32, %v1965_v41  ;;  %v2152_v46 = vxor.u32 2147483648, %v4100_v63  ;;  %v2252_v20 = vadd.s32 3, %v2248_v59  ;;  %v1959_v23 = vor.u32 8388608, %v1958_v10 }
 0x260   :  { %v1906_v13 = vsel %vm1904_vm2, %v1905_v14, %v5741_v27  ;;  %v2156_v38 = vsel %vm2154_vm1, %v2155_v8, %v4100_v63  ;;  %v2239_v32 = vand.u32 2147483647, %v2238_v17  ;;  %v2241_v52 = vcvt.s32.f32 %v2234_v36  ;;  %v337_v27 = vpop.permute.xlu0 %336 }
 0x261   :  { %v1907_v56 = vadd.s32 %v1906_v13, %v1902_v34  ;;  %v2153_v28 = vsel %vm2151_vm0, %v4098_v61, %v2152_v46  ;;  %v1964_v54 = vshrl.u32 %v1963_v43, 5  ;;  %v1969_v57 = vshrl.u32 %v6975_v55, %v1966_v48 }
 0x262   :  { %v1972_v60 = vshrl.u32 %v6976_v18, %v1966_v48  ;;  %v2157_v53 = vsel %vm2150_vm13, %v2153_v28, %v2156_v38  ;;  %v2242_v49 = vmul.f32 %v2241_v52, %v2239_v32  ;;  %v1975_v16 = vshrl.u32 %v6977_v31, %v1966_v48 }
 0x263   :  { %v1908_v42 = vadd.s32 536870912, %v1907_v56  ;;  %v2158_v19 = vsel %vm2147_vm14, nan, %v2157_v53  ;;  %v1968_v40 = vshll.u32 %v6974_v47, %v1965_v41  ;;  %v1971_v0 = vshll.u32 %v6975_v55, %v1965_v41 }
 0x264   :  { %v1974_v62 = vshll.u32 %v6976_v18, %v1965_v41  ;;  %v2243_v51 = vxor.u32 2147483648, %v2242_v49  ;;  %3735 = vst [vmem:[#allocation2 + $0x80] sm:$0xff] %v2158_v19  ;;  %v1977_v37 = vshll.u32 %v6977_v31, %v1965_v41  ;;  %v1978_v11 = vshrl.u32 %v6978_v25, %v1966_v48 }
 0x265   :  { %v1909_v9 = vshrl.u32 %v1908_v42, 30  ;;  %v1970_v2 = vor.u32 %v1969_v57, %v1968_v40  ;;  %v1973_v7 = vor.u32 %v1972_v60, %v1971_v0  ;;  %v1980_v22 = vshll.u32 %v6978_v25, %v1965_v41 }
 0x266   :  { %v1981_v1 = vshrl.u32 %v6983_v58, %v1966_v48  ;;  %v2244_v26 = vsel %vm2161_vm6, %v2243_v51, %v2242_v49  ;;  %v1976_v3 = vor.u32 %v1975_v16, %v1974_v62  ;;  %v1979_v12 = vor.u32 %v1978_v11, %v1977_v37 }
 0x267   :  { %v1910_v5 = vshll.u32 %v1909_v9, 30  ;;  %v2247_v10 = vsel %vm5722_vm7, %v5528_v33, %v2244_v26  ;;  %v5783_v43 = vand.u32 3, %v2252_v20  ;;  %v1999_v50 = vshll.u32 %v1959_v23, 8 }
 0x268   :  { %v1982_v30 = vor.u32 %v1981_v1, %v1980_v22  ;;  %4101 = vcosq.f32 %v2247_v10  ;;  %vm1983_vm3 = vcmp.lt.s32.totalorder %v1964_v54, 1  ;;  %v5788_v45 = vadd.f32 %v337_v27, %v5687_v24 }
 0x269   :  { %v5785_v36 = vsub.s32 %v1907_v56, %v1910_v5  ;;  %4103 = vsinq.f32 %v2247_v10  ;;  %v1967_v59 = vshrl.u32 %v6974_v47, %v1966_v48  ;;  %vm1986_vm4 = vcmp.lt.s32.totalorder %v1964_v54, 4 }
 0x26a   :  { %v1991_v41 = vsel %vm1983_vm3, %v1970_v2, %v1973_v7  ;;  %vm1985_vm5 = vcmp.lt.s32.totalorder %v1964_v54, 3  ;;  %v1988_v44 = vsel %vm1986_vm4, %v1976_v3, 2102212464  ;;  %v1992_v14 = vsel %vm1986_vm4, %v1979_v12, 920167782 }
 0x26b   :  { %v1913_v61 = vsub.s32 0, %v5785_v36  ;;  %vm1984_vm6 = vcmp.lt.s32.totalorder %v1964_v54, 2  ;;  %v1993_v63 = vsel %vm1985_vm5, %v1976_v3, %v1992_v14  ;;  %v1995_v8 = vsel %vm1983_vm3, %v1973_v7, %v1976_v3 }
 0x26c   :  { %v1996_v17 = vsel %vm1986_vm4, %v1982_v30, 1326507024  ;;  %v1987_v46 = vsel %vm1983_vm3, %v1967_v59, %v1970_v2  ;;  %v1994_v24 = vsel %vm1984_vm6, %v1991_v41, %v1993_v63  ;;  %v1989_v13 = vsel %vm1985_vm5, %v1973_v7, %v1988_v44 }
 0x26d   :  { %v3824_v34 = vmin.u32 %v1913_v61, %v5785_v36  ;;  %v1997_v20 = vsel %vm1985_vm5, %v1979_v12, %v1996_v17  ;;  %v5795_v23 = vmul.u32.u64.low %v1999_v50, %v1994_v24  ;;  %v5796_v38 = vmul.u32.u64.high %v1999_v50, %v1994_v24, %v5795_v23 }
 0x26e   :  { %v1998_v48 = vsel %vm1984_vm6, %v1995_v8, %v1997_v20  ;;  %v1933_v52 = vsub.s32 4, %v1909_v9  ;;  %vm1849_vm7 = vcmp.lt.s32.totalorder %v5651_v35, 0  ;;  %v5804_v57 = vadd.f32 %v337_v27, %v5751_v4 }
 0x26f   :  { %v1915_v32 = vclz %v3824_v34  ;;  %v5800_v56 = vmul.u32.u64.low %v1999_v50, %v1998_v48  ;;  %v5801_v28 = vmul.u32.u64.high %v1999_v50, %v1998_v48, %v5800_v56  ;;  %vm5808_vm8 = vcmp.le.f32.partialorder %v1847_v21, 0.7853982 }
 0x270   :  { %v1990_v49 = vsel %vm1984_vm6, %v1987_v46, %v1989_v13  ;;  %v2474_v42 = vand.u32 2139095040, %v5788_v45  ;;  %vm2254_vm10 = vcmp.lt.s32.totalorder %v5783_v43, 2  ;;  %vm2255_vm11 = vcmp.eq.s32.totalorder %v5783_v43, 0 }
 0x271   :  { %v3825_v53 = vadd.s32 4294967294, %v1915_v32  ;;  %v2009_v16 = vadd.s32 1, %v5796_v38  ;;  %v2471_v4 = vand.u32 2147483647, %v5788_v45  ;;  %vm2251_vm9 = vweird.f32 %v5528_v33 }
 0x272   :  { %vm2258_vm12 = vcmp.eq.s32.totalorder %v5783_v43, 2  ;;  %v1934_v21 = vsel %vm1849_vm7, %v1933_v52, %v1909_v9  ;;  %v2475_v54 = vshrl.u32 %v2474_v42, 23  ;;  %v2006_v40 = vmul.u32 %v1999_v50, %v1990_v49 }
 0x273   :  { %vm3826_vm13 = vcmp.lt.s32.totalorder %v3825_v53, 0  ;;  %vm2008_vm14 = vc.u32 %v5801_v28, %v5795_v23  ;;  %v2578_v0 = vand.u32 2139095040, %v5804_v57  ;;  %v1903_v62 = vadd.s32 %v5740_v15, %v5737_v6 }
 0x274   :  { %v1918_v19 = vsel %vm3826_vm13, 0, %v3825_v53  ;;  %v2010_v11 = vsel %vm2008_vm14, %v2009_v16, %v5796_v38  ;;  %v1936_v7 = vsel %vm5808_vm8, 0, %v1934_v21  ;;  %v3847_v22 = vadd.s32 4294967169, %v2475_v54 }
 0x275   :  { %v1919_v51 = vsub.s32 32, %v1918_v19  ;;  %v1923_v37 = vsub.s32 4294967266, %v1918_v19  ;;  %v4102_v2 = vpop.eup %4101  ;;  %v2011_v9 = vadd.s32 %v2010_v11, %v2006_v40  ;;  %v2478_v1 = vand.u32 8388607, %v2471_v4 }
 0x276   :  { %v4104_v27 = vpop.eup %4103  ;;  %v2259_v26 = vxor.u32 2147483648, %v4102_v2  ;;  %v1920_v5 = vshll.u32 %v5785_v36, %v1918_v19  ;;  %v2481_v10 = vadd.s32 1, %v3847_v22  ;;  %v2579_v30 = vshrl.u32 %v2578_v0, 23 }
 0x277   :  { %v1921_v3 = vshrl.u32 %v1903_v62, %v1919_v51  ;;  %v1924_v12 = vadd.s32 127, %v1923_v37  ;;  %v2256_v6 = vxor.u32 2147483648, %v4104_v27  ;;  %v2012_v15 = vadd.s32 536870912, %v2011_v9 }
 0x278   :  { %v2260_v50 = vsel %vm2258_vm12, %v2259_v26, %v4104_v27  ;;  %v1940_v61 = vadd.s32 3, %v1936_v7  ;;  %vm2482_vm15 = vcmp.gt.s32.totalorder %v2481_v10, 0  ;;  %v2575_v36 = vand.u32 2147483647, %v5804_v57 }
 0x279   :  { %v1922_v59 = vor.u32 %v1921_v3, %v1920_v5  ;;  %v1925_v41 = vshll.u32 %v1924_v12, 23  ;;  %v2257_v44 = vsel %vm2255_vm11, %v4102_v2, %v2256_v6  ;;  %v5837_v14 = vshrl.u32 %v2012_v15, 30 }
 0x27a   :  { %v2261_v63 = vsel %vm2254_vm10, %v2257_v44, %v2260_v50  ;;  %v2479_v17 = vor.u32 8388608, %v2478_v1  ;;  %v2483_v34 = vsel %vm2482_vm15, %v2481_v10, 0  ;;  %v3851_v20 = vadd.s32 4294967169, %v2579_v30 }
 0x27b   :  { %v1926_v8 = vor.u32 4788187, %v1925_v41  ;;  %v2262_v46 = vsel %vm2251_vm9, nan, %v2261_v63  ;;  %v2014_v24 = vshll.u32 %v5837_v14, 30  ;;  %v1929_v48 = vcvt.s32.f32 %v1922_v59 }
 0x27c   :  { %3736 = vst [vmem:[#allocation2 + $0x88] sm:$0xff] %v2262_v46  ;;  %v2485_v38 = vand.u32 31, %v2483_v34  ;;  %v5845_v32 = vand.u32 3, %v1940_v61  ;;  %v2007_v52 = vadd.s32 %v5795_v23, %v5801_v28  ;;  %v5851_v49 = vshll.u32 %v2479_v17, 8 }
 0x27d   :  { %v1927_v13 = vand.u32 2147483647, %v1926_v8  ;;  %v5849_v43 = vsub.s32 %v2011_v9, %v2014_v24  ;;  %v5855_v33 = vand.u32 8388607, %v2575_v36  ;;  %v2484_v16 = vshrl.u32 %v2483_v34, 5 }
 0x27e   :  { %v2486_v53 = vsub.s32 32, %v2485_v38  ;;  %v2488_v21 = vshll.u32 %v6974_v47, %v2485_v38  ;;  %v2585_v54 = vadd.s32 1, %v3851_v20  ;;  %v2491_v23 = vshll.u32 %v6975_v55, %v2485_v38 }
 0x27f   :  { %v1930_v56 = vmul.f32 %v1929_v48, %v1927_v13  ;;  %v2017_v42 = vsub.s32 0, %v5849_v43  ;;  %v2494_v62 = vshll.u32 %v6976_v18, %v2485_v38  ;;  %v2497_v37 = vshll.u32 %v6977_v31, %v2485_v38 }
 0x280   :  { %v2489_v40 = vshrl.u32 %v6975_v55, %v2486_v53  ;;  %v2492_v28 = vshrl.u32 %v6976_v18, %v2486_v53  ;;  %v2495_v51 = vshrl.u32 %v6977_v31, %v2486_v53  ;;  %v2498_v9 = vshrl.u32 %v6978_v25, %v2486_v53 }
 0x281   :  { %v1931_v19 = vxor.u32 2147483648, %v1930_v56  ;;  %v3828_v0 = vmin.u32 %v2017_v42, %v5849_v43  ;;  %v2037_v27 = vsub.s32 4, %v5837_v14  ;;  %vm2586_vm0 = vcmp.gt.s32.totalorder %v2585_v54, 0 }
 0x282   :  { %v2490_v2 = vor.u32 %v2489_v40, %v2488_v21  ;;  %v2493_v7 = vor.u32 %v2492_v28, %v2491_v23  ;;  %v2496_v26 = vor.u32 %v2495_v51, %v2494_v62  ;;  %v2499_v5 = vor.u32 %v2498_v9, %v2497_v37 }
 0x283   :  { %v1932_v11 = vsel %vm1849_vm7, %v1931_v19, %v1930_v56  ;;  %v2019_v1 = vclz %v3828_v0  ;;  %vm2503_vm1 = vcmp.lt.s32.totalorder %v2484_v16, 1  ;;  %vm1953_vm2 = vcmp.lt.s32.totalorder %v5672_v39, 0 }
 0x284   :  { %v1935_v22 = vsel %vm5808_vm8, %v5651_v35, %v1932_v11  ;;  %v2500_v12 = vshll.u32 %v6978_v25, %v2485_v38  ;;  %v2501_v6 = vshrl.u32 %v6983_v58, %v2486_v53  ;;  %v2487_v15 = vshrl.u32 %v6974_v47, %v2486_v53 }
 0x285   :  { %4105 = vcosq.f32 %v1935_v22  ;;  %v3829_v3 = vadd.s32 4294967294, %v2019_v1  ;;  %vm2505_vm3 = vcmp.lt.s32.totalorder %v2484_v16, 3  ;;  %vm2506_vm4 = vcmp.lt.s32.totalorder %v2484_v16, 4 }
 0x286   :  { %4107 = vsinq.f32 %v1935_v22  ;;  %v2511_v60 = vsel %vm2503_vm1, %v2490_v2, %v2493_v7  ;;  %v2502_v10 = vor.u32 %v2501_v6, %v2500_v12  ;;  %v2508_v30 = vsel %vm2506_vm4, %v2496_v26, 2102212464 }
 0x287   :  { %vm3830_vm5 = vcmp.lt.s32.totalorder %v3829_v3, 0  ;;  %v2512_v50 = vsel %vm2506_vm4, %v2499_v5, 920167782  ;;  %v2507_v41 = vsel %vm2503_vm1, %v2487_v15, %v2490_v2  ;;  %v2509_v61 = vsel %vm2505_vm3, %v2493_v7, %v2508_v30 }
 0x288   :  { %v2022_v59 = vsel %vm3830_vm5, 0, %v3829_v3  ;;  %v2513_v44 = vsel %vm2505_vm3, %v2496_v26, %v2512_v50  ;;  %vm2504_vm6 = vcmp.lt.s32.totalorder %v2484_v16, 2  ;;  %v2515_v17 = vsel %vm2503_vm1, %v2493_v7, %v2496_v26 }
 0x289   :  { %v2023_v63 = vsub.s32 32, %v2022_v59  ;;  %v2027_v8 = vsub.s32 4294967266, %v2022_v59  ;;  %v2024_v34 = vshll.u32 %v5849_v43, %v2022_v59  ;;  %v2514_v46 = vsel %vm2504_vm6, %v2511_v60, %v2513_v44 }
 0x28a   :  { %v2516_v24 = vsel %vm2506_vm4, %v2502_v10, 1326507024  ;;  %v2587_v20 = vsel %vm2586_vm0, %v2585_v54, 0  ;;  %vm1946_vm7 = vcmp.eq.s32.totalorder %v5845_v32, 2  ;;  %v2510_v38 = vsel %vm2504_vm6, %v2507_v41, %v2509_v61 }
 0x28b   :  { %v2025_v13 = vshrl.u32 %v2007_v52, %v2023_v63  ;;  %v2028_v48 = vadd.s32 127, %v2027_v8  ;;  %v2517_v56 = vsel %vm2505_vm3, %v2499_v5, %v2516_v24  ;;  %vm1943_vm8 = vcmp.eq.s32.totalorder %v5845_v32, 0 }
 0x28c   :  { %v2518_v53 = vsel %vm2504_vm6, %v2515_v17, %v2517_v56  ;;  %v5891_v42 = vmul.u32.u64.low %v5851_v49, %v2514_v46  ;;  %v5892_v21 = vmul.u32.u64.high %v5851_v49, %v2514_v46, %v5891_v42  ;;  %v2589_v43 = vand.u32 31, %v2587_v20 }
 0x28d   :  { %vm1942_vm10 = vcmp.lt.s32.totalorder %v5845_v32, 2  ;;  %vm5898_vm11 = vcmp.le.f32.partialorder %v1951_v29, 0.7853982  ;;  %v2026_v52 = vor.u32 %v2025_v13, %v2024_v34  ;;  %v2029_v16 = vshll.u32 %v2028_v48, 23 }
 0x28e   :  { %v5903_v19 = vmul.u32.u64.low %v5851_v49, %v2518_v53  ;;  %v5904_v40 = vmul.u32.u64.high %v5851_v49, %v2518_v53, %v5903_v19  ;;  %vm1939_vm9 = vweird.f32 %v5651_v35  ;;  %v5910_v23 = vsel %vm1953_vm2, %v2037_v27, %v5837_v14 }
 0x28f   :  { %v2526_v28 = vmul.u32 %v5851_v49, %v2510_v38  ;;  %v2583_v29 = vor.u32 8388608, %v5855_v33  ;;  %v2590_v0 = vsub.s32 32, %v2589_v43  ;;  %v2030_v62 = vor.u32 4788187, %v2029_v16 }
 0x290   :  { %v5914_v51 = vshrl.u32 %v2587_v20, 5  ;;  %v2592_v37 = vshll.u32 %v6974_v47, %v2589_v43  ;;  %v2595_v11 = vshll.u32 %v6975_v55, %v2589_v43  ;;  %v2529_v2 = vadd.s32 1, %v5892_v21 }
 0x291   :  { %v2593_v7 = vshrl.u32 %v6975_v55, %v2590_v0  ;;  %v2596_v9 = vshrl.u32 %v6976_v18, %v2590_v0  ;;  %v2598_v14 = vshll.u32 %v6976_v18, %v2589_v43  ;;  %v2031_v49 = vand.u32 2147483647, %v2030_v62 }
 0x292   :  { %v4106_v22 = vpop.eup %4105  ;;  %v2033_v1 = vcvt.s32.f32 %v2026_v52  ;;  %vm2528_vm12 = vc.u32 %v5904_v40, %v5891_v42  ;;  %v2599_v33 = vshrl.u32 %v6977_v31, %v2590_v0  ;;  %v2601_v3 = vshll.u32 %v6977_v31, %v2589_v43 }
 0x293   :  { %v4108_v27 = vpop.eup %4107  ;;  %v1947_v26 = vxor.u32 2147483648, %v4106_v22  ;;  %v2530_v5 = vsel %vm2528_vm12, %v2529_v2, %v5892_v21  ;;  %v2604_v12 = vshll.u32 %v6978_v25, %v2589_v43  ;;  %v2594_v10 = vor.u32 %v2593_v7, %v2592_v37 }
 0x294   :  { %v1944_v6 = vxor.u32 2147483648, %v4108_v27  ;;  %v2034_v15 = vmul.f32 %v2033_v1, %v2031_v49  ;;  %v2531_v60 = vadd.s32 %v2530_v5, %v2526_v28  ;;  %v2597_v50 = vor.u32 %v2596_v9, %v2595_v11  ;;  %v333_v1 = vpop.permute.xlu1 %332  ;;  %v7033_v5 = vld [vmem:[#allocation8_spill] sm:$0xff] }
 0x295   :  { %v1948_v30 = vsel %vm1946_vm7, %v1947_v26, %v4108_v27  ;;  %v2602_v59 = vshrl.u32 %v6978_v25, %v2590_v0  ;;  %v2605_v41 = vshrl.u32 %v6983_v58, %v2590_v0  ;;  %v2600_v8 = vor.u32 %v2599_v33, %v2598_v14  ;;  %v7031_v33 = vld [vmem:[#allocation7_spill] sm:$0xff]  ;;  %v7032_v27 = vld [vmem:[#allocation24_spill] sm:$0xff] }
 0x296   :  { %v1945_v61 = vsel %vm1943_vm8, %v4106_v22, %v1944_v6  ;;  %v2035_v44 = vxor.u32 2147483648, %v2034_v15  ;;  %v2532_v63 = vadd.s32 536870912, %v2531_v60  ;;  %v2040_v34 = vsel %vm5898_vm11, 0, %v5910_v23  ;;  %v7035_v6 = vld [vmem:[#allocation15_spill] sm:$0xff] }
 0x297   :  { %v1949_v17 = vsel %vm1942_vm10, %v1945_v61, %v1948_v30  ;;  %v2603_v46 = vor.u32 %v2602_v59, %v2601_v3  ;;  %v2623_v24 = vshll.u32 %v2583_v29, 8  ;;  %v2606_v38 = vor.u32 %v2605_v41, %v2604_v12  ;;  %v7034_v3 = vld [vmem:[#allocation25_spill] sm:$0xff]  ;;  %v7038_v30 = vld [vmem:[#allocation31_spill] sm:$0xff]  ;;  %v7040_v41 = vld [vmem:[#allocation28_spill] sm:$0xff] }
 0x298   :  { %v1950_v20 = vsel %vm1939_vm9, nan, %v1949_v17  ;;  %v2036_v13 = vsel %vm1953_vm2, %v2035_v44, %v2034_v15  ;;  %v2533_v48 = vshrl.u32 %v2532_v63, 30  ;;  %v2591_v32 = vshrl.u32 %v6974_v47, %v2590_v0  ;;  %v7036_v15 = vld [vmem:[#allocation30_spill] sm:$0xff]  ;;  %v7039_v59 = vld [vmem:[#allocation9_spill] sm:$0xff] }
 0x299   :  { %v2039_v56 = vsel %vm5898_vm11, %v5672_v39, %v2036_v13  ;;  %3733 = vst [vmem:[#allocation2 + $0x70] sm:$0xff] %v1950_v20  ;;  %vm2607_vm13 = vcmp.lt.s32.totalorder %v5914_v51, 1  ;;  %vm2610_vm14 = vcmp.lt.s32.totalorder %v5914_v51, 4  ;;  %vm2609_vm15 = vcmp.lt.s32.totalorder %v5914_v51, 3  ;;  %v7041_v44 = vld [vmem:[#allocation10_spill] sm:$0xff]  ;;  %v7042_v63 = vld [vmem:[#allocation29_spill] sm:$0xff] }
 0x29a   :  { %4109 = vcosq.f32 %v2039_v56  ;;  %v2534_v53 = vshll.u32 %v2533_v48, 30  ;;  %v2612_v35 = vsel %vm2610_vm14, %v2600_v8, 2102212464  ;;  %v2615_v21 = vsel %vm2607_vm13, %v2594_v10, %v2597_v50 }
 0x29b   :  { %4111 = vsinq.f32 %v2039_v56  ;;  %v2616_v43 = vsel %vm2610_vm14, %v2603_v46, 920167782  ;;  %v2619_v52 = vsel %vm2607_vm13, %v2597_v50, %v2600_v8  ;;  %vm2608_vm0 = vcmp.lt.s32.totalorder %v5914_v51, 2 }
 0x29c   :  { %v5950_v16 = vsub.s32 %v2531_v60, %v2534_v53  ;;  %v2617_v54 = vsel %vm2609_vm15, %v2600_v8, %v2616_v43  ;;  %v2620_v19 = vsel %vm2610_vm14, %v2606_v38, 1326507024  ;;  %v2611_v23 = vsel %vm2607_vm13, %v2591_v32, %v2594_v10  ;;  %v7037_v10 = vld [vmem:[#allocation16_spill] sm:$0xff] }
 0x29d   :  { %v2613_v28 = vsel %vm2609_vm15, %v2597_v50, %v2612_v35  ;;  %v2618_v29 = vsel %vm2608_vm0, %v2615_v21, %v2617_v54  ;;  %v2621_v0 = vsel %vm2609_vm15, %v2603_v46, %v2620_v19  ;;  %v2044_v62 = vadd.s32 3, %v2040_v34 }
 0x29e   :  { %v2537_v37 = vsub.s32 0, %v5950_v16  ;;  %v2557_v11 = vsub.s32 4, %v2533_v48  ;;  %v2622_v2 = vsel %vm2608_vm0, %v2619_v52, %v2621_v0  ;;  %v2614_v49 = vsel %vm2608_vm0, %v2611_v23, %v2613_v28 }
 0x29f   :  { %v5954_v7 = vmul.u32.u64.low %v2623_v24, %v2622_v2  ;;  %v5955_v9 = vmul.u32.u64.high %v2623_v24, %v2622_v2, %v5954_v7  ;;  %v5957_v14 = vmul.u32.u64.low %v2623_v24, %v2618_v29  ;;  %v5958_v22 = vmul.u32.u64.high %v2623_v24, %v2618_v29, %v5957_v14 }
 0x2a0   :  { %v3848_v51 = vmin.u32 %v2537_v37, %v5950_v16  ;;  %v281_v26 = vadd.f32 %v7032_v27, %v7031_v33  ;;  %v282_v12 = vadd.f32 %v7034_v3, %v7033_v5  ;;  %v5968_v60 = vadd.f32 %v7036_v15, %v7035_v6 }
 0x2a1   :  { %v5972_v50 = vadd.f32 %v7038_v30, %v7037_v10  ;;  %v5976_v61 = vadd.f32 %v7040_v41, %v7039_v59  ;;  %v5980_v8 = vadd.f32 %v7042_v63, %v7041_v44  ;;  %v2045_v17 = vand.u32 3, %v2044_v62 }
 0x2a2   :  { %v2539_v34 = vclz %v3848_v51  ;;  %vm2632_vm1 = vc.u32 %v5955_v9, %v5957_v14  ;;  %v2633_v46 = vadd.s32 1, %v5958_v22  ;;  %v5985_v20 = vadd.f32 %v333_v1, %v281_v26 }
 0x2a3   :  { %vm2473_vm2 = vcmp.lt.s32.totalorder %v5788_v45, 0  ;;  %v2630_v38 = vmul.u32 %v2623_v24, %v2614_v49  ;;  %vm2047_vm3 = vcmp.eq.s32.totalorder %v2045_v17, 0  ;;  %vm5995_vm4 = vcmp.le.f32.partialorder %v2471_v4, 0.7853982 }
 0x2a4   :  { %v3849_v13 = vadd.s32 4294967294, %v2539_v34  ;;  %v2558_v56 = vsel %vm2473_vm2, %v2557_v11, %v2533_v48  ;;  %v2634_v32 = vsel %vm2632_vm1, %v2633_v46, %v5958_v22  ;;  %v2263_v53 = vand.u32 2147483647, %v5985_v20 }
 0x2a5   :  { %v2266_v35 = vand.u32 2139095040, %v5985_v20  ;;  %v2635_v43 = vadd.s32 %v2634_v32, %v2630_v38  ;;  %vm2050_vm6 = vcmp.eq.s32.totalorder %v2045_v17, 2  ;;  %v2527_v24 = vadd.s32 %v5891_v42, %v5904_v40 }
 0x2a6   :  { %vm3850_vm5 = vcmp.lt.s32.totalorder %v3849_v13, 0  ;;  %v2560_v0 = vsel %vm5995_vm4, 0, %v2558_v56  ;;  %v2270_v11 = vand.u32 8388607, %v2263_v53  ;;  %vm2046_vm7 = vcmp.lt.s32.totalorder %v2045_v17, 2 }
 0x2a7   :  { %v4110_v52 = vpop.eup %4109  ;;  %v2542_v48 = vsel %vm3850_vm5, 0, %v3849_v13  ;;  %v2267_v54 = vshrl.u32 %v2266_v35, 23  ;;  %v2636_v62 = vadd.s32 536870912, %v2635_v43  ;;  %vm2043_vm8 = vweird.f32 %v5672_v39 }
 0x2a8   :  { %v4112_v19 = vpop.eup %4111  ;;  %v2051_v23 = vxor.u32 2147483648, %v4110_v52  ;;  %v2543_v28 = vsub.s32 32, %v2542_v48  ;;  %v2547_v29 = vsub.s32 4294967266, %v2542_v48  ;;  %v2544_v7 = vshll.u32 %v5950_v16, %v2542_v48 }
 0x2a9   :  { %v2048_v4 = vxor.u32 2147483648, %v4112_v19  ;;  %v3839_v37 = vadd.s32 4294967169, %v2267_v54  ;;  %v2637_v51 = vshrl.u32 %v2636_v62, 30  ;;  %v2564_v3 = vadd.s32 3, %v2560_v0 }
 0x2aa   :  { %v2052_v2 = vsel %vm2050_vm6, %v2051_v23, %v4112_v19  ;;  %v2545_v22 = vshrl.u32 %v2527_v24, %v2543_v28  ;;  %v2548_v42 = vadd.s32 127, %v2547_v29  ;;  %v6008_v10 = vadd.f32 %v333_v1, %v282_v12 }
 0x2ab   :  { %v2049_v40 = vsel %vm2047_vm3, %v4110_v52, %v2048_v4  ;;  %v2273_v49 = vadd.s32 1, %v3839_v37  ;;  %v2638_v6 = vshll.u32 %v2637_v51, 30  ;;  %v2271_v16 = vor.u32 8388608, %v2270_v11 }
 0x2ac   :  { %v2053_v33 = vsel %vm2046_vm7, %v2049_v40, %v2052_v2  ;;  %v2546_v27 = vor.u32 %v2545_v22, %v2544_v7  ;;  %v2549_v26 = vshll.u32 %v2548_v42, 23  ;;  %v2661_v41 = vsub.s32 4, %v2637_v51 }
 0x2ad   :  { %v2054_v5 = vsel %vm2043_vm8, nan, %v2053_v33  ;;  %vm2274_vm10 = vcmp.gt.s32.totalorder %v2273_v49, 0  ;;  %v6010_v59 = vsub.s32 %v2635_v43, %v2638_v6  ;;  %vm2577_vm11 = vcmp.lt.s32.totalorder %v5804_v57, 0 }
 0x2ae   :  { %3734 = vst [vmem:[#allocation2 + $0x78] sm:$0xff] %v2054_v5  ;;  %v2550_v15 = vor.u32 4788187, %v2549_v26  ;;  %v2275_v30 = vsel %vm2274_vm10, %v2273_v49, 0  ;;  %v2553_v17 = vcvt.s32.f32 %v2546_v27  ;;  %v6013_v39 = vand.u32 3, %v2564_v3 }
 0x2af   :  { %v2277_v44 = vand.u32 31, %v2275_v30  ;;  %v2631_v34 = vadd.s32 %v5957_v14, %v5955_v9  ;;  %v2641_v46 = vsub.s32 0, %v6010_v59  ;;  %v6018_v12 = vshll.u32 %v2271_v16, 8 }
 0x2b0   :  { %v2551_v63 = vand.u32 2147483647, %v2550_v15  ;;  %v2367_v38 = vand.u32 2147483647, %v6008_v10  ;;  %v2370_v56 = vand.u32 2139095040, %v6008_v10  ;;  %v6025_v35 = vsel %vm2577_vm11, %v2661_v41, %v2637_v51 }
 0x2b1   :  { %v2278_v13 = vsub.s32 32, %v2277_v44  ;;  %v3852_v32 = vmin.u32 %v2641_v46, %v6010_v59  ;;  %v2280_v43 = vshll.u32 %v6974_v47, %v2277_v44  ;;  %v2276_v19 = vshrl.u32 %v2275_v30, 5 }
 0x2b2   :  { %v2554_v1 = vmul.f32 %v2553_v17, %v2551_v63  ;;  %v2283_v23 = vshll.u32 %v6975_v55, %v2277_v44  ;;  %v2286_v28 = vshll.u32 %v6976_v18, %v2277_v44  ;;  %v2289_v4 = vshll.u32 %v6977_v31, %v2277_v44 }
 0x2b3   :  { %v2281_v9 = vshrl.u32 %v6975_v55, %v2278_v13  ;;  %v2284_v52 = vshrl.u32 %v6976_v18, %v2278_v13  ;;  %v2287_v24 = vshrl.u32 %v6977_v31, %v2278_v13  ;;  %v2290_v48 = vshrl.u32 %v6978_v25, %v2278_v13 }
 0x2b4   :  { %v2555_v14 = vxor.u32 2147483648, %v2554_v1  ;;  %v2643_v54 = vclz %v3852_v32  ;;  %v2371_v62 = vshrl.u32 %v2370_v56, 23  ;;  %v2292_v42 = vshll.u32 %v6978_v25, %v2277_v44 }
 0x2b5   :  { %v2282_v0 = vor.u32 %v2281_v9, %v2280_v43  ;;  %v2285_v2 = vor.u32 %v2284_v52, %v2283_v23  ;;  %v2288_v7 = vor.u32 %v2287_v24, %v2286_v28  ;;  %v2291_v22 = vor.u32 %v2290_v48, %v2289_v4  ;;  %v6052_v43 = vpop.permute.xlu0 %344 }
 0x2b6   :  { %v2556_v29 = vsel %vm2473_vm2, %v2555_v14, %v2554_v1  ;;  %v3853_v11 = vadd.s32 4294967294, %v2643_v54  ;;  %v2293_v40 = vshrl.u32 %v6983_v58, %v2278_v13  ;;  %v2279_v51 = vshrl.u32 %v6974_v47, %v2278_v13 }
 0x2b7   :  { %v2559_v37 = vsel %vm5995_vm4, %v5788_v45, %v2556_v29  ;;  %vm2295_vm12 = vcmp.lt.s32.totalorder %v2276_v19, 1  ;;  %vm2296_vm13 = vcmp.lt.s32.totalorder %v2276_v19, 2  ;;  %vm2298_vm14 = vcmp.lt.s32.totalorder %v2276_v19, 4 }
 0x2b8   :  { %4113 = vcosq.f32 %v2559_v37  ;;  %vm3854_vm9 = vcmp.lt.s32.totalorder %v3853_v11, 0  ;;  %v2294_v33 = vor.u32 %v2293_v40, %v2292_v42  ;;  %vm2297_vm15 = vcmp.lt.s32.totalorder %v2276_v19, 3 }
 0x2b9   :  { %4115 = vsinq.f32 %v2559_v37  ;;  %v2646_v49 = vsel %vm3854_vm9, 0, %v3853_v11  ;;  %v2300_v26 = vsel %vm2298_vm14, %v2288_v7, 2102212464  ;;  %v2303_v3 = vsel %vm2295_vm12, %v2282_v0, %v2285_v2 }
 0x2ba   :  { %v2647_v21 = vsub.s32 32, %v2646_v49  ;;  %v2651_v27 = vsub.s32 4294967266, %v2646_v49  ;;  %v2648_v5 = vshll.u32 %v6010_v59, %v2646_v49  ;;  %v2304_v6 = vsel %vm2298_vm14, %v2291_v22, 920167782 }
 0x2bb   :  { %v2307_v15 = vsel %vm2295_vm12, %v2285_v2, %v2288_v7  ;;  %v2305_v41 = vsel %vm2297_vm15, %v2288_v7, %v2304_v6  ;;  %v2308_v44 = vsel %vm2298_vm14, %v2294_v33, 1326507024  ;;  %v2299_v63 = vsel %vm2295_vm12, %v2279_v51, %v2282_v0 }
 0x2bc   :  { %v2649_v16 = vshrl.u32 %v2631_v34, %v2647_v21  ;;  %v2652_v30 = vadd.s32 127, %v2651_v27  ;;  %v2306_v17 = vsel %vm2296_vm13, %v2303_v3, %v2305_v41  ;;  %v2309_v46 = vsel %vm2297_vm15, %v2291_v22, %v2308_v44 }
 0x2bd   :  { %v3843_v13 = vadd.s32 4294967169, %v2371_v62  ;;  %v2301_v59 = vsel %vm2297_vm15, %v2285_v2, %v2300_v26  ;;  %v2310_v32 = vsel %vm2296_vm13, %v2307_v15, %v2309_v46  ;;  %vm2563_vm0 = vweird.f32 %v5788_v45 }
 0x2be   :  { %v2650_v1 = vor.u32 %v2649_v16, %v2648_v5  ;;  %v2653_v56 = vshll.u32 %v2652_v30, 23  ;;  %v6055_v34 = vmul.u32.u64.low %v6018_v12, %v2310_v32  ;;  %v6056_v9 = vmul.u32.u64.high %v6018_v12, %v2310_v32, %v6055_v34 }
 0x2bf   :  { %v6059_v14 = vmul.u32.u64.low %v6018_v12, %v2306_v17  ;;  %v6060_v52 = vmul.u32.u64.high %v6018_v12, %v2306_v17, %v6059_v14  ;;  %v2377_v48 = vadd.s32 1, %v3843_v13  ;;  %vm2566_vm1 = vcmp.lt.s32.totalorder %v6013_v39, 2 }
 0x2c0   :  { %v2654_v24 = vor.u32 4788187, %v2653_v56  ;;  %vm6067_vm2 = vcmp.le.f32.partialorder %v2575_v36, 0.7853982  ;;  %v2302_v23 = vsel %vm2296_vm13, %v2299_v63, %v2301_v59  ;;  %v6074_v28 = vadd.f32 %v6052_v43, %v5968_v60 }
 0x2c1   :  { %v2657_v0 = vcvt.s32.f32 %v2650_v1  ;;  %v2664_v4 = vsel %vm6067_vm2, 0, %v6025_v35  ;;  %vm2378_vm3 = vcmp.gt.s32.totalorder %v2377_v48, 0  ;;  %vm2320_vm4 = vc.u32 %v6056_v9, %v6059_v14 }
 0x2c2   :  { %v2655_v29 = vand.u32 2147483647, %v2654_v24  ;;  %v2321_v36 = vadd.s32 1, %v6060_v52  ;;  %v2374_v19 = vand.u32 8388607, %v2367_v38  ;;  %v2379_v62 = vsel %vm2378_vm3, %v2377_v48, 0 }
 0x2c3   :  { %vm2567_vm5 = vcmp.eq.s32.totalorder %v6013_v39, 0  ;;  %v2318_v11 = vmul.u32 %v6018_v12, %v2302_v23  ;;  %v2381_v2 = vand.u32 31, %v2379_v62  ;;  %vm2570_vm6 = vcmp.eq.s32.totalorder %v6013_v39, 2 }
 0x2c4   :  { %v2658_v60 = vmul.f32 %v2657_v0, %v2655_v29  ;;  %v2668_v22 = vadd.s32 3, %v2664_v4  ;;  %v2322_v42 = vsel %vm2320_vm4, %v2321_v36, %v6060_v52  ;;  %v2375_v27 = vor.u32 8388608, %v2374_v19 }
 0x2c5   :  { %v4114_v37 = vpop.eup %4113  ;;  %v2323_v49 = vadd.s32 %v2322_v42, %v2318_v11  ;;  %v2382_v33 = vsub.s32 32, %v2381_v2  ;;  %v2384_v26 = vshll.u32 %v6974_v47, %v2381_v2  ;;  %v2890_v5 = vand.u32 2139095040, %v6074_v28 }
 0x2c6   :  { %v4116_v7 = vpop.eup %4115  ;;  %v2571_v35 = vxor.u32 2147483648, %v4114_v37  ;;  %v2659_v51 = vxor.u32 2147483648, %v2658_v60  ;;  %v2387_v15 = vshll.u32 %v6975_v55, %v2381_v2  ;;  %v2380_v39 = vshrl.u32 %v2379_v62, 5 }
 0x2c7   :  { %v2568_v40 = vxor.u32 2147483648, %v4116_v7  ;;  %v2324_v6 = vadd.s32 536870912, %v2323_v49  ;;  %v2385_v41 = vshrl.u32 %v6975_v55, %v2382_v33  ;;  %v2388_v44 = vshrl.u32 %v6976_v18, %v2382_v33 }
 0x2c8   :  { %v2572_v21 = vsel %vm2570_vm6, %v2571_v35, %v4116_v7  ;;  %v2660_v3 = vsel %vm2577_vm11, %v2659_v51, %v2658_v60  ;;  %v2391_v46 = vshrl.u32 %v6977_v31, %v2382_v33  ;;  %v2390_v1 = vshll.u32 %v6976_v18, %v2381_v2 }
 0x2c9   :  { %v2569_v12 = vsel %vm2567_vm5, %v4114_v37, %v2568_v40  ;;  %v2663_v30 = vsel %vm6067_vm2, %v5804_v57, %v2660_v3  ;;  %v6104_v17 = vshrl.u32 %v2324_v6, 30  ;;  %v2386_v13 = vor.u32 %v2385_v41, %v2384_v26 }
 0x2ca   :  { %v2573_v16 = vsel %vm2566_vm1, %v2569_v12, %v2572_v21  ;;  %4117 = vcosq.f32 %v2663_v30  ;;  %v2389_v59 = vor.u32 %v2388_v44, %v2387_v15  ;;  %v2393_v32 = vshll.u32 %v6977_v31, %v2381_v2 }
 0x2cb   :  { %v2574_v63 = vsel %vm2563_vm0, nan, %v2573_v16  ;;  %4119 = vsinq.f32 %v2663_v30  ;;  %v2326_v56 = vshll.u32 %v6104_v17, 30  ;;  %v2394_v34 = vshrl.u32 %v6978_v25, %v2382_v33 }
 0x2cc   :  { %3739 = vst [vmem:[#allocation2 + $0xa0] sm:$0xff] %v2574_v63  ;;  %v2396_v45 = vshll.u32 %v6978_v25, %v2381_v2  ;;  %v2397_v52 = vshrl.u32 %v6983_v58, %v2382_v33  ;;  %v2669_v24 = vand.u32 3, %v2668_v22  ;;  %v2392_v54 = vor.u32 %v2391_v46, %v2390_v1 }
 0x2cd   :  { %v6113_v48 = vsub.s32 %v2323_v49, %v2326_v56  ;;  %v2395_v23 = vor.u32 %v2394_v34, %v2393_v32  ;;  %vm2399_vm7 = vcmp.lt.s32.totalorder %v2380_v39, 1  ;;  %v2415_v0 = vshll.u32 %v2375_v27, 8 }
 0x2ce   :  { %v2398_v29 = vor.u32 %v2397_v52, %v2396_v45  ;;  %v2891_v4 = vshrl.u32 %v2890_v5, 23  ;;  %vm2265_vm8 = vcmp.lt.s32.totalorder %v5985_v20, 0  ;;  %v2383_v19 = vshrl.u32 %v6974_v47, %v2382_v33 }
 0x2cf   :  { %v2329_v36 = vsub.s32 0, %v6113_v48  ;;  %vm2402_vm10 = vcmp.lt.s32.totalorder %v2380_v39, 4  ;;  %v2407_v62 = vsel %vm2399_vm7, %v2386_v13, %v2389_v59  ;;  %vm2400_vm11 = vcmp.lt.s32.totalorder %v2380_v39, 2 }
 0x2d0   :  { %vm2401_vm9 = vcmp.lt.s32.totalorder %v2380_v39, 3  ;;  %v2408_v37 = vsel %vm2402_vm10, %v2395_v23, 920167782  ;;  %v2412_v60 = vsel %vm2402_vm10, %v2398_v29, 1326507024  ;;  %v2411_v35 = vsel %vm2399_vm7, %v2389_v59, %v2392_v54 }
 0x2d1   :  { %v3840_v11 = vmin.u32 %v2329_v36, %v6113_v48  ;;  %v2404_v2 = vsel %vm2402_vm10, %v2392_v54, 2102212464  ;;  %v2409_v7 = vsel %vm2401_vm9, %v2392_v54, %v2408_v37  ;;  %v2413_v42 = vsel %vm2401_vm9, %v2395_v23, %v2412_v60 }
 0x2d2   :  { %v2410_v22 = vsel %vm2400_vm11, %v2407_v62, %v2409_v7  ;;  %v2887_v40 = vand.u32 2147483647, %v6074_v28  ;;  %v3863_v51 = vadd.s32 4294967169, %v2891_v4  ;;  %vm2667_vm12 = vweird.f32 %v5804_v57 }
 0x2d3   :  { %vm2670_vm13 = vcmp.lt.s32.totalorder %v2669_v24, 2  ;;  %v2331_v49 = vclz %v3840_v11  ;;  %v2349_v33 = vsub.s32 4, %v6104_v17  ;;  %v2403_v21 = vsel %vm2399_vm7, %v2383_v19, %v2386_v13 }
 0x2d4   :  { %v2405_v27 = vsel %vm2401_vm9, %v2389_v59, %v2404_v2  ;;  %v2414_v26 = vsel %vm2400_vm11, %v2411_v35, %v2413_v42  ;;  %v6130_v5 = vmul.u32.u64.low %v2415_v0, %v2410_v22  ;;  %v6131_v12 = vmul.u32.u64.high %v2415_v0, %v2410_v22, %v6130_v5 }
 0x2d5   :  { %v3841_v3 = vadd.s32 4294967294, %v2331_v49  ;;  %v6134_v6 = vmul.u32.u64.low %v2415_v0, %v2414_v26  ;;  %v6135_v15 = vmul.u32.u64.high %v2415_v0, %v2414_v26, %v6134_v6  ;;  %v2897_v16 = vadd.s32 1, %v3863_v51 }
 0x2d6   :  { %vm2671_vm14 = vcmp.eq.s32.totalorder %v2669_v24, 0  ;;  %vm2674_vm15 = vcmp.eq.s32.totalorder %v2669_v24, 2  ;;  %v2319_v41 = vadd.s32 %v6059_v14, %v6056_v9  ;;  %v2894_v44 = vand.u32 8388607, %v2887_v40 }
 0x2d7   :  { %v4118_v30 = vpop.eup %4117  ;;  %vm3842_vm0 = vcmp.lt.s32.totalorder %v3841_v3, 0  ;;  %v2406_v13 = vsel %vm2400_vm11, %v2403_v21, %v2405_v27  ;;  %vm2898_vm1 = vcmp.gt.s32.totalorder %v2897_v16, 0  ;;  %v6145_v59 = vsel %vm2265_vm8, %v2349_v33, %v6104_v17 }
 0x2d8   :  { %v4120_v63 = vpop.eup %4119  ;;  %v2675_v46 = vxor.u32 2147483648, %v4118_v30  ;;  %v2334_v56 = vsel %vm3842_vm0, 0, %v3841_v3  ;;  %v2425_v32 = vadd.s32 1, %v6131_v12  ;;  %v2899_v45 = vsel %vm2898_vm1, %v2897_v16, 0 }
 0x2d9   :  { %v2672_v1 = vxor.u32 2147483648, %v4120_v63  ;;  %v2335_v9 = vsub.s32 32, %v2334_v56  ;;  %v2339_v14 = vsub.s32 4294967266, %v2334_v56  ;;  %v2336_v54 = vshll.u32 %v6113_v48, %v2334_v56 }
 0x2da   :  { %v2676_v34 = vsel %vm2674_vm15, %v2675_v46, %v4120_v63  ;;  %v2422_v39 = vmul.u32 %v2415_v0, %v2406_v13  ;;  %vm2424_vm2 = vc.u32 %v6135_v15, %v6130_v5  ;;  %v2901_v62 = vand.u32 31, %v2899_v45 }
 0x2db   :  { %v2673_v52 = vsel %vm2671_vm14, %v4118_v30, %v2672_v1  ;;  %v2337_v29 = vshrl.u32 %v2319_v41, %v2335_v9  ;;  %v2340_v4 = vadd.s32 127, %v2339_v14  ;;  %v2426_v17 = vsel %vm2424_vm2, %v2425_v32, %v6131_v12 }
 0x2dc   :  { %v2677_v23 = vsel %vm2670_vm13, %v2673_v52, %v2676_v34  ;;  %v2427_v19 = vadd.s32 %v2426_v17, %v2422_v39  ;;  %vm6158_vm3 = vcmp.le.f32.partialorder %v2263_v53, 0.7853982  ;;  %v6164_v24 = vadd.f32 %v6052_v43, %v5972_v50 }
 0x2dd   :  { %v2678_v36 = vsel %vm2667_vm12, nan, %v2677_v23  ;;  %v2338_v0 = vor.u32 %v2337_v29, %v2336_v54  ;;  %v2341_v37 = vshll.u32 %v2340_v4, 23  ;;  %v2352_v57 = vsel %vm6158_vm3, 0, %v6145_v59 }
 0x2de   :  { %3740 = vst [vmem:[#allocation2 + $0xa8] sm:$0xff] %v2678_v36  ;;  %v2428_v60 = vadd.s32 536870912, %v2427_v19  ;;  %v2895_v11 = vor.u32 8388608, %v2894_v44  ;;  %v2902_v2 = vsub.s32 32, %v2901_v62  ;;  %v2900_v35 = vshrl.u32 %v2899_v45, 5 }
 0x2df   :  { %v2342_v7 = vor.u32 4788187, %v2341_v37  ;;  %v2904_v53 = vshll.u32 %v6974_v47, %v2901_v62  ;;  %v2907_v22 = vshll.u32 %v6975_v55, %v2901_v62  ;;  %v2345_v42 = vcvt.s32.f32 %v2338_v0 }
 0x2e0   :  { %v2429_v51 = vshrl.u32 %v2428_v60, 30  ;;  %v2905_v49 = vshrl.u32 %v6975_v55, %v2902_v2  ;;  %v2908_v50 = vshrl.u32 %v6976_v18, %v2902_v2  ;;  %v2911_v33 = vshrl.u32 %v6977_v31, %v2902_v2 }
 0x2e1   :  { %v2343_v43 = vand.u32 2147483647, %v2342_v7  ;;  %v2913_v21 = vshll.u32 %v6977_v31, %v2901_v62  ;;  %v2914_v27 = vshrl.u32 %v6978_v25, %v2902_v2  ;;  %v2910_v6 = vshll.u32 %v6976_v18, %v2901_v62 }
 0x2e2   :  { %v2430_v26 = vshll.u32 %v2429_v51, 30  ;;  %v2906_v12 = vor.u32 %v2905_v49, %v2904_v53  ;;  %v2909_v3 = vor.u32 %v2908_v50, %v2907_v22  ;;  %v2916_v41 = vshll.u32 %v6978_v25, %v2901_v62 }
 0x2e3   :  { %v2346_v16 = vmul.f32 %v2345_v42, %v2343_v43  ;;  %v2915_v30 = vor.u32 %v2914_v27, %v2913_v21  ;;  %v2917_v44 = vshrl.u32 %v6983_v58, %v2902_v2  ;;  %v2912_v46 = vor.u32 %v2911_v33, %v2910_v6  ;;  %v6216_v21 = vpop.permute.xlu1 %340 }
 0x2e4   :  { %v6179_v63 = vsub.s32 %v2427_v19, %v2430_v26  ;;  %v2935_v13 = vshll.u32 %v2895_v11, 8  ;;  %v2994_v1 = vand.u32 2139095040, %v6164_v24  ;;  %vm2919_vm4 = vcmp.lt.s32.totalorder %v2900_v35, 1 }
 0x2e5   :  { %v2347_v56 = vxor.u32 2147483648, %v2346_v16  ;;  %v2918_v59 = vor.u32 %v2917_v44, %v2916_v41  ;;  %vm2920_vm5 = vcmp.lt.s32.totalorder %v2900_v35, 2  ;;  %vm2921_vm6 = vcmp.lt.s32.totalorder %v2900_v35, 3 }
 0x2e6   :  { %v2433_v32 = vsub.s32 0, %v6179_v63  ;;  %vm2922_vm7 = vcmp.lt.s32.totalorder %v2900_v35, 4  ;;  %v2927_v34 = vsel %vm2919_vm4, %v2906_v12, %v2909_v3  ;;  %v2453_v14 = vsub.s32 4, %v2429_v51 }
 0x2e7   :  { %v2348_v9 = vsel %vm2265_vm8, %v2347_v56, %v2346_v16  ;;  %v2903_v45 = vshrl.u32 %v6974_v47, %v2902_v2  ;;  %v2928_v52 = vsel %vm2922_vm7, %v2915_v30, 920167782  ;;  %v2924_v23 = vsel %vm2922_vm7, %v2912_v46, 2102212464 }
 0x2e8   :  { %v2351_v54 = vsel %vm6158_vm3, %v5985_v20, %v2348_v9  ;;  %v3844_v39 = vmin.u32 %v2433_v32, %v6179_v63  ;;  %v2929_v29 = vsel %vm2921_vm6, %v2912_v46, %v2928_v52  ;;  %v2931_v17 = vsel %vm2919_vm4, %v2909_v3, %v2912_v46 }
 0x2e9   :  { %4121 = vcosq.f32 %v2351_v54  ;;  %v2930_v4 = vsel %vm2920_vm5, %v2927_v34, %v2929_v29  ;;  %v2932_v36 = vsel %vm2922_vm7, %v2918_v59, 1326507024  ;;  %v2356_v19 = vadd.s32 3, %v2352_v57 }
 0x2ea   :  { %4123 = vsinq.f32 %v2351_v54  ;;  %v2435_v62 = vclz %v3844_v39  ;;  %v2923_v0 = vsel %vm2919_vm4, %v2903_v45, %v2906_v12  ;;  %v2925_v37 = vsel %vm2921_vm6, %v2909_v3, %v2924_v23 }
 0x2eb   :  { %v2933_v48 = vsel %vm2921_vm6, %v2915_v30, %v2932_v36  ;;  %v6197_v60 = vmul.u32.u64.low %v2935_v13, %v2930_v4  ;;  %v6198_v11 = vmul.u32.u64.high %v2935_v13, %v2930_v4, %v6197_v60  ;;  %vm2369_vm8 = vcmp.lt.s32.totalorder %v6008_v10, 0 }
 0x2ec   :  { %v3845_v2 = vadd.s32 4294967294, %v2435_v62  ;;  %v2934_v7 = vsel %vm2920_vm5, %v2931_v17, %v2933_v48  ;;  %v2995_v53 = vshrl.u32 %v2994_v1, 23  ;;  %vm6205_vm10 = vcmp.le.f32.partialorder %v2367_v38, 0.7853982 }
 0x2ed   :  { %v2454_v22 = vsel %vm2369_vm8, %v2453_v14, %v2429_v51  ;;  %v6211_v42 = vmul.u32.u64.low %v2935_v13, %v2934_v7  ;;  %v6212_v49 = vmul.u32.u64.high %v2935_v13, %v2934_v7, %v6211_v42  ;;  %v2926_v50 = vsel %vm2920_vm5, %v2923_v0, %v2925_v37 }
 0x2ee   :  { %vm3846_vm11 = vcmp.lt.s32.totalorder %v3845_v2, 0  ;;  %v2991_v43 = vand.u32 2147483647, %v6164_v24  ;;  %v3867_v33 = vadd.s32 4294967169, %v2995_v53  ;;  %v2357_v27 = vand.u32 3, %v2356_v19 }
 0x2ef   :  { %v2423_v38 = vadd.s32 %v6130_v5, %v6135_v15  ;;  %v2438_v26 = vsel %vm3846_vm11, 0, %v3845_v2  ;;  %v2945_v12 = vadd.s32 1, %v6198_v11  ;;  %v2456_v6 = vsel %vm6205_vm10, 0, %v2454_v22 }
 0x2f0   :  { %v2439_v3 = vsub.s32 32, %v2438_v26  ;;  %v2443_v51 = vsub.s32 4294967266, %v2438_v26  ;;  %v3001_v16 = vadd.s32 1, %v3867_v33  ;;  %v2440_v35 = vshll.u32 %v6179_v63, %v2438_v26 }
 0x2f1   :  { %v2942_v30 = vmul.u32 %v2935_v13, %v2926_v50  ;;  %vm2944_vm9 = vc.u32 %v6212_v49, %v6197_v60  ;;  %v6228_v41 = vadd.f32 %v6216_v21, %v5976_v61  ;;  %v2460_v46 = vadd.s32 3, %v2456_v6 }
 0x2f2   :  { %v2441_v5 = vshrl.u32 %v2423_v38, %v2439_v3  ;;  %v2444_v15 = vadd.s32 127, %v2443_v51  ;;  %v2946_v44 = vsel %vm2944_vm9, %v2945_v12, %v6198_v11  ;;  %vm3002_vm12 = vcmp.gt.s32.totalorder %v3001_v16, 0 }
 0x2f3   :  { %v2947_v1 = vadd.s32 %v2946_v44, %v2942_v30  ;;  %v3003_v56 = vsel %vm3002_vm12, %v3001_v16, 0  ;;  %v2998_v63 = vand.u32 8388607, %v2991_v43  ;;  %vm2355_vm13 = vweird.f32 %v5985_v20 }
 0x2f4   :  { %v2442_v59 = vor.u32 %v2441_v5, %v2440_v35  ;;  %v2445_v32 = vshll.u32 %v2444_v15, 23  ;;  %v3005_v13 = vand.u32 31, %v3003_v56  ;;  %v2682_v61 = vand.u32 2139095040, %v6228_v41 }
 0x2f5   :  { %v2948_v34 = vadd.s32 536870912, %v2947_v1  ;;  %vm2358_vm14 = vcmp.lt.s32.totalorder %v2357_v27, 2  ;;  %vm2359_vm15 = vcmp.eq.s32.totalorder %v2357_v27, 0  ;;  %vm2362_vm0 = vcmp.eq.s32.totalorder %v2357_v27, 2 }
 0x2f6   :  { %v4122_v9 = vpop.eup %4121  ;;  %v2446_v14 = vor.u32 4788187, %v2445_v32  ;;  %v3006_v45 = vsub.s32 32, %v3005_v13  ;;  %v6235_v39 = vand.u32 3, %v2460_v46  ;;  %v2449_v17 = vcvt.s32.f32 %v2442_v59 }
 0x2f7   :  { %v4124_v52 = vpop.eup %4123  ;;  %v2363_v54 = vxor.u32 2147483648, %v4122_v9  ;;  %v6237_v23 = vshrl.u32 %v2948_v34, 30  ;;  %v2999_v36 = vor.u32 8388608, %v2998_v63  ;;  %v2683_v37 = vshrl.u32 %v2682_v61, 23 }
 0x2f8   :  { %v2360_v29 = vxor.u32 2147483648, %v4124_v52  ;;  %v2447_v4 = vand.u32 2147483647, %v2446_v14  ;;  %v3009_v0 = vshrl.u32 %v6975_v55, %v3006_v45  ;;  %v3004_v2 = vshrl.u32 %v3003_v56, 5 }
 0x2f9   :  { %v2364_v19 = vsel %vm2362_vm0, %v2363_v54, %v4124_v52  ;;  %v2950_v62 = vshll.u32 %v6237_v23, 30  ;;  %v3012_v7 = vshrl.u32 %v6976_v18, %v3006_v45  ;;  %v3008_v42 = vshll.u32 %v6974_v47, %v3005_v13 }
 0x2fa   :  { %v2361_v48 = vsel %vm2359_vm15, %v4122_v9, %v2360_v29  ;;  %v2450_v11 = vmul.f32 %v2449_v17, %v2447_v4  ;;  %v3015_v50 = vshrl.u32 %v6977_v31, %v3006_v45  ;;  %v3011_v26 = vshll.u32 %v6975_v55, %v3005_v13 }
 0x2fb   :  { %v2365_v53 = vsel %vm2358_vm14, %v2361_v48, %v2364_v19  ;;  %v6244_v22 = vsub.s32 %v2947_v1, %v2950_v62  ;;  %v3014_v12 = vshll.u32 %v6976_v18, %v3005_v13  ;;  %v3010_v51 = vor.u32 %v3009_v0, %v3008_v42 }
 0x2fc   :  { %v2366_v33 = vsel %vm2355_vm13, nan, %v2365_v53  ;;  %v2451_v38 = vxor.u32 2147483648, %v2450_v11  ;;  %v3017_v27 = vshll.u32 %v6977_v31, %v3005_v13  ;;  %v3018_v6 = vshrl.u32 %v6978_v25, %v3006_v45 }
 0x2fd   :  { %3737 = vst [vmem:[#allocation2 + $0x90] sm:$0xff] %v2366_v33  ;;  %v2953_v3 = vsub.s32 0, %v6244_v22  ;;  %v3013_v35 = vor.u32 %v3012_v7, %v3011_v26  ;;  %v3020_v20 = vshll.u32 %v6978_v25, %v3005_v13  ;;  %v3021_v30 = vshrl.u32 %v6983_v58, %v3006_v45 }
 0x2fe   :  { %v2452_v16 = vsel %vm2369_vm8, %v2451_v38, %v2450_v11  ;;  %v3016_v44 = vor.u32 %v3015_v50, %v3014_v12  ;;  %v3019_v46 = vor.u32 %v3018_v6, %v3017_v27  ;;  %v3039_v56 = vshll.u32 %v2999_v36, 8 }
 0x2ff   :  { %v2455_v5 = vsel %vm6205_vm10, %v6008_v10, %v2452_v16  ;;  %v3864_v15 = vmin.u32 %v2953_v3, %v6244_v22  ;;  %v3022_v1 = vor.u32 %v3021_v30, %v3020_v20  ;;  %v3855_v59 = vadd.s32 4294967169, %v2683_v37 }
 0x300   :  { %4125 = vcosq.f32 %v2455_v5  ;;  %v3007_v63 = vshrl.u32 %v6974_v47, %v3006_v45  ;;  %vm3023_vm1 = vcmp.lt.s32.totalorder %v3004_v2, 1  ;;  %vm3024_vm2 = vcmp.lt.s32.totalorder %v3004_v2, 2 }
 0x301   :  { %4127 = vsinq.f32 %v2455_v5  ;;  %v2955_v32 = vclz %v3864_v15  ;;  %vm3025_vm3 = vcmp.lt.s32.totalorder %v3004_v2, 3  ;;  %vm3026_vm4 = vcmp.lt.s32.totalorder %v3004_v2, 4 }
 0x302   :  { %v3031_v13 = vsel %vm3023_vm1, %v3010_v51, %v3013_v35  ;;  %v3028_v57 = vsel %vm3026_vm4, %v3016_v44, 2102212464  ;;  %v3032_v61 = vsel %vm3026_vm4, %v3019_v46, 920167782  ;;  %v3035_v9 = vsel %vm3023_vm1, %v3013_v35, %v3016_v44 }
 0x303   :  { %v3865_v34 = vadd.s32 4294967294, %v2955_v32  ;;  %v3027_v14 = vsel %vm3023_vm1, %v3007_v63, %v3010_v51  ;;  %v3033_v52 = vsel %vm3025_vm3, %v3016_v44, %v3032_v61  ;;  %v3036_v54 = vsel %vm3026_vm4, %v3022_v1, 1326507024 }
 0x304   :  { %v2689_v29 = vadd.s32 1, %v3855_v59  ;;  %v3029_v4 = vsel %vm3025_vm3, %v3013_v35, %v3028_v57  ;;  %v3034_v17 = vsel %vm3024_vm2, %v3031_v13, %v3033_v52  ;;  %v3037_v36 = vsel %vm3025_vm3, %v3019_v46, %v3036_v54 }
 0x305   :  { %vm3866_vm5 = vcmp.lt.s32.totalorder %v3865_v34, 0  ;;  %v3038_v45 = vsel %vm3024_vm2, %v3035_v9, %v3037_v36  ;;  %v6266_v62 = vmul.u32.u64.low %v3039_v56, %v3034_v17  ;;  %v6267_v0 = vmul.u32.u64.high %v3039_v56, %v3034_v17, %v6266_v62 }
 0x306   :  { %v2958_v19 = vsel %vm3866_vm5, 0, %v3865_v34  ;;  %v2943_v37 = vadd.s32 %v6197_v60, %v6212_v49  ;;  %v2679_v7 = vand.u32 2147483647, %v6228_v41  ;;  %v3030_v53 = vsel %vm3024_vm2, %v3027_v14, %v3029_v4 }
 0x307   :  { %v2959_v48 = vsub.s32 32, %v2958_v19  ;;  %v2963_v11 = vsub.s32 4294967266, %v2958_v19  ;;  %v6274_v42 = vmul.u32.u64.low %v3039_v56, %v3038_v45  ;;  %v6275_v50 = vmul.u32.u64.high %v3039_v56, %v3038_v45, %v6274_v42 }
 0x308   :  { %vm2690_vm6 = vcmp.gt.s32.totalorder %v2689_v29, 0  ;;  %v2960_v33 = vshll.u32 %v6244_v22, %v2958_v19  ;;  %vm2459_vm7 = vweird.f32 %v6008_v10  ;;  %vm2889_vm8 = vcmp.lt.s32.totalorder %v6074_v28, 0 }
 0x309   :  { %v2961_v38 = vshrl.u32 %v2943_v37, %v2959_v48  ;;  %v2964_v26 = vadd.s32 127, %v2963_v11  ;;  %v2691_v12 = vsel %vm2690_vm6, %v2689_v29, 0  ;;  %v2973_v60 = vsub.s32 4, %v6237_v23 }
 0x30a   :  { %v3049_v49 = vadd.s32 1, %v6267_v0  ;;  %v2693_v3 = vand.u32 31, %v2691_v12  ;;  %vm2462_vm10 = vcmp.lt.s32.totalorder %v6235_v39, 2  ;;  %vm2463_vm11 = vcmp.eq.s32.totalorder %v6235_v39, 0 }
 0x30b   :  { %v2962_v2 = vor.u32 %v2961_v38, %v2960_v33  ;;  %v2965_v51 = vshll.u32 %v2964_v26, 23  ;;  %vm2466_vm9 = vcmp.eq.s32.totalorder %v6235_v39, 2  ;;  %v3046_v22 = vmul.u32 %v3039_v56, %v3030_v53 }
 0x30c   :  { %vm3048_vm12 = vc.u32 %v6275_v50, %v6266_v62  ;;  %v2694_v27 = vsub.s32 32, %v2693_v3  ;;  %vm6289_vm13 = vcmp.le.f32.partialorder %v2887_v40, 0.7853982  ;;  %v6296_v30 = vadd.f32 %v6216_v21, %v5980_v8 }
 0x30d   :  { %v4126_v6 = vpop.eup %4125  ;;  %v2966_v35 = vor.u32 4788187, %v2965_v51  ;;  %v3050_v20 = vsel %vm3048_vm12, %v3049_v49, %v6267_v0  ;;  %v2686_v5 = vand.u32 8388607, %v2679_v7  ;;  %v6303_v46 = vsel %vm2889_vm8, %v2973_v60, %v6237_v23 }
 0x30e   :  { %v4128_v15 = vpop.eup %4127  ;;  %v2467_v44 = vxor.u32 2147483648, %v4126_v6  ;;  %v3051_v40 = vadd.s32 %v3050_v20, %v3046_v22  ;;  %v6305_v1 = vshrl.u32 %v2691_v12, 5  ;;  %v2969_v32 = vcvt.s32.f32 %v2962_v2 }
 0x30f   :  { %v2464_v56 = vxor.u32 2147483648, %v4128_v15  ;;  %v2967_v59 = vand.u32 2147483647, %v2966_v35  ;;  %v2696_v63 = vshll.u32 %v6974_v47, %v2693_v3  ;;  %v2697_v13 = vshrl.u32 %v6975_v55, %v2694_v27 }
 0x310   :  { %v2468_v8 = vsel %vm2466_vm9, %v2467_v44, %v4128_v15  ;;  %v3052_v21 = vadd.s32 536870912, %v3051_v40  ;;  %v2699_v34 = vshll.u32 %v6975_v55, %v2693_v3  ;;  %v2700_v61 = vshrl.u32 %v6976_v18, %v2694_v27 }
 0x311   :  { %v2465_v23 = vsel %vm2463_vm11, %v4126_v6, %v2464_v56  ;;  %v2970_v57 = vmul.f32 %v2969_v32, %v2967_v59  ;;  %v2703_v9 = vshrl.u32 %v6977_v31, %v2694_v27  ;;  %v2702_v54 = vshll.u32 %v6976_v18, %v2693_v3 }
 0x312   :  { %v2469_v14 = vsel %vm2462_vm10, %v2465_v23, %v2468_v8  ;;  %v6318_v52 = vshrl.u32 %v3052_v21, 30  ;;  %v2706_v29 = vshrl.u32 %v6978_v25, %v2694_v27  ;;  %v2705_v36 = vshll.u32 %v6977_v31, %v2693_v3 }
 0x313   :  { %v2470_v4 = vsel %vm2459_vm7, nan, %v2469_v14  ;;  %v2971_v17 = vxor.u32 2147483648, %v2970_v57  ;;  %v2709_v19 = vshrl.u32 %v6983_v58, %v2694_v27  ;;  %v2687_v0 = vor.u32 8388608, %v2686_v5  ;;  %v7056_v14 = vld [vmem:[#allocation34_spill] sm:$0xff] }
 0x314   :  { %3738 = vst [vmem:[#allocation2 + $0x98] sm:$0xff] %v2470_v4  ;;  %v3054_v45 = vshll.u32 %v6318_v52, 30  ;;  %v2698_v39 = vor.u32 %v2697_v13, %v2696_v63  ;;  %v2708_v37 = vshll.u32 %v6978_v25, %v2693_v3  ;;  %v2701_v11 = vor.u32 %v2700_v61, %v2699_v34  ;;  %v7058_v4 = vld [vmem:[#allocation35_spill] sm:$0xff] }
 0x315   :  { %v2972_v48 = vsel %vm2889_vm8, %v2971_v17, %v2970_v57  ;;  %v2704_v53 = vor.u32 %v2703_v9, %v2702_v54  ;;  %v2707_v42 = vor.u32 %v2706_v29, %v2705_v36  ;;  %v2976_v33 = vsel %vm6289_vm13, 0, %v6303_v46  ;;  %v7055_v9 = vld [vmem:[#allocation19_spill] sm:$0xff]  ;;  %v7057_v29 = vld [vmem:[#allocation20_spill] sm:$0xff] }
 0x316   :  { %v2975_v10 = vsel %vm6289_vm13, %v6074_v28, %v2972_v48  ;;  %v6336_v38 = vsub.s32 %v3051_v40, %v3054_v45  ;;  %v2710_v26 = vor.u32 %v2709_v19, %v2708_v37  ;;  %v2695_v12 = vshrl.u32 %v6974_v47, %v2694_v27  ;;  %v7059_v19 = vld [vmem:[#allocation13_spill] sm:$0xff] }
 0x317   :  { %4129 = vcosq.f32 %v2975_v10  ;;  %vm2711_vm14 = vcmp.lt.s32.totalorder %v6305_v1, 1  ;;  %v2786_v60 = vand.u32 2139095040, %v6296_v30  ;;  %vm2712_vm15 = vcmp.lt.s32.totalorder %v6305_v1, 2 }
 0x318   :  { %4131 = vsinq.f32 %v2975_v10  ;;  %v3057_v49 = vsub.s32 0, %v6336_v38  ;;  %vm2714_vm0 = vcmp.lt.s32.totalorder %v6305_v1, 4  ;;  %vm2713_vm1 = vcmp.lt.s32.totalorder %v6305_v1, 3 }
 0x319   :  { %v2716_v3 = vsel %vm2714_vm0, %v2704_v53, 2102212464  ;;  %v2719_v2 = vsel %vm2711_vm14, %v2698_v39, %v2701_v11  ;;  %v2720_v51 = vsel %vm2714_vm0, %v2707_v42, 920167782  ;;  %v2723_v6 = vsel %vm2711_vm14, %v2701_v11, %v2704_v53 }
 0x31a   :  { %v3868_v22 = vmin.u32 %v3057_v49, %v6336_v38  ;;  %v2721_v27 = vsel %vm2713_vm1, %v2704_v53, %v2720_v51  ;;  %v2724_v16 = vsel %vm2714_vm0, %v2710_v26, 1326507024  ;;  %v2727_v5 = vshll.u32 %v2687_v0, 8  ;;  %v7061_v0 = vld [vmem:[#allocation14_spill] sm:$0xff] }
 0x31b   :  { %v2722_v35 = vsel %vm2712_vm15, %v2719_v2, %v2721_v27  ;;  %v2725_v20 = vsel %vm2713_vm1, %v2707_v42, %v2724_v16  ;;  %v2787_v15 = vshrl.u32 %v2786_v60, 23  ;;  %vm2993_vm2 = vcmp.lt.s32.totalorder %v6164_v24, 0 }
 0x31c   :  { %v3059_v44 = vclz %v3868_v22  ;;  %v2715_v46 = vsel %vm2711_vm14, %v2695_v12, %v2698_v39  ;;  %v2717_v40 = vsel %vm2713_vm1, %v2701_v11, %v2716_v3  ;;  %v2726_v56 = vsel %vm2712_vm15, %v2723_v6, %v2725_v20  ;;  %v7062_v39 = vld [vmem:[#allocation33_spill] sm:$0xff] }
 0x31d   :  { %v6357_v59 = vmul.u32.u64.low %v2727_v5, %v2722_v35  ;;  %v6358_v32 = vmul.u32.u64.high %v2727_v5, %v2722_v35, %v6357_v59  ;;  %v3859_v63 = vadd.s32 4294967169, %v2787_v15  ;;  %v2980_v8 = vadd.s32 3, %v2976_v33 }
 0x31e   :  { %v3869_v21 = vadd.s32 4294967294, %v3059_v44  ;;  %v6361_v13 = vmul.u32.u64.low %v2727_v5, %v2726_v56  ;;  %v6362_v34 = vmul.u32.u64.high %v2727_v5, %v2726_v56, %v6361_v13  ;;  %vm6366_vm3 = vcmp.le.f32.partialorder %v2991_v43, 0.7853982  ;;  %v7060_v43 = vld [vmem:[#allocation32_spill] sm:$0xff] }
 0x31f   :  { %v3077_v57 = vsub.s32 4, %v6318_v52  ;;  %v2793_v61 = vadd.s32 1, %v3859_v63  ;;  %v6373_v54 = vadd.f32 %v7056_v14, %v7055_v9  ;;  %v6377_v17 = vadd.f32 %v7058_v4, %v7057_v29 }
 0x320   :  { %vm3870_vm4 = vcmp.lt.s32.totalorder %v3869_v21, 0  ;;  %v2718_v36 = vsel %vm2712_vm15, %v2715_v46, %v2717_v40  ;;  %v6383_v45 = vadd.f32 %v7060_v43, %v7059_v19  ;;  %v6387_v37 = vadd.f32 %v7062_v39, %v7061_v0 }
 0x321   :  { %vm2979_vm5 = vweird.f32 %v6074_v28  ;;  %v3062_v48 = vsel %vm3870_vm4, 0, %v3869_v21  ;;  %v2737_v11 = vadd.s32 1, %v6358_v32  ;;  %v2783_v53 = vand.u32 2147483647, %v6296_v30 }
 0x322   :  { %vm2794_vm6 = vcmp.gt.s32.totalorder %v2793_v61, 0  ;;  %v2981_v42 = vand.u32 3, %v2980_v8  ;;  %v3047_v1 = vadd.s32 %v6266_v62, %v6275_v50  ;;  %v3063_v10 = vsub.s32 32, %v3062_v48 }
 0x323   :  { %v3067_v33 = vsub.s32 4294967266, %v3062_v48  ;;  %v3078_v26 = vsel %vm2993_vm2, %v3077_v57, %v6318_v52  ;;  %v2734_v12 = vmul.u32 %v2727_v5, %v2718_v36  ;;  %vm2736_vm7 = vc.u32 %v6362_v34, %v6357_v59 }
 0x324   :  { %v2795_v60 = vsel %vm2794_vm6, %v2793_v61, 0  ;;  %v4130_v49 = vpop.eup %4129  ;;  %v3064_v3 = vshll.u32 %v6336_v38, %v3062_v48  ;;  %v3065_v2 = vshrl.u32 %v3047_v1, %v3063_v10  ;;  %v2738_v22 = vsel %vm2736_vm7, %v2737_v11, %v6358_v32  ;;  %v6417_v11 = vpop.permute.xlu0 %352 }
 0x325   :  { %v3068_v51 = vadd.s32 127, %v3067_v33  ;;  %v4132_v27 = vpop.eup %4131  ;;  %v2987_v62 = vxor.u32 2147483648, %v4130_v49  ;;  %v2739_v50 = vadd.s32 %v2738_v22, %v2734_v12  ;;  %v2790_v6 = vand.u32 8388607, %v2783_v53 }
 0x326   :  { %v2797_v16 = vand.u32 31, %v2795_v60  ;;  %v2984_v52 = vxor.u32 2147483648, %v4132_v27  ;;  %vm2986_vm8 = vcmp.eq.s32.totalorder %v2981_v42, 2  ;;  %v3066_v35 = vor.u32 %v3065_v2, %v3064_v3 }
 0x327   :  { %v3069_v20 = vshll.u32 %v3068_v51, 23  ;;  %vm2983_vm10 = vcmp.eq.s32.totalorder %v2981_v42, 0  ;;  %v2988_v5 = vsel %vm2986_vm8, %v2987_v62, %v4132_v27  ;;  %v2740_v15 = vadd.s32 536870912, %v2739_v50 }
 0x328   :  { %v2798_v44 = vsub.s32 32, %v2797_v16  ;;  %vm2982_vm11 = vcmp.lt.s32.totalorder %v2981_v42, 2  ;;  %v2985_v38 = vsel %vm2983_vm10, %v4130_v49, %v2984_v52  ;;  %v3080_v40 = vsel %vm6366_vm3, 0, %v3078_v26 }
 0x329   :  { %v3070_v46 = vor.u32 4788187, %v3069_v20  ;;  %v2989_v56 = vsel %vm2982_vm11, %v2985_v38, %v2988_v5  ;;  %v2741_v32 = vshrl.u32 %v2740_v15, 30  ;;  %v2791_v63 = vor.u32 8388608, %v2790_v6 }
 0x32a   :  { %v2801_v8 = vshrl.u32 %v6975_v55, %v2798_v44  ;;  %v2990_v21 = vsel %vm2979_vm5, nan, %v2989_v56  ;;  %v3073_v57 = vcvt.s32.f32 %v3066_v35  ;;  %v2804_v61 = vshrl.u32 %v6976_v18, %v2798_v44 }
 0x32b   :  { %v3071_v13 = vand.u32 2147483647, %v3070_v46  ;;  %3743 = vst [vmem:[#allocation2 + $0xc0] sm:$0xff] %v2990_v21  ;;  %v2742_v9 = vshll.u32 %v2741_v32, 30  ;;  %v2796_v14 = vshrl.u32 %v2795_v60, 5  ;;  %v2800_v29 = vshll.u32 %v6974_v47, %v2797_v16 }
 0x32c   :  { %v2807_v4 = vshrl.u32 %v6977_v31, %v2798_v44  ;;  %v2803_v19 = vshll.u32 %v6975_v55, %v2797_v16  ;;  %v2809_v43 = vshll.u32 %v6977_v31, %v2797_v16  ;;  %v2810_v0 = vshrl.u32 %v6978_v25, %v2798_v44 }
 0x32d   :  { %v3074_v36 = vmul.f32 %v3073_v57, %v3071_v13  ;;  %v6414_v28 = vsub.s32 %v2739_v50, %v2742_v9  ;;  %v2802_v39 = vor.u32 %v2801_v8, %v2800_v29  ;;  %v2806_v48 = vshll.u32 %v6976_v18, %v2797_v16 }
 0x32e   :  { %v2805_v1 = vor.u32 %v2804_v61, %v2803_v19  ;;  %v2811_v10 = vor.u32 %v2810_v0, %v2809_v43  ;;  %v2813_v33 = vshrl.u32 %v6983_v58, %v2798_v44  ;;  %v3084_v26 = vadd.s32 3, %v3080_v40 }
 0x32f   :  { %v3075_v42 = vxor.u32 2147483648, %v3074_v36  ;;  %vm2681_vm9 = vcmp.lt.s32.totalorder %v6228_v41, 0  ;;  %v2745_v12 = vsub.s32 0, %v6414_v28  ;;  %v2808_v60 = vor.u32 %v2807_v4, %v2806_v48 }
 0x330   :  { %v2812_v49 = vshll.u32 %v6978_v25, %v2797_v16  ;;  %vm2815_vm12 = vcmp.lt.s32.totalorder %v2796_v14, 1  ;;  %v2831_v2 = vshll.u32 %v2791_v63, 8  ;;  %v6427_v51 = vadd.f32 %v6417_v11, %v6373_v54 }
 0x331   :  { %v3076_v3 = vsel %vm2993_vm2, %v3075_v42, %v3074_v36  ;;  %v3856_v27 = vmin.u32 %v2745_v12, %v6414_v28  ;;  %vm2818_vm13 = vcmp.lt.s32.totalorder %v2796_v14, 4  ;;  %v2799_v50 = vshrl.u32 %v6974_v47, %v2798_v44 }
 0x332   :  { %v3079_v22 = vsel %vm6366_vm3, %v6164_v24, %v3076_v3  ;;  %v2814_v62 = vor.u32 %v2813_v33, %v2812_v49  ;;  %v2823_v6 = vsel %vm2815_vm12, %v2802_v39, %v2805_v1  ;;  %v2824_v16 = vsel %vm2818_vm13, %v2811_v10, 920167782 }
 0x333   :  { %4133 = vcosq.f32 %v3079_v22  ;;  %v2747_v52 = vclz %v3856_v27  ;;  %vm2817_vm14 = vcmp.lt.s32.totalorder %v2796_v14, 3  ;;  %v2820_v54 = vsel %vm2818_vm13, %v2808_v60, 2102212464 }
 0x334   :  { %4135 = vsinq.f32 %v3079_v22  ;;  %v2765_v35 = vsub.s32 4, %v2741_v32  ;;  %vm2816_vm15 = vcmp.lt.s32.totalorder %v2796_v14, 2  ;;  %v2825_v23 = vsel %vm2817_vm14, %v2808_v60, %v2824_v16 }
 0x335   :  { %v2827_v20 = vsel %vm2815_vm12, %v2805_v1, %v2808_v60  ;;  %v3857_v5 = vadd.s32 4294967294, %v2747_v52  ;;  %v2819_v15 = vsel %vm2815_vm12, %v2799_v50, %v2802_v39  ;;  %v2826_v38 = vsel %vm2816_vm15, %v2823_v6, %v2825_v23 }
 0x336   :  { %v2828_v44 = vsel %vm2818_vm13, %v2814_v62, 1326507024  ;;  %v2821_v46 = vsel %vm2817_vm14, %v2805_v1, %v2820_v54  ;;  %v6441_v56 = vmul.u32.u64.low %v2831_v2, %v2826_v38  ;;  %v6442_v63 = vmul.u32.u64.high %v2831_v2, %v2826_v38, %v6441_v56 }
 0x337   :  { %v2829_v40 = vsel %vm2817_vm14, %v2811_v10, %v2828_v44  ;;  %v2735_v8 = vadd.s32 %v6357_v59, %v6362_v34  ;;  %vm3858_vm0 = vcmp.lt.s32.totalorder %v3857_v5, 0  ;;  %v3306_v13 = vand.u32 2139095040, %v6427_v51 }
 0x338   :  { %v2830_v21 = vsel %vm2816_vm15, %v2827_v20, %v2829_v40  ;;  %v2750_v57 = vsel %vm3858_vm0, 0, %v3857_v5  ;;  %v2766_v61 = vsel %vm2681_vm9, %v2765_v35, %v2741_v32  ;;  %v2822_v19 = vsel %vm2816_vm15, %v2819_v15, %v2821_v46 }
 0x339   :  { %v6451_v9 = vmul.u32.u64.low %v2831_v2, %v2830_v21  ;;  %v6452_v29 = vmul.u32.u64.high %v2831_v2, %v2830_v21, %v6451_v9  ;;  %v2751_v4 = vsub.s32 32, %v2750_v57  ;;  %v2755_v36 = vsub.s32 4294967266, %v2750_v57 }
 0x33a   :  { %v3307_v43 = vshrl.u32 %v3306_v13, 23  ;;  %v3085_v0 = vand.u32 3, %v3084_v26  ;;  %vm6457_vm1 = vcmp.le.f32.partialorder %v2679_v7, 0.7853982  ;;  %v2841_v34 = vadd.s32 1, %v6442_v63 }
 0x33b   :  { %v2752_v39 = vshll.u32 %v6414_v28, %v2750_v57  ;;  %v2753_v32 = vshrl.u32 %v2735_v8, %v2751_v4  ;;  %v2756_v48 = vadd.s32 127, %v2755_v36  ;;  %v2768_v1 = vsel %vm6457_vm1, 0, %v2766_v61 }
 0x33c   :  { %v3879_v42 = vadd.s32 4294967169, %v3307_v43  ;;  %v2838_v14 = vmul.u32 %v2831_v2, %v2822_v19  ;;  %vm2840_vm2 = vc.u32 %v6452_v29, %v6441_v56  ;;  %v3303_v10 = vand.u32 2147483647, %v6427_v51 }
 0x33d   :  { %v2754_v7 = vor.u32 %v2753_v32, %v2752_v39  ;;  %v2757_v33 = vshll.u32 %v2756_v48, 23  ;;  %v2842_v26 = vsel %vm2840_vm2, %v2841_v34, %v6442_v63  ;;  %v6471_v28 = vadd.f32 %v6417_v11, %v6377_v17 }
 0x33e   :  { %v3313_v12 = vadd.s32 1, %v3879_v42  ;;  %v2843_v60 = vadd.s32 %v2842_v26, %v2838_v14  ;;  %vm3090_vm3 = vcmp.eq.s32.totalorder %v3085_v0, 2  ;;  %v2772_v22 = vadd.s32 3, %v2768_v1 }
 0x33f   :  { %v2758_v3 = vor.u32 4788187, %v2757_v33  ;;  %v3310_v50 = vand.u32 8388607, %v3303_v10  ;;  %v2761_v54 = vcvt.s32.f32 %v2754_v7  ;;  %vm3087_vm5 = vcmp.eq.s32.totalorder %v3085_v0, 0 }
 0x340   :  { %v4134_v49 = vpop.eup %4133  ;;  %vm3314_vm4 = vcmp.gt.s32.totalorder %v3313_v12, 0  ;;  %v2844_v62 = vadd.s32 536870912, %v2843_v60  ;;  %v3410_v11 = vand.u32 2139095040, %v6471_v28  ;;  %vm3086_vm6 = vcmp.lt.s32.totalorder %v3085_v0, 2 }
 0x341   :  { %v4136_v2 = vpop.eup %4135  ;;  %v3091_v27 = vxor.u32 2147483648, %v4134_v49  ;;  %v3315_v6 = vsel %vm3314_vm4, %v3313_v12, 0  ;;  %v2759_v52 = vand.u32 2147483647, %v2758_v3  ;;  %vm3083_vm7 = vweird.f32 %v6164_v24 }
 0x342   :  { %v3088_v16 = vxor.u32 2147483648, %v4136_v2  ;;  %v3317_v35 = vand.u32 31, %v3315_v6  ;;  %v6475_v17 = vshrl.u32 %v2844_v62, 30  ;;  %v6479_v44 = vand.u32 3, %v2772_v22 }
 0x343   :  { %v3092_v23 = vsel %vm3090_vm3, %v3091_v27, %v4136_v2  ;;  %v2762_v5 = vmul.f32 %v2761_v54, %v2759_v52  ;;  %v3311_v8 = vor.u32 8388608, %v3310_v50  ;;  %v3407_v61 = vand.u32 2147483647, %v6471_v28 }
 0x344   :  { %v3089_v20 = vsel %vm3087_vm5, %v4134_v49, %v3088_v16  ;;  %v3318_v15 = vsub.s32 32, %v3317_v35  ;;  %v2846_v46 = vshll.u32 %v6475_v17, 30  ;;  %v3411_v9 = vshrl.u32 %v3410_v11, 23 }
 0x345   :  { %v3093_v38 = vsel %vm3086_vm6, %v3089_v20, %v3092_v23  ;;  %v2763_v63 = vxor.u32 2147483648, %v2762_v5  ;;  %v3316_v4 = vshrl.u32 %v3315_v6, 5  ;;  %v3320_v36 = vshll.u32 %v6974_v47, %v3317_v35 }
 0x346   :  { %v3094_v40 = vsel %vm3083_vm7, nan, %v3093_v38  ;;  %v3321_v21 = vshrl.u32 %v6975_v55, %v3318_v15  ;;  %v6483_v13 = vsub.s32 %v2843_v60, %v2846_v46  ;;  %v3324_v57 = vshrl.u32 %v6976_v18, %v3318_v15 }
 0x347   :  { %3744 = vst [vmem:[#allocation2 + $0xc8] sm:$0xff] %v3094_v40  ;;  %v2764_v24 = vsel %vm2681_vm9, %v2763_v63, %v2762_v5  ;;  %v3327_v19 = vshrl.u32 %v6977_v31, %v3318_v15  ;;  %v3323_v34 = vshll.u32 %v6975_v55, %v3317_v35  ;;  %v3326_v39 = vshll.u32 %v6976_v18, %v3317_v35 }
 0x348   :  { %v2767_v43 = vsel %vm6457_vm1, %v6228_v41, %v2764_v24  ;;  %v2849_v0 = vsub.s32 0, %v6483_v13  ;;  %v3322_v32 = vor.u32 %v3321_v21, %v3320_v36  ;;  %v3329_v48 = vshll.u32 %v6977_v31, %v3317_v35 }
 0x349   :  { %4137 = vcosq.f32 %v2767_v43  ;;  %v3330_v42 = vshrl.u32 %v6978_v25, %v3318_v15  ;;  %v3325_v14 = vor.u32 %v3324_v57, %v3323_v34  ;;  %v3328_v7 = vor.u32 %v3327_v19, %v3326_v39 }
 0x34a   :  { %4139 = vsinq.f32 %v2767_v43  ;;  %v3860_v1 = vmin.u32 %v2849_v0, %v6483_v13  ;;  %v3332_v59 = vshll.u32 %v6978_v25, %v3317_v35  ;;  %v3333_v26 = vshrl.u32 %v6983_v58, %v3318_v15  ;;  %v6530_v0 = vpop.permute.xlu1 %348 }
 0x34b   :  { %v3331_v33 = vor.u32 %v3330_v42, %v3329_v48  ;;  %v3351_v12 = vshll.u32 %v3311_v8, 8  ;;  %v3319_v49 = vshrl.u32 %v6974_v47, %v3318_v15  ;;  %vm3335_vm8 = vcmp.lt.s32.totalorder %v3316_v4, 1 }
 0x34c   :  { %v2851_v60 = vclz %v3860_v1  ;;  %v3883_v3 = vadd.s32 4294967169, %v3411_v9  ;;  %v3334_v22 = vor.u32 %v3333_v26, %v3332_v59  ;;  %vm3336_vm10 = vcmp.lt.s32.totalorder %v3316_v4, 2 }
 0x34d   :  { %vm3337_vm11 = vcmp.lt.s32.totalorder %v3316_v4, 3  ;;  %vm3338_vm9 = vcmp.lt.s32.totalorder %v3316_v4, 4  ;;  %vm2785_vm12 = vcmp.lt.s32.totalorder %v6296_v30, 0  ;;  %v3343_v62 = vsel %vm3335_vm8, %v3322_v32, %v3325_v14 }
 0x34e   :  { %v3861_v2 = vadd.s32 4294967294, %v2851_v60  ;;  %v3340_v27 = vsel %vm3338_vm9, %v3328_v7, 2102212464  ;;  %v3344_v50 = vsel %vm3338_vm9, %v3331_v33, 920167782  ;;  %v3339_v6 = vsel %vm3335_vm8, %v3319_v49, %v3322_v32 }
 0x34f   :  { %v3345_v16 = vsel %vm3337_vm11, %v3328_v7, %v3344_v50  ;;  %v3347_v52 = vsel %vm3335_vm8, %v3325_v14, %v3328_v7  ;;  %v3348_v54 = vsel %vm3338_vm9, %v3334_v22, 1326507024  ;;  %v3341_v35 = vsel %vm3337_vm11, %v3325_v14, %v3340_v27 }
 0x350   :  { %vm3862_vm13 = vcmp.lt.s32.totalorder %v3861_v2, 0  ;;  %v3346_v23 = vsel %vm3336_vm10, %v3343_v62, %v3345_v16  ;;  %v3349_v11 = vsel %vm3337_vm11, %v3331_v33, %v3348_v54  ;;  %vm6507_vm14 = vcmp.le.f32.partialorder %v2783_v53, 0.7853982 }
 0x351   :  { %v2854_v5 = vsel %vm3862_vm13, 0, %v3861_v2  ;;  %v3350_v15 = vsel %vm3336_vm10, %v3347_v52, %v3349_v11  ;;  %v6512_v38 = vmul.u32.u64.low %v3351_v12, %v3346_v23  ;;  %v6513_v46 = vmul.u32.u64.high %v3351_v12, %v3346_v23, %v6512_v38 }
 0x352   :  { %vm2774_vm15 = vcmp.lt.s32.totalorder %v6479_v44, 2  ;;  %v2839_v40 = vadd.s32 %v6441_v56, %v6452_v29  ;;  %v2855_v63 = vsub.s32 32, %v2854_v5  ;;  %v2859_v8 = vsub.s32 4294967266, %v2854_v5 }
 0x353   :  { %vm2771_vm0 = vweird.f32 %v6228_v41  ;;  %v2869_v53 = vsub.s32 4, %v6475_v17  ;;  %v6521_v21 = vmul.u32.u64.low %v3351_v12, %v3350_v15  ;;  %v6522_v57 = vmul.u32.u64.high %v3351_v12, %v3350_v15, %v6521_v21 }
 0x354   :  { %v3417_v9 = vadd.s32 1, %v3883_v3  ;;  %v2856_v24 = vshll.u32 %v6483_v13, %v2854_v5  ;;  %v2857_v36 = vshrl.u32 %v2839_v40, %v2855_v63  ;;  %v2860_v19 = vadd.s32 127, %v2859_v8 }
 0x355   :  { %v3342_v43 = vsel %vm3336_vm10, %v3339_v6, %v3341_v35  ;;  %vm2775_vm1 = vcmp.eq.s32.totalorder %v6479_v44, 0  ;;  %v3361_v56 = vadd.s32 1, %v6513_v46  ;;  %v3414_v29 = vand.u32 8388607, %v3407_v61 }
 0x356   :  { %vm3418_vm2 = vcmp.gt.s32.totalorder %v3417_v9, 0  ;;  %v4138_v34 = vpop.eup %4137  ;;  %vm2778_vm3 = vcmp.eq.s32.totalorder %v6479_v44, 2  ;;  %v2858_v39 = vor.u32 %v2857_v36, %v2856_v24  ;;  %v2861_v32 = vshll.u32 %v2860_v19, 23 }
 0x357   :  { %v3419_v13 = vsel %vm3418_vm2, %v3417_v9, 0  ;;  %v4140_v48 = vpop.eup %4139  ;;  %v2779_v42 = vxor.u32 2147483648, %v4138_v34  ;;  %v2870_v4 = vsel %vm2785_vm12, %v2869_v53, %v6475_v17  ;;  %v3358_v1 = vmul.u32 %v3351_v12, %v3342_v43 }
 0x358   :  { %vm3360_vm4 = vc.u32 %v6522_v57, %v6512_v38  ;;  %v2776_v14 = vxor.u32 2147483648, %v4140_v48  ;;  %v2862_v7 = vor.u32 4788187, %v2861_v32  ;;  %v6541_v59 = vadd.f32 %v6530_v0, %v6383_v45 }
 0x359   :  { %v3362_v33 = vsel %vm3360_vm4, %v3361_v56, %v6513_v46  ;;  %v2780_v26 = vsel %vm2778_vm3, %v2779_v42, %v4140_v48  ;;  %v3415_v49 = vor.u32 8388608, %v3414_v29  ;;  %v3421_v3 = vand.u32 31, %v3419_v13 }
 0x35a   :  { %v3363_v60 = vadd.s32 %v3362_v33, %v3358_v1  ;;  %v2777_v22 = vsel %vm2775_vm1, %v4138_v34, %v2776_v14  ;;  %v2863_v17 = vand.u32 2147483647, %v2862_v7  ;;  %v2865_v12 = vcvt.s32.f32 %v2858_v39 }
 0x35b   :  { %v2872_v2 = vsel %vm6507_vm14, 0, %v2870_v4  ;;  %v2781_v27 = vsel %vm2774_vm15, %v2777_v22, %v2780_v26  ;;  %v6549_v50 = vshrl.u32 %v3419_v13, 5  ;;  %v3422_v45 = vsub.s32 32, %v3421_v3 }
 0x35c   :  { %v3364_v62 = vadd.s32 536870912, %v3363_v60  ;;  %v2782_v6 = vsel %vm2771_vm0, nan, %v2781_v27  ;;  %v2866_v16 = vmul.f32 %v2865_v12, %v2863_v17  ;;  %v3424_v52 = vshll.u32 %v6974_v47, %v3421_v3 }
 0x35d   :  { %v3427_v54 = vshll.u32 %v6975_v55, %v3421_v3  ;;  %3741 = vst [vmem:[#allocation2 + $0xb0] sm:$0xff] %v2782_v6  ;;  %v3425_v23 = vshrl.u32 %v6975_v55, %v3422_v45  ;;  %v3428_v11 = vshrl.u32 %v6976_v18, %v3422_v45  ;;  %v3430_v44 = vshll.u32 %v6976_v18, %v3421_v3 }
 0x35e   :  { %v3365_v35 = vshrl.u32 %v3364_v62, 30  ;;  %v2867_v5 = vxor.u32 2147483648, %v2866_v16  ;;  %v3431_v15 = vshrl.u32 %v6977_v31, %v3422_v45  ;;  %v3433_v46 = vshll.u32 %v6977_v31, %v3421_v3 }
 0x35f   :  { %v3434_v41 = vshrl.u32 %v6978_v25, %v3422_v45  ;;  %v2876_v40 = vadd.s32 3, %v2872_v2  ;;  %v3426_v8 = vor.u32 %v3425_v23, %v3424_v52  ;;  %v3429_v21 = vor.u32 %v3428_v11, %v3427_v54 }
 0x360   :  { %v3366_v63 = vshll.u32 %v3365_v35, 30  ;;  %v2868_v53 = vsel %vm2785_vm12, %v2867_v5, %v2866_v16  ;;  %v3432_v9 = vor.u32 %v3431_v15, %v3430_v44  ;;  %v3436_v43 = vshll.u32 %v6978_v25, %v3421_v3 }
 0x361   :  { %v3435_v24 = vor.u32 %v3434_v41, %v3433_v46  ;;  %v2871_v36 = vsel %vm6507_vm14, %v6296_v30, %v2868_v53  ;;  %v3437_v56 = vshrl.u32 %v6983_v58, %v3422_v45  ;;  %vm3439_vm5 = vcmp.lt.s32.totalorder %v6549_v50, 1 }
 0x362   :  { %v6566_v19 = vsub.s32 %v3363_v60, %v3366_v63  ;;  %4141 = vcosq.f32 %v2871_v36  ;;  %v3455_v29 = vshll.u32 %v3415_v49, 8  ;;  %v3098_v34 = vand.u32 2139095040, %v6541_v59 }
 0x363   :  { %4143 = vsinq.f32 %v2871_v36  ;;  %v3438_v32 = vor.u32 %v3437_v56, %v3436_v43  ;;  %vm3442_vm6 = vcmp.lt.s32.totalorder %v6549_v50, 4  ;;  %vm3440_vm7 = vcmp.lt.s32.totalorder %v6549_v50, 2 }
 0x364   :  { %v3369_v39 = vsub.s32 0, %v6566_v19  ;;  %vm3441_vm8 = vcmp.lt.s32.totalorder %v6549_v50, 3  ;;  %v3447_v20 = vsel %vm3439_vm5, %v3426_v8, %v3429_v21  ;;  %v3448_v13 = vsel %vm3442_vm6, %v3435_v24, 920167782 }
 0x365   :  { %v3423_v42 = vshrl.u32 %v6974_v47, %v3422_v45  ;;  %v3444_v4 = vsel %vm3442_vm6, %v3432_v9, 2102212464  ;;  %v3449_v1 = vsel %vm3441_vm8, %v3432_v9, %v3448_v13  ;;  %v3451_v7 = vsel %vm3439_vm5, %v3429_v21, %v3432_v9 }
 0x366   :  { %v3880_v48 = vmin.u32 %v3369_v39, %v6566_v19  ;;  %v3450_v14 = vsel %vm3440_vm7, %v3447_v20, %v3449_v1  ;;  %v3452_v33 = vsel %vm3442_vm6, %v3438_v32, 1326507024  ;;  %v3099_v26 = vshrl.u32 %v3098_v34, 23 }
 0x367   :  { %v2877_v60 = vand.u32 3, %v2876_v40  ;;  %v3389_v3 = vsub.s32 4, %v3365_v35  ;;  %v3443_v22 = vsel %vm3439_vm5, %v3423_v42, %v3426_v8  ;;  %v3445_v17 = vsel %vm3441_vm8, %v3429_v21, %v3444_v4 }
 0x368   :  { %v3371_v49 = vclz %v3880_v48  ;;  %v3453_v12 = vsel %vm3441_vm8, %v3435_v24, %v3452_v33  ;;  %v6592_v2 = vmul.u32.u64.low %v3455_v29, %v3450_v14  ;;  %v6593_v27 = vmul.u32.u64.high %v3455_v29, %v3450_v14, %v6592_v2 }
 0x369   :  { %v3454_v45 = vsel %vm3440_vm7, %v3451_v7, %v3453_v12  ;;  %v3871_v6 = vadd.s32 4294967169, %v3099_v26  ;;  %vm6600_vm10 = vcmp.le.f32.partialorder %v3303_v10, 0.7853982  ;;  %vm3305_vm11 = vcmp.lt.s32.totalorder %v6427_v51, 0 }
 0x36a   :  { %v3881_v62 = vadd.s32 4294967294, %v3371_v49  ;;  %v6605_v52 = vmul.u32.u64.low %v3455_v29, %v3454_v45  ;;  %v6606_v54 = vmul.u32.u64.high %v3455_v29, %v3454_v45, %v6605_v52  ;;  %vm2878_vm9 = vcmp.lt.s32.totalorder %v2877_v60, 2 }
 0x36b   :  { %v3390_v23 = vsel %vm3305_vm11, %v3389_v3, %v3365_v35  ;;  %v3446_v11 = vsel %vm3440_vm7, %v3443_v22, %v3445_v17  ;;  %v3105_v44 = vadd.s32 1, %v3871_v6  ;;  %vm2875_vm13 = vweird.f32 %v6296_v30 }
 0x36c   :  { %vm3882_vm12 = vcmp.lt.s32.totalorder %v3881_v62, 0  ;;  %v3465_v5 = vadd.s32 1, %v6593_v27  ;;  %v6616_v15 = vadd.f32 %v6530_v0, %v6387_v37  ;;  %v3095_v46 = vand.u32 2147483647, %v6541_v59 }
 0x36d   :  { %v3374_v10 = vsel %vm3882_vm12, 0, %v3881_v62  ;;  %v3359_v41 = vadd.s32 %v6512_v38, %v6522_v57  ;;  %vm3106_vm14 = vcmp.gt.s32.totalorder %v3105_v44, 0  ;;  %v3392_v50 = vsel %vm6600_vm10, 0, %v3390_v23 }
 0x36e   :  { %v3375_v40 = vsub.s32 32, %v3374_v10  ;;  %v3379_v35 = vsub.s32 4294967266, %v3374_v10  ;;  %v3462_v63 = vmul.u32 %v3455_v29, %v3446_v11  ;;  %vm3464_vm15 = vc.u32 %v6606_v54, %v6592_v2 }
 0x36f   :  { %v3107_v8 = vsel %vm3106_vm14, %v3105_v44, 0  ;;  %v4142_v53 = vpop.eup %4141  ;;  %v3376_v37 = vshll.u32 %v6566_v19, %v3374_v10  ;;  %v3466_v9 = vsel %vm3464_vm15, %v3465_v5, %v6593_v27  ;;  %vm2879_vm0 = vcmp.eq.s32.totalorder %v2877_v60, 0 }
 0x370   :  { %v3377_v0 = vshrl.u32 %v3359_v41, %v3375_v40  ;;  %v3380_v21 = vadd.s32 127, %v3379_v35  ;;  %v4144_v24 = vpop.eup %4143  ;;  %v2883_v38 = vxor.u32 2147483648, %v4142_v53  ;;  %v3467_v57 = vadd.s32 %v3466_v9, %v3462_v63 }
 0x371   :  { %v3109_v36 = vand.u32 31, %v3107_v8  ;;  %v2880_v43 = vxor.u32 2147483648, %v4144_v24  ;;  %vm2882_vm1 = vcmp.eq.s32.totalorder %v2877_v60, 2  ;;  %v3396_v39 = vadd.s32 3, %v3392_v50 }
 0x372   :  { %v3378_v56 = vor.u32 %v3377_v0, %v3376_v37  ;;  %v3381_v29 = vshll.u32 %v3380_v21, 23  ;;  %v2884_v34 = vsel %vm2882_vm1, %v2883_v38, %v4144_v24  ;;  %v3468_v32 = vadd.s32 536870912, %v3467_v57 }
 0x373   :  { %v3110_v20 = vsub.s32 32, %v3109_v36  ;;  %v2881_v13 = vsel %vm2879_vm0, %v4142_v53, %v2880_v43  ;;  %v3102_v19 = vand.u32 8388607, %v3095_v46  ;;  %v3202_v42 = vand.u32 2139095040, %v6616_v15 }
 0x374   :  { %v3382_v48 = vor.u32 4788187, %v3381_v29  ;;  %v2885_v4 = vsel %vm2878_vm9, %v2881_v13, %v2884_v34  ;;  %v6631_v1 = vshrl.u32 %v3468_v32, 30  ;;  %v6633_v14 = vshrl.u32 %v3107_v8, 5 }
 0x375   :  { %v3113_v7 = vshrl.u32 %v6975_v55, %v3110_v20  ;;  %v2886_v33 = vsel %vm2875_vm13, nan, %v2885_v4  ;;  %v3385_v49 = vcvt.s32.f32 %v3378_v56  ;;  %v3116_v3 = vshrl.u32 %v6976_v18, %v3110_v20 }
 0x376   :  { %v3383_v26 = vand.u32 2147483647, %v3382_v48  ;;  %3742 = vst [vmem:[#allocation2 + $0xb8] sm:$0xff] %v2886_v33  ;;  %v3470_v22 = vshll.u32 %v6631_v1, 30  ;;  %v3112_v17 = vshll.u32 %v6974_v47, %v3109_v36  ;;  %v3115_v60 = vshll.u32 %v6975_v55, %v3109_v36 }
 0x377   :  { %v3119_v12 = vshrl.u32 %v6977_v31, %v3110_v20  ;;  %v3118_v62 = vshll.u32 %v6976_v18, %v3109_v36  ;;  %v3121_v45 = vshll.u32 %v6977_v31, %v3109_v36  ;;  %v3122_v30 = vshrl.u32 %v6978_v25, %v3110_v20 }
 0x378   :  { %v3386_v27 = vmul.f32 %v3385_v49, %v3383_v26  ;;  %v6646_v6 = vand.u32 3, %v3396_v39  ;;  %v6648_v52 = vsub.s32 %v3467_v57, %v3470_v22  ;;  %v3114_v23 = vor.u32 %v3113_v7, %v3112_v17 }
 0x379   :  { %v3117_v11 = vor.u32 %v3116_v3, %v3115_v60  ;;  %v3120_v10 = vor.u32 %v3119_v12, %v3118_v62  ;;  %v3123_v5 = vor.u32 %v3122_v30, %v3121_v45  ;;  %v3125_v41 = vshrl.u32 %v6983_v58, %v3110_v20  ;;  %v7070_v62 = vld [vmem:[#allocation36_spill] sm:$0xff]  ;;  %v7071_v30 = vld [vmem:[#allocation18_spill] sm:$0xff] }
 0x37a   :  { %v3387_v44 = vxor.u32 2147483648, %v3386_v27  ;;  %v3473_v40 = vsub.s32 0, %v6648_v52  ;;  %v3103_v35 = vor.u32 8388608, %v3102_v19  ;;  %v3124_v50 = vshll.u32 %v6978_v25, %v3109_v36 }
 0x37b   :  { %v3199_v63 = vand.u32 2147483647, %v6616_v15  ;;  %v3111_v53 = vshrl.u32 %v6974_v47, %v3110_v20  ;;  %vm3127_vm2 = vcmp.lt.s32.totalorder %v6633_v14, 1  ;;  %v3203_v37 = vshrl.u32 %v3202_v42, 23 }
 0x37c   :  { %v3388_v8 = vsel %vm3305_vm11, %v3387_v44, %v3386_v27  ;;  %v3884_v21 = vmin.u32 %v3473_v40, %v6648_v52  ;;  %v3126_v9 = vor.u32 %v3125_v41, %v3124_v50  ;;  %vm3130_vm3 = vcmp.lt.s32.totalorder %v6633_v14, 4 }
 0x37d   :  { %v3391_v0 = vsel %vm6600_vm10, %v6427_v51, %v3388_v8  ;;  %v3132_v24 = vsel %vm3130_vm3, %v3120_v10, 2102212464  ;;  %v3135_v38 = vsel %vm3127_vm2, %v3114_v23, %v3117_v11  ;;  %v3136_v57 = vsel %vm3130_vm3, %v3123_v5, 920167782 }
 0x37e   :  { %4145 = vcosq.f32 %v3391_v0  ;;  %vm3409_vm4 = vcmp.lt.s32.totalorder %v6471_v28, 0  ;;  %v3475_v16 = vclz %v3884_v21  ;;  %vm3129_vm5 = vcmp.lt.s32.totalorder %v6633_v14, 3 }
 0x37f   :  { %4147 = vsinq.f32 %v3391_v0  ;;  %v3143_v36 = vshll.u32 %v3103_v35, 8  ;;  %vm3128_vm6 = vcmp.lt.s32.totalorder %v6633_v14, 2  ;;  %v3131_v43 = vsel %vm3127_vm2, %v3111_v53, %v3114_v23  ;;  %v7072_v23 = vld [vmem:[#allocation37_spill] sm:$0xff] }
 0x380   :  { %v3137_v56 = vsel %vm3129_vm5, %v3120_v10, %v3136_v57  ;;  %v3139_v29 = vsel %vm3127_vm2, %v3117_v11, %v3120_v10  ;;  %v3885_v34 = vadd.s32 4294967294, %v3475_v16  ;;  %v3133_v39 = vsel %vm3129_vm5, %v3117_v11, %v3132_v24 }
 0x381   :  { %v3138_v32 = vsel %vm3128_vm6, %v3135_v38, %v3137_v56  ;;  %v3140_v20 = vsel %vm3130_vm3, %v3126_v9, 1326507024  ;;  %v3875_v42 = vadd.s32 4294967169, %v3203_v37  ;;  %v3463_v4 = vadd.s32 %v6592_v2, %v6606_v54  ;;  %v7069_v54 = vld [vmem:[#allocation17_spill] sm:$0xff] }
 0x382   :  { %v3141_v13 = vsel %vm3129_vm5, %v3123_v5, %v3140_v20  ;;  %v6680_v48 = vmul.u32.u64.low %v3143_v36, %v3138_v32  ;;  %v6681_v19 = vmul.u32.u64.high %v3143_v36, %v3138_v32, %v6680_v48  ;;  %vm3886_vm7 = vcmp.lt.s32.totalorder %v3885_v34, 0 }
 0x383   :  { %v3493_v7 = vsub.s32 4, %v6631_v1  ;;  %v3142_v33 = vsel %vm3128_vm6, %v3139_v29, %v3141_v13  ;;  %v3478_v26 = vsel %vm3886_vm7, 0, %v3885_v34  ;;  %v3209_v22 = vadd.s32 1, %v3875_v42 }
 0x384   :  { %v6689_v49 = vmul.u32.u64.low %v3143_v36, %v3142_v33  ;;  %v6690_v3 = vmul.u32.u64.high %v3143_v36, %v3142_v33, %v6689_v49  ;;  %v3479_v17 = vsub.s32 32, %v3478_v26  ;;  %v3483_v60 = vsub.s32 4294967266, %v3478_v26 }
 0x385   :  { %v3134_v12 = vsel %vm3128_vm6, %v3131_v43, %v3133_v39  ;;  %v6696_v27 = vand.u32 8388607, %v3199_v63  ;;  %v3153_v2 = vadd.s32 1, %v6681_v19  ;;  %vm3210_vm8 = vcmp.gt.s32.totalorder %v3209_v22, 0 }
 0x386   :  { %v6701_v45 = vadd.f32 %v7070_v62, %v7069_v54  ;;  %v6705_v11 = vadd.f32 %v7072_v23, %v7071_v30  ;;  %v3480_v44 = vshll.u32 %v6648_v52, %v3478_v26  ;;  %v3481_v10 = vshrl.u32 %v3463_v4, %v3479_v17 }
 0x387   :  { %v3484_v14 = vadd.s32 127, %v3483_v60  ;;  %v3211_v5 = vsel %vm3210_vm8, %v3209_v22, 0  ;;  %vm3395_vm10 = vweird.f32 %v6427_v51  ;;  %v3494_v41 = vsel %vm3409_vm4, %v3493_v7, %v6631_v1 }
 0x388   :  { %v3150_v40 = vmul.u32 %v3143_v36, %v3134_v12  ;;  %vm3152_vm11 = vc.u32 %v6690_v3, %v6680_v48  ;;  %v3213_v35 = vand.u32 31, %v3211_v5  ;;  %vm6716_vm9 = vcmp.le.f32.partialorder %v3407_v61, 0.7853982 }
 0x389   :  { %v3482_v52 = vor.u32 %v3481_v10, %v3480_v44  ;;  %v3485_v8 = vshll.u32 %v3484_v14, 23  ;;  %v3154_v53 = vsel %vm3152_vm11, %v3153_v2, %v6681_v19  ;;  %vm3398_vm12 = vcmp.lt.s32.totalorder %v6646_v6, 2 }
 0x38a   :  { %vm3399_vm13 = vcmp.eq.s32.totalorder %v6646_v6, 0  ;;  %v3155_v1 = vadd.s32 %v3154_v53, %v3150_v40  ;;  %v3214_v37 = vsub.s32 32, %v3213_v35  ;;  %vm3402_vm14 = vcmp.eq.s32.totalorder %v6646_v6, 2  ;;  %v357_v6 = vpop.permute.xlu1 %356 }
 0x38b   :  { %v4146_v0 = vpop.eup %4145  ;;  %v3486_v21 = vor.u32 4788187, %v3485_v8  ;;  %v3496_v61 = vsel %vm6716_vm9, 0, %v3494_v41  ;;  %v3207_v9 = vor.u32 8388608, %v6696_v27  ;;  %v6727_v16 = vshrl.u32 %v3211_v5, 5 }
 0x38c   :  { %v4148_v24 = vpop.eup %4147  ;;  %v3403_v38 = vxor.u32 2147483648, %v4146_v0  ;;  %v3156_v57 = vadd.s32 536870912, %v3155_v1  ;;  %v3216_v36 = vshll.u32 %v6974_v47, %v3213_v35  ;;  %v3489_v29 = vcvt.s32.f32 %v3482_v52 }
 0x38d   :  { %v3400_v43 = vxor.u32 2147483648, %v4148_v24  ;;  %v3487_v56 = vand.u32 2147483647, %v3486_v21  ;;  %v3219_v34 = vshll.u32 %v6975_v55, %v3213_v35  ;;  %v3217_v20 = vshrl.u32 %v6975_v55, %v3214_v37 }
 0x38e   :  { %v3404_v39 = vsel %vm3402_vm14, %v3403_v38, %v4148_v24  ;;  %v3157_v32 = vshrl.u32 %v3156_v57, 30  ;;  %v3223_v13 = vshrl.u32 %v6977_v31, %v3214_v37  ;;  %v3220_v4 = vshrl.u32 %v6976_v18, %v3214_v37 }
 0x38f   :  { %v3401_v19 = vsel %vm3399_vm13, %v4146_v0, %v3400_v43  ;;  %v3490_v42 = vmul.f32 %v3489_v29, %v3487_v56  ;;  %v3226_v7 = vshrl.u32 %v6978_v25, %v3214_v37  ;;  %v3222_v49 = vshll.u32 %v6976_v18, %v3213_v35 }
 0x390   :  { %v3405_v33 = vsel %vm3398_vm12, %v3401_v19, %v3404_v39  ;;  %v3158_v26 = vshll.u32 %v3157_v32, 30  ;;  %v3225_v22 = vshll.u32 %v6977_v31, %v3213_v35  ;;  %v3228_v12 = vshll.u32 %v6978_v25, %v3213_v35 }
 0x391   :  { %v3406_v17 = vsel %vm3395_vm10, nan, %v3405_v33  ;;  %v3491_v60 = vxor.u32 2147483648, %v3490_v42  ;;  %v3229_v27 = vshrl.u32 %v6983_v58, %v3214_v37  ;;  %v3218_v54 = vor.u32 %v3217_v20, %v3216_v36 }
 0x392   :  { %3747 = vst [vmem:[#allocation2 + $0xe0] sm:$0xff] %v3406_v17  ;;  %v6745_v2 = vsub.s32 %v3155_v1, %v3158_v26  ;;  %v3224_v62 = vor.u32 %v3223_v13, %v3222_v49  ;;  %v3221_v23 = vor.u32 %v3220_v4, %v3219_v34  ;;  %v3227_v44 = vor.u32 %v3226_v7, %v3225_v22 }
 0x393   :  { %v3492_v30 = vsel %vm3409_vm4, %v3491_v60, %v3490_v42  ;;  %v3230_v10 = vor.u32 %v3229_v27, %v3228_v12  ;;  %v3500_v14 = vadd.s32 3, %v3496_v61  ;;  %v3247_v41 = vshll.u32 %v3207_v9, 8 }
 0x394   :  { %v3495_v51 = vsel %vm6716_vm9, %v6471_v28, %v3492_v30  ;;  %v3161_v5 = vsub.s32 0, %v6745_v2  ;;  %v3215_v40 = vshrl.u32 %v6974_v47, %v3214_v37  ;;  %vm3234_vm15 = vcmp.lt.s32.totalorder %v6727_v16, 4 }
 0x395   :  { %4149 = vcosq.f32 %v3495_v51  ;;  %v6756_v35 = vadd.f32 %v357_v6, %v6701_v45  ;;  %vm3231_vm0 = vcmp.lt.s32.totalorder %v6727_v16, 1  ;;  %v3236_v8 = vsel %vm3234_vm15, %v3224_v62, 2102212464 }
 0x396   :  { %4151 = vsinq.f32 %v3495_v51  ;;  %v3872_v52 = vmin.u32 %v3161_v5, %v6745_v2  ;;  %v3239_v50 = vsel %vm3231_vm0, %v3218_v54, %v3221_v23  ;;  %v3240_v53 = vsel %vm3234_vm15, %v3227_v44, 920167782 }
 0x397   :  { %v3243_v1 = vsel %vm3231_vm0, %v3221_v23, %v3224_v62  ;;  %v3244_v0 = vsel %vm3234_vm15, %v3230_v10, 1326507024  ;;  %v3181_v61 = vsub.s32 4, %v3157_v32  ;;  %vm3232_vm1 = vcmp.lt.s32.totalorder %v6727_v16, 2 }
 0x398   :  { %v3163_v21 = vclz %v3872_v52  ;;  %vm3233_vm2 = vcmp.lt.s32.totalorder %v6727_v16, 3  ;;  %v3235_v37 = vsel %vm3231_vm0, %v3215_v40, %v3218_v54  ;;  %vm3097_vm3 = vcmp.lt.s32.totalorder %v6541_v59, 0 }
 0x399   :  { %v3237_v9 = vsel %vm3233_vm2, %v3221_v23, %v3236_v8  ;;  %v3241_v45 = vsel %vm3233_vm2, %v3224_v62, %v3240_v53  ;;  %v3245_v24 = vsel %vm3233_vm2, %v3227_v44, %v3244_v0  ;;  %v3182_v16 = vsel %vm3097_vm3, %v3181_v61, %v3157_v32 }
 0x39a   :  { %v3873_v38 = vadd.s32 4294967294, %v3163_v21  ;;  %v3242_v57 = vsel %vm3232_vm1, %v3239_v50, %v3241_v45  ;;  %v3246_v36 = vsel %vm3232_vm1, %v3243_v1, %v3245_v24  ;;  %v3238_v39 = vsel %vm3232_vm1, %v3235_v37, %v3237_v9 }
 0x39b   :  { %v6763_v43 = vmul.u32.u64.low %v3247_v41, %v3246_v36  ;;  %v6764_v56 = vmul.u32.u64.high %v3247_v41, %v3246_v36, %v6763_v43  ;;  %v6766_v29 = vmul.u32.u64.low %v3247_v41, %v3242_v57  ;;  %v6767_v34 = vmul.u32.u64.high %v3247_v41, %v3242_v57, %v6766_v29 }
 0x39c   :  { %vm3874_vm4 = vcmp.lt.s32.totalorder %v3873_v38, 0  ;;  %v3514_v20 = vand.u32 2139095040, %v6756_v35  ;;  %v3501_v13 = vand.u32 3, %v3500_v14  ;;  %vm6775_vm5 = vcmp.le.f32.partialorder %v3095_v46, 0.7853982 }
 0x39d   :  { %v3166_v42 = vsel %vm3874_vm4, 0, %v3873_v38  ;;  %v6780_v4 = vadd.f32 %v357_v6, %v6705_v11  ;;  %v3151_v7 = vadd.s32 %v6680_v48, %v6690_v3  ;;  %v3184_v49 = vsel %vm6775_vm5, 0, %v3182_v16 }
 0x39e   :  { %v3167_v33 = vsub.s32 32, %v3166_v42  ;;  %v3171_v26 = vsub.s32 4294967266, %v3166_v42  ;;  %v3515_v32 = vshrl.u32 %v3514_v20, 23  ;;  %v3254_v22 = vmul.u32 %v3247_v41, %v3238_v39 }
 0x39f   :  { %vm3256_vm6 = vc.u32 %v6764_v56, %v6766_v29  ;;  %v3257_v46 = vadd.s32 1, %v6767_v34  ;;  %v3168_v17 = vshll.u32 %v6745_v2, %v3166_v42  ;;  %vm3502_vm7 = vcmp.lt.s32.totalorder %v3501_v13, 2 }
 0x3a0   :  { %v3169_v60 = vshrl.u32 %v3151_v7, %v3167_v33  ;;  %v3172_v11 = vadd.s32 127, %v3171_v26  ;;  %v3887_v12 = vadd.s32 4294967169, %v3515_v32  ;;  %v3618_v3 = vand.u32 2139095040, %v6780_v4 }
 0x3a1   :  { %v3258_v48 = vsel %vm3256_vm6, %v3257_v46, %v6767_v34  ;;  %vm3503_vm8 = vcmp.eq.s32.totalorder %v3501_v13, 0  ;;  %vm3506_vm10 = vcmp.eq.s32.totalorder %v3501_v13, 2  ;;  %v3188_v10 = vadd.s32 3, %v3184_v49 }
 0x3a2   :  { %v4150_v27 = vpop.eup %4149  ;;  %v3170_v54 = vor.u32 %v3169_v60, %v3168_v17  ;;  %v3173_v62 = vshll.u32 %v3172_v11, 23  ;;  %v3259_v6 = vadd.s32 %v3258_v48, %v3254_v22  ;;  %v3521_v30 = vadd.s32 1, %v3887_v12 }
 0x3a3   :  { %v4152_v23 = vpop.eup %4151  ;;  %v3507_v44 = vxor.u32 2147483648, %v4150_v27  ;;  %v3511_v5 = vand.u32 2147483647, %v6756_v35  ;;  %v3619_v52 = vshrl.u32 %v3618_v3, 23  ;;  %vm3499_vm9 = vweird.f32 %v6471_v28 }
 0x3a4   :  { %v3504_v51 = vxor.u32 2147483648, %v4152_v23  ;;  %v3174_v2 = vor.u32 4788187, %v3173_v62  ;;  %v3260_v14 = vadd.s32 536870912, %v3259_v6  ;;  %v3177_v40 = vcvt.s32.f32 %v3170_v54 }
 0x3a5   :  { %v3508_v41 = vsel %vm3506_vm10, %v3507_v44, %v4152_v23  ;;  %vm3522_vm11 = vcmp.gt.s32.totalorder %v3521_v30, 0  ;;  %v6798_v45 = vand.u32 3, %v3188_v10  ;;  %v3518_v24 = vand.u32 8388607, %v3511_v5 }
 0x3a6   :  { %v3505_v8 = vsel %vm3503_vm8, %v4150_v27, %v3504_v51  ;;  %v3175_v50 = vand.u32 2147483647, %v3174_v2  ;;  %v6793_v53 = vshrl.u32 %v3260_v14, 30  ;;  %v3523_v1 = vsel %vm3522_vm11, %v3521_v30, 0 }
 0x3a7   :  { %v3509_v0 = vsel %vm3502_vm7, %v3505_v8, %v3508_v41  ;;  %v3525_v21 = vand.u32 31, %v3523_v1  ;;  %v3524_v43 = vshrl.u32 %v3523_v1, 5  ;;  %v3891_v34 = vadd.s32 4294967169, %v3619_v52 }
 0x3a8   :  { %v3510_v61 = vsel %vm3499_vm9, nan, %v3509_v0  ;;  %v3178_v37 = vmul.f32 %v3177_v40, %v3175_v50  ;;  %v3262_v9 = vshll.u32 %v6793_v53, 30  ;;  %v3255_v19 = vadd.s32 %v6766_v29, %v6764_v56 }
 0x3a9   :  { %3748 = vst [vmem:[#allocation2 + $0xe8] sm:$0xff] %v3510_v61  ;;  %v3526_v38 = vsub.s32 32, %v3525_v21  ;;  %v3528_v28 = vshll.u32 %v6974_v47, %v3525_v21  ;;  %v3531_v39 = vshll.u32 %v6975_v55, %v3525_v21  ;;  %v3534_v7 = vshll.u32 %v6976_v18, %v3525_v21 }
 0x3aa   :  { %v3179_v57 = vxor.u32 2147483648, %v3178_v37  ;;  %v6802_v36 = vsub.s32 %v3259_v6, %v3262_v9  ;;  %v3537_v49 = vshll.u32 %v6977_v31, %v3525_v21  ;;  %v3540_v12 = vshll.u32 %v6978_v25, %v3525_v21 }
 0x3ab   :  { %v3529_v16 = vshrl.u32 %v6975_v55, %v3526_v38  ;;  %v3532_v20 = vshrl.u32 %v6976_v18, %v3526_v38  ;;  %v3535_v33 = vshrl.u32 %v6977_v31, %v3526_v38  ;;  %v3538_v22 = vshrl.u32 %v6978_v25, %v3526_v38 }
 0x3ac   :  { %v3180_v13 = vsel %vm3097_vm3, %v3179_v57, %v3178_v37  ;;  %v3265_v42 = vsub.s32 0, %v6802_v36  ;;  %v3541_v48 = vshrl.u32 %v6983_v58, %v3526_v38  ;;  %v3519_v27 = vor.u32 8388608, %v3518_v24 }
 0x3ad   :  { %v3183_v26 = vsel %vm6775_vm5, %v6541_v59, %v3180_v13  ;;  %v3530_v32 = vor.u32 %v3529_v16, %v3528_v28  ;;  %v3533_v17 = vor.u32 %v3532_v20, %v3531_v39  ;;  %v3536_v60 = vor.u32 %v3535_v33, %v3534_v7 }
 0x3ae   :  { %4153 = vcosq.f32 %v3183_v26  ;;  %v3876_v46 = vmin.u32 %v3265_v42, %v6802_v36  ;;  %v3539_v11 = vor.u32 %v3538_v22, %v3537_v49  ;;  %v3615_v54 = vand.u32 2147483647, %v6780_v4 }
 0x3af   :  { %4155 = vsinq.f32 %v3183_v26  ;;  %v3527_v62 = vshrl.u32 %v6974_v47, %v3526_v38  ;;  %v3542_v6 = vor.u32 %v3541_v48, %v3540_v12  ;;  %vm3543_vm12 = vcmp.lt.s32.totalorder %v3524_v43, 1 }
 0x3b0   :  { %v3267_v3 = vclz %v3876_v46  ;;  %v3625_v30 = vadd.s32 1, %v3891_v34  ;;  %vm3545_vm13 = vcmp.lt.s32.totalorder %v3524_v43, 3  ;;  %vm3546_vm14 = vcmp.lt.s32.totalorder %v3524_v43, 4 }
 0x3b1   :  { %v3551_v44 = vsel %vm3543_vm12, %v3530_v32, %v3533_v17  ;;  %v3548_v10 = vsel %vm3546_vm14, %v3536_v60, 2102212464  ;;  %v3552_v51 = vsel %vm3546_vm14, %v3539_v11, 920167782  ;;  %v3555_v2 = vsel %vm3543_vm12, %v3533_v17, %v3536_v60 }
 0x3b2   :  { %v3877_v23 = vadd.s32 4294967294, %v3267_v3  ;;  %v3556_v14 = vsel %vm3546_vm14, %v3542_v6, 1326507024  ;;  %vm3201_vm15 = vcmp.lt.s32.totalorder %v6616_v15, 0  ;;  %vm3544_vm1 = vcmp.lt.s32.totalorder %v3524_v43, 2 }
 0x3b3   :  { %v3553_v56 = vsel %vm3545_vm13, %v3536_v60, %v3552_v51  ;;  %v3557_v29 = vsel %vm3545_vm13, %v3539_v11, %v3556_v14  ;;  %v3559_v8 = vshll.u32 %v3519_v27, 8  ;;  %v3547_v0 = vsel %vm3543_vm12, %v3527_v62, %v3530_v32 }
 0x3b4   :  { %vm3878_vm0 = vcmp.lt.s32.totalorder %v3877_v23, 0  ;;  %v3554_v40 = vsel %vm3544_vm1, %v3551_v44, %v3553_v56  ;;  %v3558_v52 = vsel %vm3544_vm1, %v3555_v2, %v3557_v29  ;;  %v3549_v21 = vsel %vm3545_vm13, %v3533_v17, %v3548_v10 }
 0x3b5   :  { %v3270_v41 = vsel %vm3878_vm0, 0, %v3877_v23  ;;  %v6834_v61 = vmul.u32.u64.low %v3559_v8, %v3558_v52  ;;  %v6835_v37 = vmul.u32.u64.high %v3559_v8, %v3558_v52, %v6834_v61  ;;  %vm3187_vm2 = vweird.f32 %v6541_v59 }
 0x3b6   :  { %v3271_v50 = vsub.s32 32, %v3270_v41  ;;  %v3275_v1 = vsub.s32 4294967266, %v3270_v41  ;;  %v6837_v9 = vmul.u32.u64.low %v3559_v8, %v3554_v40  ;;  %v6838_v24 = vmul.u32.u64.high %v3559_v8, %v3554_v40, %v6837_v9 }
 0x3b7   :  { %v3272_v38 = vshll.u32 %v6802_v36, %v3270_v41  ;;  %vm3626_vm3 = vcmp.gt.s32.totalorder %v3625_v30, 0  ;;  %v3285_v28 = vsub.s32 4, %v6793_v53  ;;  %v3550_v16 = vsel %vm3544_vm1, %v3547_v0, %v3549_v21 }
 0x3b8   :  { %v3273_v57 = vshrl.u32 %v3255_v19, %v3271_v50  ;;  %v3276_v34 = vadd.s32 127, %v3275_v1  ;;  %v3622_v39 = vand.u32 8388607, %v3615_v54  ;;  %v3627_v20 = vsel %vm3626_vm3, %v3625_v30, 0 }
 0x3b9   :  { %vm3190_vm4 = vcmp.lt.s32.totalorder %v6798_v45, 2  ;;  %v3629_v7 = vand.u32 31, %v3627_v20  ;;  %vm3191_vm5 = vcmp.eq.s32.totalorder %v6798_v45, 0  ;;  %vm3194_vm6 = vcmp.eq.s32.totalorder %v6798_v45, 2 }
 0x3ba   :  { %v3274_v13 = vor.u32 %v3273_v57, %v3272_v38  ;;  %v3277_v42 = vshll.u32 %v3276_v34, 23  ;;  %vm3568_vm7 = vc.u32 %v6835_v37, %v6837_v9  ;;  %v3569_v36 = vadd.s32 1, %v6838_v24 }
 0x3bb   :  { %v4154_v33 = vpop.eup %4153  ;;  %vm6855_vm8 = vcmp.le.f32.partialorder %v3199_v63, 0.7853982  ;;  %v3566_v22 = vmul.u32 %v3559_v8, %v3550_v16  ;;  %v3630_v46 = vsub.s32 32, %v3629_v7  ;;  %v3286_v60 = vsel %vm3201_vm15, %v3285_v28, %v6793_v53 }
 0x3bc   :  { %v4156_v43 = vpop.eup %4155  ;;  %v3195_v26 = vxor.u32 2147483648, %v4154_v33  ;;  %v3278_v49 = vor.u32 4788187, %v3277_v42  ;;  %v3570_v11 = vsel %vm3568_vm7, %v3569_v36, %v6838_v24  ;;  %v3623_v12 = vor.u32 8388608, %v3622_v39 }
 0x3bd   :  { %v3192_v17 = vxor.u32 2147483648, %v4156_v43  ;;  %v3281_v3 = vcvt.s32.f32 %v3274_v13  ;;  %v3571_v27 = vadd.s32 %v3570_v11, %v3566_v22  ;;  %v3628_v62 = vshrl.u32 %v3627_v20, 5 }
 0x3be   :  { %v3196_v48 = vsel %vm3194_vm6, %v3195_v26, %v4156_v43  ;;  %v3279_v19 = vand.u32 2147483647, %v3278_v49  ;;  %v3633_v6 = vshrl.u32 %v6975_v55, %v3630_v46  ;;  %v3636_v30 = vshrl.u32 %v6976_v18, %v3630_v46 }
 0x3bf   :  { %v3193_v63 = vsel %vm3191_vm5, %v4154_v33, %v3192_v17  ;;  %v3572_v53 = vadd.s32 536870912, %v3571_v27  ;;  %v3639_v10 = vshrl.u32 %v6977_v31, %v3630_v46  ;;  %v3632_v2 = vshll.u32 %v6974_v47, %v3629_v7 }
 0x3c0   :  { %v3197_v23 = vsel %vm3190_vm4, %v3193_v63, %v3196_v48  ;;  %v3282_v44 = vmul.f32 %v3281_v3, %v3279_v19  ;;  %v3635_v14 = vshll.u32 %v6975_v55, %v3629_v7  ;;  %v3638_v56 = vshll.u32 %v6976_v18, %v3629_v7 }
 0x3c1   :  { %v3198_v51 = vsel %vm3187_vm2, nan, %v3197_v23  ;;  %v6875_v41 = vshrl.u32 %v3572_v53, 30  ;;  %v3641_v45 = vshll.u32 %v6977_v31, %v3629_v7  ;;  %v3642_v40 = vshrl.u32 %v6978_v25, %v3630_v46 }
 0x3c2   :  { %v3283_v29 = vxor.u32 2147483648, %v3282_v44  ;;  %3745 = vst [vmem:[#allocation2 + $0xd0] sm:$0xff] %v3198_v51  ;;  %v3634_v52 = vor.u32 %v3633_v6, %v3632_v2  ;;  %v3637_v8 = vor.u32 %v3636_v30, %v3635_v14  ;;  %v3644_v50 = vshll.u32 %v6978_v25, %v3629_v7 }
 0x3c3   :  { %v3645_v59 = vshrl.u32 %v6983_v58, %v3630_v46  ;;  %v3574_v55 = vshll.u32 %v6875_v41, 30  ;;  %v3640_v18 = vor.u32 %v3639_v10, %v3638_v56  ;;  %v3643_v0 = vor.u32 %v3642_v40, %v3641_v45 }
 0x3c4   :  { %v3284_v1 = vsel %vm3201_vm15, %v3283_v29, %v3282_v44  ;;  %v3288_v31 = vsel %vm6855_vm8, 0, %v3286_v60  ;;  %vm3647_vm10 = vcmp.lt.s32.totalorder %v3628_v62, 1  ;;  %v3663_v25 = vshll.u32 %v3623_v12, 8 }
 0x3c5   :  { %v3287_v21 = vsel %vm6855_vm8, %v6616_v15, %v3284_v1  ;;  %v3646_v61 = vor.u32 %v3645_v59, %v3644_v50  ;;  %v3575_v24 = vsub.s32 %v3571_v27, %v3574_v55  ;;  %v3631_v58 = vshrl.u32 %v6974_v47, %v3630_v46 }
 0x3c6   :  { %4157 = vcosq.f32 %v3287_v21  ;;  %vm3650_vm11 = vcmp.lt.s32.totalorder %v3628_v62, 4  ;;  %v3655_v38 = vsel %vm3647_vm10, %v3634_v52, %v3637_v8  ;;  %vm3649_vm9 = vcmp.lt.s32.totalorder %v3628_v62, 3 }
 0x3c7   :  { %4159 = vsinq.f32 %v3287_v21  ;;  %v3577_v57 = vsub.s32 0, %v3575_v24  ;;  %v3652_v34 = vsel %vm3650_vm11, %v3640_v18, 2102212464  ;;  %v3656_v28 = vsel %vm3650_vm11, %v3643_v0, 920167782 }
 0x3c8   :  { %vm3648_vm12 = vcmp.lt.s32.totalorder %v3628_v62, 2  ;;  %v3657_v16 = vsel %vm3649_vm9, %v3640_v18, %v3656_v28  ;;  %v3659_v39 = vsel %vm3647_vm10, %v3637_v8, %v3640_v18  ;;  %v3660_v20 = vsel %vm3650_vm11, %v3646_v61, 1326507024 }
 0x3c9   :  { %v3888_v13 = vmin.u32 %v3577_v57, %v3575_v24  ;;  %v3651_v42 = vsel %vm3647_vm10, %v3631_v58, %v3634_v52  ;;  %v3658_v7 = vsel %vm3648_vm12, %v3655_v38, %v3657_v16  ;;  %v3661_v33 = vsel %vm3649_vm9, %v3643_v0, %v3660_v20 }
 0x3ca   :  { %v3653_v36 = vsel %vm3649_vm9, %v3637_v8, %v3652_v34  ;;  %v3662_v43 = vsel %vm3648_vm12, %v3659_v39, %v3661_v33  ;;  %v6892_v26 = vmul.u32.u64.low %v3663_v25, %v3658_v7  ;;  %v6893_v47 = vmul.u32.u64.high %v3663_v25, %v3658_v7, %v6892_v26 }
 0x3cb   :  { %v3579_v32 = vclz %v3888_v13  ;;  %v3292_v49 = vadd.s32 3, %v3288_v31  ;;  %v6895_v22 = vmul.u32.u64.low %v3663_v25, %v3662_v43  ;;  %v6896_v46 = vmul.u32.u64.high %v3663_v25, %v3662_v43, %v6895_v22 }
 0x3cc   :  { %v3654_v60 = vsel %vm3648_vm12, %v3651_v42, %v3653_v36  ;;  %v3673_v11 = vadd.s32 1, %v6893_v47  ;;  %v3567_v3 = vadd.s32 %v6837_v9, %v6835_v37  ;;  %vm3291_vm2 = vweird.f32 %v6616_v15 }
 0x3cd   :  { %v3889_v17 = vadd.s32 4294967294, %v3579_v32  ;;  %v3293_v12 = vand.u32 3, %v3292_v49  ;;  %v3670_v19 = vmul.u32 %v3663_v25, %v3654_v60  ;;  %vm3672_vm14 = vc.u32 %v6896_v46, %v6892_v26 }
 0x3ce   :  { %v3674_v6 = vsel %vm3672_vm14, %v3673_v11, %v6893_v47  ;;  %vm3513_vm3 = vcmp.lt.s32.totalorder %v6756_v35, 0  ;;  %v3597_v31 = vsub.s32 4, %v6875_v41  ;;  %vm3512_vm4 = vcmp.le.f32.partialorder %v3511_v5, 0.7853982 }
 0x3cf   :  { %vm3890_vm13 = vcmp.lt.s32.totalorder %v3889_v17, 0  ;;  %v3675_v23 = vadd.s32 %v3674_v6, %v3670_v19  ;;  %vm3298_vm15 = vcmp.eq.s32.totalorder %v3293_v12, 2  ;;  %vm3295_vm0 = vcmp.eq.s32.totalorder %v3293_v12, 0 }
 0x3d0   :  { %v3582_v48 = vsel %vm3890_vm13, 0, %v3889_v17  ;;  %vm3294_vm1 = vcmp.lt.s32.totalorder %v3293_v12, 2  ;;  %v3598_v58 = vsel %vm3513_vm3, %v3597_v31, %v6875_v41  ;;  %v3671_v28 = vadd.s32 %v6892_v26, %v6896_v46 }
 0x3d1   :  { %v3583_v27 = vsub.s32 32, %v3582_v48  ;;  %v3587_v63 = vsub.s32 4294967266, %v3582_v48  ;;  %v3584_v53 = vshll.u32 %v3575_v24, %v3582_v48  ;;  %v3676_v14 = vadd.s32 536870912, %v3675_v23 }
 0x3d2   :  { %v3600_v57 = vsel %vm3512_vm4, 0, %v3598_v58  ;;  %vm3603_vm10 = vweird.f32 %v6756_v35  ;;  %vm3617_vm11 = vcmp.lt.s32.totalorder %v6780_v4, 0  ;;  %vm3616_vm9 = vcmp.le.f32.partialorder %v3615_v54, 0.7853982 }
 0x3d3   :  { %v4158_v30 = vpop.eup %4157  ;;  %v3585_v10 = vshrl.u32 %v3567_v3, %v3583_v27  ;;  %v3588_v51 = vadd.s32 127, %v3587_v63  ;;  %v3677_v9 = vshrl.u32 %v3676_v14, 30  ;;  %v3604_v20 = vadd.s32 3, %v3600_v57 }
 0x3d4   :  { %v4160_v44 = vpop.eup %4159  ;;  %v3299_v62 = vxor.u32 2147483648, %v4158_v30 }
 0x3d5   :  { %v3296_v2 = vxor.u32 2147483648, %v4160_v44  ;;  %v3586_v29 = vor.u32 %v3585_v10, %v3584_v53  ;;  %v3589_v45 = vshll.u32 %v3588_v51, 23  ;;  %v3678_v50 = vshll.u32 %v3677_v9, 30 }
 0x3d6   :  { %v3300_v56 = vsel %vm3298_vm15, %v3299_v62, %v4160_v44  ;;  %v3605_v36 = vand.u32 3, %v3604_v20  ;;  %v3701_v48 = vsub.s32 4, %v3677_v9  ;;  %vm3707_vm15 = vweird.f32 %v6780_v4 }
 0x3d7   :  { %v3297_v37 = vsel %vm3295_vm0, %v4158_v30, %v3296_v2  ;;  %v3590_v52 = vor.u32 4788187, %v3589_v45  ;;  %v3593_v1 = vcvt.s32.f32 %v3586_v29  ;;  %v3679_v55 = vsub.s32 %v3675_v23, %v3678_v50 }
 0x3d8   :  { %v3301_v40 = vsel %vm3294_vm1, %v3297_v37, %v3300_v56  ;;  %vm3610_vm6 = vcmp.eq.s32.totalorder %v3605_v36, 2  ;;  %vm3607_vm7 = vcmp.eq.s32.totalorder %v3605_v36, 0  ;;  %vm3606_vm8 = vcmp.lt.s32.totalorder %v3605_v36, 2 }
 0x3d9   :  { %v3302_v8 = vsel %vm3291_vm2, nan, %v3301_v40  ;;  %v3591_v59 = vand.u32 2147483647, %v3590_v52  ;;  %v3681_v0 = vsub.s32 0, %v3679_v55  ;;  %v3702_v63 = vsel %vm3617_vm11, %v3701_v48, %v3677_v9 }
 0x3da   :  { %3746 = vst [vmem:[#allocation2 + $0xd8] sm:$0xff] %v3302_v8  ;;  %v3704_v6 = vsel %vm3616_vm9, 0, %v3702_v63 }
 0x3db   :  { %v3594_v18 = vmul.f32 %v3593_v1, %v3591_v59  ;;  %v3892_v61 = vmin.u32 %v3681_v0, %v3679_v55  ;;  %v3708_v30 = vadd.s32 3, %v3704_v6 }
 0x3dd   :  { %v3595_v21 = vxor.u32 2147483648, %v3594_v18  ;;  %v3683_v25 = vclz %v3892_v61  ;;  %v3709_v23 = vand.u32 3, %v3708_v30 }
 0x3df   :  { %v3596_v15 = vsel %vm3513_vm3, %v3595_v21, %v3594_v18  ;;  %v3893_v38 = vadd.s32 4294967294, %v3683_v25  ;;  %vm3714_vm12 = vcmp.eq.s32.totalorder %v3709_v23, 2  ;;  %vm3711_vm13 = vcmp.eq.s32.totalorder %v3709_v23, 0 }
 0x3e0   :  { %v3599_v24 = vsel %vm3512_vm4, %v6756_v35, %v3596_v15  ;;  %vm3710_vm14 = vcmp.lt.s32.totalorder %v3709_v23, 2 }
 0x3e1   :  { %4161 = vcosq.f32 %v3599_v24  ;;  %vm3894_vm5 = vcmp.lt.s32.totalorder %v3893_v38, 0 }
 0x3e2   :  { %4163 = vsinq.f32 %v3599_v24  ;;  %v3686_v34 = vsel %vm3894_vm5, 0, %v3893_v38 }
 0x3e3   :  { %v3687_v16 = vsub.s32 32, %v3686_v34  ;;  %v3691_v39 = vsub.s32 4294967266, %v3686_v34  ;;  %v3688_v13 = vshll.u32 %v3679_v55, %v3686_v34 }
 0x3e5   :  { %v3689_v42 = vshrl.u32 %v3671_v28, %v3687_v16  ;;  %v3692_v5 = vadd.s32 127, %v3691_v39 }
 0x3e7   :  { %v3690_v7 = vor.u32 %v3689_v42, %v3688_v13  ;;  %v3693_v33 = vshll.u32 %v3692_v5, 23 }
 0x3e9   :  { %v3694_v43 = vor.u32 4788187, %v3693_v33  ;;  %v3697_v41 = vcvt.s32.f32 %v3690_v7 }
 0x3eb   :  { %v3695_v32 = vand.u32 2147483647, %v3694_v43 }
 0x3ed   :  { %v3698_v60 = vmul.f32 %v3697_v41, %v3695_v32 }
 0x3ee   :  { %v4162_v47 = vpop.eup %4161 }
 0x3ef   :  { %v4164_v49 = vpop.eup %4163  ;;  %v3611_v22 = vxor.u32 2147483648, %v4162_v47  ;;  %v3699_v11 = vxor.u32 2147483648, %v3698_v60 }
 0x3f0   :  { %v3608_v17 = vxor.u32 2147483648, %v4164_v49 }
 0x3f1   :  { %v3612_v26 = vsel %vm3610_vm6, %v3611_v22, %v4164_v49  ;;  %v3700_v3 = vsel %vm3617_vm11, %v3699_v11, %v3698_v60 }
 0x3f2   :  { %v3609_v46 = vsel %vm3607_vm7, %v4162_v47, %v3608_v17  ;;  %v3703_v27 = vsel %vm3616_vm9, %v6780_v4, %v3700_v3 }
 0x3f3   :  { %v3613_v12 = vsel %vm3606_vm8, %v3609_v46, %v3612_v26  ;;  %4165 = vcosq.f32 %v3703_v27 }
 0x3f4   :  { %v3614_v19 = vsel %vm3603_vm10, nan, %v3613_v12  ;;  %4167 = vsinq.f32 %v3703_v27 }
 0x3f5   :  { %3749 = vst [vmem:[#allocation2 + $0xf0] sm:$0xff] %v3614_v19 }
 0x400   :  { %v4166_v44 = vpop.eup %4165 }
 0x401   :  { %v4168_v35 = vpop.eup %4167  ;;  %v3715_v62 = vxor.u32 2147483648, %v4166_v44 }
 0x402   :  { %v3712_v53 = vxor.u32 2147483648, %v4168_v35 }
 0x403   :  { %v3716_v10 = vsel %vm3714_vm12, %v3715_v62, %v4168_v35 }
 0x404   :  { %v3713_v54 = vsel %vm3711_vm13, %v4166_v44, %v3712_v53 }
 0x405   :  { %v3717_v51 = vsel %vm3710_vm14, %v3713_v54, %v3716_v10 }
 0x406   :  { %v3718_v2 = vsel %vm3707_vm15, nan, %v3717_v51 }
 0x407   :  { %3750 = vst [vmem:[#allocation2 + $0xf8] sm:$0xff] %v3718_v2 }
 0x408   :  { %4180 = shalt.err (!%p4177_p4)
}
 0x409   :  { %s4201_s21 = smov 256   ;;  %s4202_s22 = smov 16  }
 0x40a   :  { %3762 = dma.vmem_to_hbm [thread:$0]  %s3757_s19, 4096, %s6924_s3, [#allocation3], %s4201_s21, %s4201_s21, %s4202_s22  }
 0x40b   :  { %4189 = dma.done.wait [#allocation3], 4096  }
 0x40c   :  { %4190 = vsyncadd [#allocation3], 4294963200 }
 0x40d   :  { %3766 = vsyncpa [#allocation3], 1 }

</bundles_post_ra>
